<compile_context>
chip_gen: v7x
topology: tpu7x:2x2x1
jax: 0.10.0
libtpu: 0.0.40
codegen_flags: <defaults>
</compile_context>

<pallas_src>
import functools

import numpy as np

import jax
import jax.numpy as jnp
from jax.experimental import pallas as pl
from jax.experimental.pallas import tpu as pltpu

LEAKY_SLOPE = 0.01
_VMEM_LIMIT = 32 * 1024 * 1024  # explicit scoped-VMEM budget (fits v5e/v6e/v7x)


def _leaky(x):
    return jnp.where(x >= 0.0, x, LEAKY_SLOPE * x)


def _row_tile(m, max_rows=2048):
    """Largest row tile <= max_rows that divides m (or m itself)."""
    if m <= max_rows:
        return m
    for t in (2048, 1024, 512, 256, 128, 64, 32, 16, 8):
        if t <= max_rows and m % t == 0:
            return t
    return m


# --------------------------------------------------------------------------
# Fused matmul kernel: (M,K) @ (K,N) + bias [+ LeakyReLU]   (classifier FC)
# --------------------------------------------------------------------------
@functools.lru_cache(maxsize=None)
def _build_matmul(M, K, N, act):
    tm = _row_tile(M)

    def kernel(a_ref, w_ref, b_ref, o_ref):
        if K == 1:
            # Rank-1 product: VPU broadcast MAC, exact in f32 (skip the MXU).
            y = a_ref[...].astype(jnp.float32) * w_ref[...] + b_ref[...]
        else:
            y = jnp.dot(a_ref[...].astype(jnp.bfloat16),
                        w_ref[...].astype(jnp.bfloat16),
                        preferred_element_type=jnp.float32) + b_ref[...]
        if act:
            y = _leaky(y)
        o_ref[...] = y

    return pl.pallas_call(
        kernel,
        out_shape=jax.ShapeDtypeStruct((M, N), jnp.float32),
        grid=(M // tm,),
        in_specs=[
            pl.BlockSpec((tm, K), lambda i: (i, 0)),
            pl.BlockSpec((K, N), lambda i: (0, 0)),
            pl.BlockSpec((1, N), lambda i: (0, 0)),
        ],
        out_specs=pl.BlockSpec((tm, N), lambda i: (i, 0)),
        compiler_params=pltpu.CompilerParams(
            dimension_semantics=("parallel",),
            vmem_limit_bytes=_VMEM_LIMIT),
    )


def matmul_fused(a, w, bias, *, act=False):
    M, K = a.shape
    _, N = w.shape
    return _build_matmul(M, K, N, act)(a, w, bias.reshape(1, N))


# --------------------------------------------------------------------------
# Fully fused ARB kernel (one pallas_call per ARB, grid over the batch).
# --------------------------------------------------------------------------
@functools.lru_cache(maxsize=None)
def _build_arb(N, H, W, Cin, Cout, sh, sw, Ho, Wo, post_act, fuse_pool,
               in_dtype):
    del sw, in_dtype  # W-stride is folded into the block-Toeplitz weights.
    WCin = W * Cin
    WoCout = Wo * Cout
    KH, PH = 3, 1
    Hp = H + 2 * PH            # H-padded scratch rows for layer2
    Hp4 = Ho + 2               # H-padded scratch rows for layer4 (3x3, pad 1)

    def kernel(x_ref, s1_ref, t1_ref, wres_ref, bres_ref,
               w2_ref, b2_ref, w4_ref, b4_ref, o_ref, pad1, pad2):
        # Zero the H-halo rows of both scratches.  (W padding / W stride are
        # encoded in the Toeplitz weights, so no lane padding is needed.)
        pad1[...] = jnp.zeros_like(pad1)
        pad2[...] = jnp.zeros_like(pad2)

        x = x_ref[0].astype(jnp.float32)                    # (H, W*Cin)

        # ---- layerRes: 1x1 conv with stride on the *raw* input -----------
        pad1[PH:PH + H, :] = x                              # raw rows
        if sh > 1:
            rows_r = pad1[pl.ds(PH, Ho, stride=sh), :]      # (Ho, W*Cin)
        else:
            rows_r = pad1[PH:PH + Ho, :]
        xres = jnp.dot(rows_r.astype(jnp.bfloat16), wres_ref[...],
                       preferred_element_type=jnp.float32) + bres_ref[...]

        # ---- layer1: folded BatchNorm affine + LeakyReLU (fused) ----------
        xa = _leaky(x * s1_ref[...] + t1_ref[...])
        pad1[PH:PH + H, :] = xa                             # overwrite interior

        # ---- layer2 (3x3, stride) + layer3 (BN folded) + LeakyReLU --------
        # One plain 2D matmul per kernel row; K concatenates W and Cin.
        h = jnp.zeros((Ho, WoCout), jnp.float32)
        for i in range(KH):
            if sh > 1:
                rows = pad1[pl.ds(i, Ho, stride=sh), :]
            else:
                rows = pad1[i:i + Ho, :]
            h = h + jnp.dot(rows.astype(jnp.bfloat16), w2_ref[i],
                            preferred_element_type=jnp.float32)
        h = _leaky(h + b2_ref[...])

        # TODO(synk): dropout (droprate=0.0) and SEBlock (se_included=False)
        # are disabled in this configuration and therefore omitted.

        # ---- layer4 (3x3, stride 1) + bias + residual add [+ LeakyReLU] ---
        pad2[1:1 + Ho, :] = h
        y = jnp.zeros((Ho, WoCout), jnp.float32)
        for i in range(KH):
            y = y + jnp.dot(pad2[i:i + Ho, :].astype(jnp.bfloat16), w4_ref[i],
                            preferred_element_type=jnp.float32)
        y = y + b4_ref[...] + xres
        if post_act:
            y = _leaky(y)

        if fuse_pool:
            # ClassifyBlock adaptive avg + max pooling fused into the epilogue
            # (the final feature map never hits HBM).
            rsum = jnp.sum(y, axis=0, keepdims=True)        # (1, Wo*Cout)
            rmax = jnp.max(y, axis=0, keepdims=True)
            psum = rsum[:, 0:Cout]
            pmax = rmax[:, 0:Cout]
            for ow in range(1, Wo):
                psum = psum + rsum[:, ow * Cout:(ow + 1) * Cout]
                pmax = jnp.maximum(pmax, rmax[:, ow * Cout:(ow + 1) * Cout])
            o_ref[0] = psum * (1.0 / float(Ho * Wo)) + pmax
        else:
            o_ref[0] = y.astype(o_ref.dtype)

    if fuse_pool:
        out_shape = jax.ShapeDtypeStruct((N, 1, Cout), jnp.float32)
        out_spec = pl.BlockSpec((1, 1, Cout), lambda n: (n, 0, 0))
    else:
        # Inter-ARB activations live in HBM as bf16 (N, Ho, Wo*Cout): Wo*Cout
        # lanes per store instead of Cout, and a free reshape of NHWC.
        out_shape = jax.ShapeDtypeStruct((N, Ho, WoCout), jnp.bfloat16)
        out_spec = pl.BlockSpec((1, Ho, WoCout), lambda n: (n, 0, 0))

    return pl.pallas_call(
        kernel,
        out_shape=out_shape,
        grid=(N,),
        in_specs=[
            pl.BlockSpec((1, H, WCin), lambda n: (n, 0, 0)),        # x
            pl.BlockSpec((1, WCin), lambda n: (0, 0)),              # bn1 scale tile
            pl.BlockSpec((1, WCin), lambda n: (0, 0)),              # bn1 shift tile
            pl.BlockSpec((WCin, WoCout), lambda n: (0, 0)),         # layerRes Toeplitz
            pl.BlockSpec((1, WoCout), lambda n: (0, 0)),            # layerRes bias
            pl.BlockSpec((KH, WCin, WoCout), lambda n: (0, 0, 0)),  # conv2 Toeplitz
            pl.BlockSpec((1, WoCout), lambda n: (0, 0)),            # conv2 bias (BN3 folded)
            pl.BlockSpec((KH, WoCout, WoCout), lambda n: (0, 0, 0)),# conv4 Toeplitz
            pl.BlockSpec((1, WoCout), lambda n: (0, 0)),            # conv4 bias
        ],
        out_specs=out_spec,
        scratch_shapes=[
            pltpu.VMEM((Hp, WCin), jnp.float32),
            pltpu.VMEM((Hp4, WoCout), jnp.float32),
        ],
        compiler_params=pltpu.CompilerParams(
            dimension_semantics=("parallel",),
            vmem_limit_bytes=_VMEM_LIMIT),
    )


def arb_forward(x, d, cfg):
    f = _build_arb(x.shape[0], cfg["H"], cfg["W"], cfg["cin"], cfg["cout"],
                   cfg["sh"], cfg["sw"], cfg["Ho"], cfg["Wo"],
                   cfg["post_act"], cfg["fuse_pool"], str(x.dtype))
    return f(x, d["s1"], d["t1"], d["wres"], d["bres"],
             d["w2"], d["b2"], d["w4"], d["b4"])


def erann_forward(prepped, x, plan):
    idx = 0
    for blk in prepped["blocks"]:
        for d in blk:
            x = arb_forward(x, d, plan["arbs"][idx])
            idx += 1
    # The last ARB returns the fused (N, 1, C) avg+max pooled features.
    pooled = x.reshape(x.shape[0], plan["feat_channels"])
    w1, b1 = prepped["fc1"]
    h = matmul_fused(pooled, w1, b1, act=True)       # Linear + LeakyReLU fused
    w2, b2 = prepped["fc2"]
    return matmul_fused(h, w2, b2, act=False)        # activation=None -> raw logits


# --------------------------------------------------------------------------
# Static plan + one-time parameter preparation (BN folding, Toeplitz weights)
# --------------------------------------------------------------------------
def build_plan(num_blocks, widen, Xstrides, started_channels, H0, W0):
    nCh = [started_channels] + [2 ** (i + 3) * widen for i in range(num_blocks + 1)]
    arbs = []
    H, W = H0, W0
    for i in range(num_blocks):
        stride = (2, Xstrides[i])
        for j in range(4):
            cin = nCh[i] if j == 0 else nCh[i + 1]
            cout = nCh[i + 1]
            sh, sw = stride if j == 0 else (1, 1)
            Ho = (H + 2 - 3) // sh + 1
            Wo = (W + 2 - 3) // sw + 1
            arbs.append(dict(H=H, W=W, cin=cin, cout=cout, sh=sh, sw=sw,
                             Ho=Ho, Wo=Wo,
                             post_act=(j != 3) or (i + 1 != num_blocks),
                             fuse_pool=(i + 1 == num_blocks and j == 3)))
            H, W = Ho, Wo
    return {"arbs": arbs, "feat_channels": nCh[num_blocks]}


def _toeplitz_np(w_taps, kh, kw, cin, cout, W, Wo, sw, pw):
    """Expand tap-major conv weights (kh*kw, cin, cout) into per-kernel-row
    block-Toeplitz matrices (kh, W*cin, Wo*cout).  W padding and W stride are
    encoded in the block placement, so the kernel only needs plain 2D matmuls
    on unpadded input rows."""
    w = np.asarray(w_taps, np.float32)
    out = np.zeros((kh, W * cin, Wo * cout), np.float32)
    for i in range(kh):
        for j in range(kw):
            blk = w[i * kw + j]
            for ow in range(Wo):
                wc = ow * sw + j - pw                 # unpadded input column
                if 0 <= wc < W:
                    out[i, wc * cin:(wc + 1) * cin,
                        ow * cout:(ow + 1) * cout] = blk
    return out


def prepare_arb(p, cfg):
    H, W = cfg["H"], cfg["W"]
    Cin, Cout = cfg["cin"], cfg["cout"]
    sw = cfg["sw"]
    Wo = cfg["Wo"]

    s1, t1 = (np.asarray(a, np.float32) for a in p["bn1"])
    s3, t3 = (np.asarray(a, np.float32) for a in p["bn3"])
    # Fold the layer3 BatchNorm affine into conv2's weights/bias (inference).
    w2 = np.asarray(p["w2"], np.float32) * s3[None, None, :]
    b2 = s3 * np.asarray(p["b2"], np.float32) + t3
    w4 = np.asarray(p["w4"], np.float32)
    b4 = np.asarray(p["b4"], np.float32)
    wres = np.asarray(p["wres"], np.float32)
    bres = np.asarray(p["bres"], np.float32)

    return {
        "s1": jnp.asarray(np.tile(s1, W)[None, :]),
        "t1": jnp.asarray(np.tile(t1, W)[None, :]),
        "wres": jnp.asarray(
            _toeplitz_np(wres[None], 1, 1, Cin, Cout, W, Wo, sw, 0)[0],
            dtype=jnp.bfloat16),
        "bres": jnp.asarray(np.tile(bres, Wo)[None, :]),
        "w2": jnp.asarray(_toeplitz_np(w2, 3, 3, Cin, Cout, W, Wo, sw, 1),
                          dtype=jnp.bfloat16),
        "b2": jnp.asarray(np.tile(b2, Wo)[None, :]),
        "w4": jnp.asarray(_toeplitz_np(w4, 3, 3, Cout, Cout, Wo, Wo, 1, 1),
                          dtype=jnp.bfloat16),
        "b4": jnp.asarray(np.tile(b4, Wo)[None, :]),
    }


def prepare_params(params, plan):
    blocks = []
    idx = 0
    for blk in params["blocks"]:
        arbs = []
        for p in blk:
            arbs.append(prepare_arb(p, plan["arbs"][idx]))
            idx += 1
        blocks.append(arbs)
    return {"blocks": blocks, "fc1": params["fc1"], "fc2": params["fc2"]}


# --------------------------------------------------------------------------
# Deterministic parameter initialization (structure matches the PyTorch spec)
# --------------------------------------------------------------------------
def conv_init(key, kh, kw, cin, cout):
    k1, k2 = jax.random.split(key)
    fan_in = kh * kw * cin
    if kh == 1 and kw == 1:
        w = jax.random.normal(k1, (cin, cout), jnp.float32) / jnp.sqrt(fan_in)
    else:
        # tap-major layout: (kh*kw, Cin, Cout), tap index = i*kw + j
        w = jax.random.normal(k1, (kh * kw, cin, cout), jnp.float32) / jnp.sqrt(fan_in)
    b = 0.01 * jax.random.normal(k2, (cout,), jnp.float32)
    return w, b


def bn_init(key, c):
    k1, k2, k3, k4 = jax.random.split(key, 4)
    gamma = 1.0 + 0.1 * jax.random.normal(k1, (c,), jnp.float32)
    beta = 0.1 * jax.random.normal(k2, (c,), jnp.float32)
    mean = 0.1 * jax.random.normal(k3, (c,), jnp.float32)
    var = 1.0 + 0.1 * jax.random.uniform(k4, (c,), jnp.float32)
    scale = gamma / jnp.sqrt(var + 1e-5)
    shift = beta - mean * scale
    return scale, shift


def arb_init(key, cin, cout):
    k = jax.random.split(key, 5)
    p = {}
    p["bn1"] = bn_init(k[0], cin)
    p["w2"], p["b2"] = conv_init(k[1], 3, 3, cin, cout)
    p["bn3"] = bn_init(k[2], cout)
    p["w4"], p["b4"] = conv_init(k[3], 3, 3, cout, cout)
    p["wres"], p["bres"] = conv_init(k[4], 1, 1, cin, cout)
    return p


def erann_init(key, num_classes, num_blocks, widen, Xstrides, started_channels):
    nCh = [started_channels] + [2 ** (i + 3) * widen for i in range(num_blocks + 1)]
    blocks = []
    for i in range(num_blocks):
        arbs = []
        for j in range(4):
            cin = nCh[i] if j == 0 else nCh[i + 1]
            key, sub = jax.random.split(key)
            arbs.append(arb_init(sub, cin, nCh[i + 1]))
        blocks.append(arbs)
    C = nCh[num_blocks]
    key, k1, k2, k3, k4 = jax.random.split(key, 5)
    fc1_w = jax.random.normal(k1, (C, C), jnp.float32) / jnp.sqrt(C)
    fc1_b = 0.01 * jax.random.normal(k2, (C,), jnp.float32)
    fc2_w = jax.random.normal(k3, (C, num_classes), jnp.float32) / jnp.sqrt(C)
    fc2_b = 0.01 * jax.random.normal(k4, (num_classes,), jnp.float32)
    return {"blocks": blocks, "fc1": (fc1_w, fc1_b), "fc2": (fc2_w, fc2_b)}


# --------------------------------------------------------------------------
# Main
# --------------------------------------------------------------------------
if __name__ == "__main__":
    key = jax.random.PRNGKey(0)
    key, pkey, xkey = jax.random.split(key, 3)

    # Small ERANN config: num_blocks=2, widen=1, Xstrides=[2,2], 5 classes,
    # started_channels=1 -> channels [1, 8, 16]
    NUM_CLASSES, NUM_BLOCKS, WIDEN = 5, 2, 1
    XSTRIDES, STARTED = [2, 2], 1

    params = erann_init(pkey, NUM_CLASSES, NUM_BLOCKS, WIDEN, XSTRIDES, STARTED)

    # Example input in the PyTorch NCHW convention: (batch=2, C=1, H=16, W=16)
    x_nchw = jax.random.normal(xkey, (2, 1, 16, 16), jnp.float32)
    n, c, hh, ww = x_nchw.shape

    plan = build_plan(NUM_BLOCKS, WIDEN, XSTRIDES, STARTED, hh, ww)
    prepped = prepare_params(params, plan)   # one-time BN fold + Toeplitz build

    @jax.jit
    def fwd(prepped, x_nchw):
        # NCHW -> lane-dense (N, H, W*C) working layout (free reshape of NHWC)
        x = jnp.transpose(x_nchw, (0, 2, 3, 1)).reshape(n, hh, ww * c)
        return erann_forward(prepped, x, plan)

    out = jax.block_until_ready(fwd(prepped, x_nchw))

    assert out.shape == (2, NUM_CLASSES), out.shape
    assert bool(jnp.isfinite(out).all()), "non-finite output"
    print("KERNEL_OK")
</pallas_src>

<mosaic_0001>
module attributes {stable_mosaic.version = 11 : i64} {
  func.func @kernel(%arg0: i32, %arg1: memref<1x16x16xf32, #tpu.memory_space<vmem>>, %arg2: memref<1x16xf32, #tpu.memory_space<vmem>>, %arg3: memref<1x16xf32, #tpu.memory_space<vmem>>, %arg4: memref<16x64xbf16, #tpu.memory_space<vmem>>, %arg5: memref<1x64xf32, #tpu.memory_space<vmem>>, %arg6: memref<3x16x64xbf16, #tpu.memory_space<vmem>>, %arg7: memref<1x64xf32, #tpu.memory_space<vmem>>, %arg8: memref<3x64x64xbf16, #tpu.memory_space<vmem>>, %arg9: memref<1x64xf32, #tpu.memory_space<vmem>>, %arg10: memref<1x8x64xbf16, #tpu.memory_space<vmem>>, %arg11: memref<18x16xf32, #tpu.memory_space<vmem>>, %arg12: memref<10x64xf32, #tpu.memory_space<vmem>>) attributes {dimension_semantics = [#tpu.dimension_semantics<parallel>], iteration_bounds = array<i64: 2>, scalar_prefetch = 0 : i64, scratch_operands = 2 : i64, tpu.core_type = #tpu.core_type<tc>, window_params = [{transform_indices = @transform_0, window_bounds = array<i64: 1, 16, 16>}, {pipeline_mode = #tpu.pipeline_mode<synchronous>, transform_indices = @transform_1, window_bounds = array<i64: 1, 16>}, {pipeline_mode = #tpu.pipeline_mode<synchronous>, transform_indices = @transform_2, window_bounds = array<i64: 1, 16>}, {pipeline_mode = #tpu.pipeline_mode<synchronous>, transform_indices = @transform_3, window_bounds = array<i64: 16, 64>}, {pipeline_mode = #tpu.pipeline_mode<synchronous>, transform_indices = @transform_4, window_bounds = array<i64: 1, 64>}, {pipeline_mode = #tpu.pipeline_mode<synchronous>, transform_indices = @transform_5, window_bounds = array<i64: 3, 16, 64>}, {pipeline_mode = #tpu.pipeline_mode<synchronous>, transform_indices = @transform_6, window_bounds = array<i64: 1, 64>}, {pipeline_mode = #tpu.pipeline_mode<synchronous>, transform_indices = @transform_7, window_bounds = array<i64: 3, 64, 64>}, {pipeline_mode = #tpu.pipeline_mode<synchronous>, transform_indices = @transform_8, window_bounds = array<i64: 1, 64>}, {transform_indices = @transform_9, window_bounds = array<i64: 1, 8, 64>}]} {
    %cst = arith.constant 0.000000e+00 : f32
    %0 = vector.broadcast %cst : f32 to vector<18x16xf32>
    %c0 = arith.constant 0 : index
    %c0_0 = arith.constant 0 : index
    %1 = vector.load %arg11[%c0, %c0_0] : memref<18x16xf32, #tpu.memory_space<vmem>>, vector<18x16xf32>
    tpu.vector_store %arg11[%c0, %c0_0], %0 {strides = array<i32>} : memref<18x16xf32, #tpu.memory_space<vmem>>, vector<18x16xf32>,
    %cst_1 = arith.constant 0.000000e+00 : f32
    %2 = vector.broadcast %cst_1 : f32 to vector<10x64xf32>
    %c0_2 = arith.constant 0 : index
    %c0_3 = arith.constant 0 : index
    %3 = vector.load %arg12[%c0_2, %c0_3] : memref<10x64xf32, #tpu.memory_space<vmem>>, vector<10x64xf32>
    tpu.vector_store %arg12[%c0_2, %c0_3], %2 {strides = array<i32>} : memref<10x64xf32, #tpu.memory_space<vmem>>, vector<10x64xf32>,
    %c0_4 = arith.constant 0 : index
    %c0_5 = arith.constant 0 : index
    %c0_6 = arith.constant 0 : index
    %4 = vector.load %arg1[%c0_4, %c0_5, %c0_6] : memref<1x16x16xf32, #tpu.memory_space<vmem>>, vector<1x16x16xf32>
    %5 = vector.shape_cast %4 : vector<1x16x16xf32> to vector<16x16xf32>
    %c1 = arith.constant 1 : index
    %c0_7 = arith.constant 0 : index
    %6 = vector.load %arg11[%c1, %c0_7] : memref<18x16xf32, #tpu.memory_space<vmem>>, vector<16x16xf32>
    tpu.vector_store %arg11[%c1, %c0_7], %5 {strides = array<i32>} : memref<18x16xf32, #tpu.memory_space<vmem>>, vector<16x16xf32>,
    %c1_8 = arith.constant 1 : index
    %c0_9 = arith.constant 0 : index
    %7 = tpu.strided_load %arg11[%c1_8, %c0_9] {strides = array<i32: 2, 1>} : memref<18x16xf32, #tpu.memory_space<vmem>>, vector<8x16xf32>
    %8 = arith.truncf %7 : vector<8x16xf32> to vector<8x16xbf16>
    %c0_10 = arith.constant 0 : index
    %c0_11 = arith.constant 0 : index
    %9 = vector.load %arg4[%c0_10, %c0_11] : memref<16x64xbf16, #tpu.memory_space<vmem>>, vector<16x64xbf16>
    %cst_12 = arith.constant dense<0.000000e+00> : vector<8x64xf32>
    %10 = tpu.matmul %8, %9, %cst_12 {dimension_numbers = #tpu.dot_dimension_numbers<[1], [0], [0], [1], [0, 0, 1, 1], [], []>} : vector<8x16xbf16>, vector<16x64xbf16>, vector<8x64xf32> -> vector<8x64xf32>
    %c0_13 = arith.constant 0 : index
    %c0_14 = arith.constant 0 : index
    %11 = vector.load %arg5[%c0_13, %c0_14] : memref<1x64xf32, #tpu.memory_space<vmem>>, vector<1x64xf32>
    %12 = vector.broadcast %11 : vector<1x64xf32> to vector<8x64xf32>
    %13 = arith.addf %10, %12 : vector<8x64xf32>
    %c0_15 = arith.constant 0 : index
    %c0_16 = arith.constant 0 : index
    %14 = vector.load %arg2[%c0_15, %c0_16] : memref<1x16xf32, #tpu.memory_space<vmem>>, vector<1x16xf32>
    %15 = vector.broadcast %14 : vector<1x16xf32> to vector<16x16xf32>
    %16 = arith.mulf %5, %15 : vector<16x16xf32>
    %c0_17 = arith.constant 0 : index
    %c0_18 = arith.constant 0 : index
    %17 = vector.load %arg3[%c0_17, %c0_18] : memref<1x16xf32, #tpu.memory_space<vmem>>, vector<1x16xf32>
    %18 = vector.broadcast %17 : vector<1x16xf32> to vector<16x16xf32>
    %19 = arith.addf %16, %18 : vector<16x16xf32>
    %cst_19 = arith.constant 0.000000e+00 : f32
    %20 = vector.broadcast %cst_19 : f32 to vector<16x16xf32>
    %21 = arith.cmpf oge, %19, %20 : vector<16x16xf32>
    %cst_20 = arith.constant 0.00999999977 : f32
    %22 = vector.broadcast %cst_20 : f32 to vector<16x16xf32>
    %23 = arith.mulf %22, %19 : vector<16x16xf32>
    %24 = arith.select %21, %19, %23 : vector<16x16xi1>, vector<16x16xf32>
    %c1_21 = arith.constant 1 : index
    %c0_22 = arith.constant 0 : index
    %25 = vector.load %arg11[%c1_21, %c0_22] : memref<18x16xf32, #tpu.memory_space<vmem>>, vector<16x16xf32>
    tpu.vector_store %arg11[%c1_21, %c0_22], %24 {strides = array<i32>} : memref<18x16xf32, #tpu.memory_space<vmem>>, vector<16x16xf32>,
    %cst_23 = arith.constant 0.000000e+00 : f32
    %26 = vector.broadcast %cst_23 : f32 to vector<8x64xf32>
    %c0_24 = arith.constant 0 : index
    %c0_25 = arith.constant 0 : index
    %27 = tpu.strided_load %arg11[%c0_24, %c0_25] {strides = array<i32: 2, 1>} : memref<18x16xf32, #tpu.memory_space<vmem>>, vector<8x16xf32>
    %28 = arith.truncf %27 : vector<8x16xf32> to vector<8x16xbf16>
    %c0_26 = arith.constant 0 : index
    %c0_27 = arith.constant 0 : index
    %c0_28 = arith.constant 0 : index
    %29 = vector.load %arg6[%c0_26, %c0_27, %c0_28] : memref<3x16x64xbf16, #tpu.memory_space<vmem>>, vector<1x16x64xbf16>
    %30 = vector.shape_cast %29 : vector<1x16x64xbf16> to vector<16x64xbf16>
    %cst_29 = arith.constant dense<0.000000e+00> : vector<8x64xf32>
    %31 = tpu.matmul %28, %30, %cst_29 {dimension_numbers = #tpu.dot_dimension_numbers<[1], [0], [0], [1], [0, 0, 1, 1], [], []>} : vector<8x16xbf16>, vector<16x64xbf16>, vector<8x64xf32> -> vector<8x64xf32>
    %32 = arith.addf %26, %31 : vector<8x64xf32>
    %c1_30 = arith.constant 1 : index
    %c0_31 = arith.constant 0 : index
    %33 = tpu.strided_load %arg11[%c1_30, %c0_31] {strides = array<i32: 2, 1>} : memref<18x16xf32, #tpu.memory_space<vmem>>, vector<8x16xf32>
    %34 = arith.truncf %33 : vector<8x16xf32> to vector<8x16xbf16>
    %c1_32 = arith.constant 1 : index
    %c0_33 = arith.constant 0 : index
    %c0_34 = arith.constant 0 : index
    %35 = vector.load %arg6[%c1_32, %c0_33, %c0_34] : memref<3x16x64xbf16, #tpu.memory_space<vmem>>, vector<1x16x64xbf16>
    %36 = vector.shape_cast %35 : vector<1x16x64xbf16> to vector<16x64xbf16>
    %cst_35 = arith.constant dense<0.000000e+00> : vector<8x64xf32>
    %37 = tpu.matmul %34, %36, %cst_35 {dimension_numbers = #tpu.dot_dimension_numbers<[1], [0], [0], [1], [0, 0, 1, 1], [], []>} : vector<8x16xbf16>, vector<16x64xbf16>, vector<8x64xf32> -> vector<8x64xf32>
    %38 = arith.addf %32, %37 : vector<8x64xf32>
    %c2 = arith.constant 2 : index
    %c0_36 = arith.constant 0 : index
    %39 = tpu.strided_load %arg11[%c2, %c0_36] {strides = array<i32: 2, 1>} : memref<18x16xf32, #tpu.memory_space<vmem>>, vector<8x16xf32>
    %40 = arith.truncf %39 : vector<8x16xf32> to vector<8x16xbf16>
    %c2_37 = arith.constant 2 : index
    %c0_38 = arith.constant 0 : index
    %c0_39 = arith.constant 0 : index
    %41 = vector.load %arg6[%c2_37, %c0_38, %c0_39] : memref<3x16x64xbf16, #tpu.memory_space<vmem>>, vector<1x16x64xbf16>
    %42 = vector.shape_cast %41 : vector<1x16x64xbf16> to vector<16x64xbf16>
    %cst_40 = arith.constant dense<0.000000e+00> : vector<8x64xf32>
    %43 = tpu.matmul %40, %42, %cst_40 {dimension_numbers = #tpu.dot_dimension_numbers<[1], [0], [0], [1], [0, 0, 1, 1], [], []>} : vector<8x16xbf16>, vector<16x64xbf16>, vector<8x64xf32> -> vector<8x64xf32>
    %44 = arith.addf %38, %43 : vector<8x64xf32>
    %c0_41 = arith.constant 0 : index
    %c0_42 = arith.constant 0 : index
    %45 = vector.load %arg7[%c0_41, %c0_42] : memref<1x64xf32, #tpu.memory_space<vmem>>, vector<1x64xf32>
    %46 = vector.broadcast %45 : vector<1x64xf32> to vector<8x64xf32>
    %47 = arith.addf %44, %46 : vector<8x64xf32>
    %cst_43 = arith.constant 0.000000e+00 : f32
    %48 = vector.broadcast %cst_43 : f32 to vector<8x64xf32>
    %49 = arith.cmpf oge, %47, %48 : vector<8x64xf32>
    %cst_44 = arith.constant 0.00999999977 : f32
    %50 = vector.broadcast %cst_44 : f32 to vector<8x64xf32>
    %51 = arith.mulf %50, %47 : vector<8x64xf32>
    %52 = arith.select %49, %47, %51 : vector<8x64xi1>, vector<8x64xf32>
    %c1_45 = arith.constant 1 : index
    %c0_46 = arith.constant 0 : index
    %53 = vector.load %arg12[%c1_45, %c0_46] : memref<10x64xf32, #tpu.memory_space<vmem>>, vector<8x64xf32>
    tpu.vector_store %arg12[%c1_45, %c0_46], %52 {strides = array<i32>} : memref<10x64xf32, #tpu.memory_space<vmem>>, vector<8x64xf32>,
    %cst_47 = arith.constant 0.000000e+00 : f32
    %54 = vector.broadcast %cst_47 : f32 to vector<8x64xf32>
    %c0_48 = arith.constant 0 : index
    %c0_49 = arith.constant 0 : index
    %55 = vector.load %arg12[%c0_48, %c0_49] : memref<10x64xf32, #tpu.memory_space<vmem>>, vector<8x64xf32>
    %56 = arith.truncf %55 : vector<8x64xf32> to vector<8x64xbf16>
    %c0_50 = arith.constant 0 : index
    %c0_51 = arith.constant 0 : index
    %c0_52 = arith.constant 0 : index
    %57 = vector.load %arg8[%c0_50, %c0_51, %c0_52] : memref<3x64x64xbf16, #tpu.memory_space<vmem>>, vector<1x64x64xbf16>
    %58 = vector.shape_cast %57 : vector<1x64x64xbf16> to vector<64x64xbf16>
    %cst_53 = arith.constant dense<0.000000e+00> : vector<8x64xf32>
    %59 = tpu.matmul %56, %58, %cst_53 {dimension_numbers = #tpu.dot_dimension_numbers<[1], [0], [0], [1], [0, 0, 1, 1], [], []>} : vector<8x64xbf16>, vector<64x64xbf16>, vector<8x64xf32> -> vector<8x64xf32>
    %60 = arith.addf %54, %59 : vector<8x64xf32>
    %c1_54 = arith.constant 1 : index
    %c0_55 = arith.constant 0 : index
    %61 = vector.load %arg12[%c1_54, %c0_55] : memref<10x64xf32, #tpu.memory_space<vmem>>, vector<8x64xf32>
    %62 = arith.truncf %61 : vector<8x64xf32> to vector<8x64xbf16>
    %c1_56 = arith.constant 1 : index
    %c0_57 = arith.constant 0 : index
    %c0_58 = arith.constant 0 : index
    %63 = vector.load %arg8[%c1_56, %c0_57, %c0_58] : memref<3x64x64xbf16, #tpu.memory_space<vmem>>, vector<1x64x64xbf16>
    %64 = vector.shape_cast %63 : vector<1x64x64xbf16> to vector<64x64xbf16>
    %cst_59 = arith.constant dense<0.000000e+00> : vector<8x64xf32>
    %65 = tpu.matmul %62, %64, %cst_59 {dimension_numbers = #tpu.dot_dimension_numbers<[1], [0], [0], [1], [0, 0, 1, 1], [], []>} : vector<8x64xbf16>, vector<64x64xbf16>, vector<8x64xf32> -> vector<8x64xf32>
    %66 = arith.addf %60, %65 : vector<8x64xf32>
    %c2_60 = arith.constant 2 : index
    %c0_61 = arith.constant 0 : index
    %67 = vector.load %arg12[%c2_60, %c0_61] : memref<10x64xf32, #tpu.memory_space<vmem>>, vector<8x64xf32>
    %68 = arith.truncf %67 : vector<8x64xf32> to vector<8x64xbf16>
    %c2_62 = arith.constant 2 : index
    %c0_63 = arith.constant 0 : index
    %c0_64 = arith.constant 0 : index
    %69 = vector.load %arg8[%c2_62, %c0_63, %c0_64] : memref<3x64x64xbf16, #tpu.memory_space<vmem>>, vector<1x64x64xbf16>
    %70 = vector.shape_cast %69 : vector<1x64x64xbf16> to vector<64x64xbf16>
    %cst_65 = arith.constant dense<0.000000e+00> : vector<8x64xf32>
    %71 = tpu.matmul %68, %70, %cst_65 {dimension_numbers = #tpu.dot_dimension_numbers<[1], [0], [0], [1], [0, 0, 1, 1], [], []>} : vector<8x64xbf16>, vector<64x64xbf16>, vector<8x64xf32> -> vector<8x64xf32>
    %72 = arith.addf %66, %71 : vector<8x64xf32>
    %c0_66 = arith.constant 0 : index
    %c0_67 = arith.constant 0 : index
    %73 = vector.load %arg9[%c0_66, %c0_67] : memref<1x64xf32, #tpu.memory_space<vmem>>, vector<1x64xf32>
    %74 = vector.broadcast %73 : vector<1x64xf32> to vector<8x64xf32>
    %75 = arith.addf %72, %74 : vector<8x64xf32>
    %76 = arith.addf %75, %13 : vector<8x64xf32>
    %cst_68 = arith.constant 0.000000e+00 : f32
    %77 = vector.broadcast %cst_68 : f32 to vector<8x64xf32>
    %78 = arith.cmpf oge, %76, %77 : vector<8x64xf32>
    %cst_69 = arith.constant 0.00999999977 : f32
    %79 = vector.broadcast %cst_69 : f32 to vector<8x64xf32>
    %80 = arith.mulf %79, %76 : vector<8x64xf32>
    %81 = arith.select %78, %76, %80 : vector<8x64xi1>, vector<8x64xf32>
    %82 = arith.truncf %81 : vector<8x64xf32> to vector<8x64xbf16>
    %c0_70 = arith.constant 0 : index
    %c0_71 = arith.constant 0 : index
    %c0_72 = arith.constant 0 : index
    %83 = vector.load %arg10[%c0_70, %c0_71, %c0_72] : memref<1x8x64xbf16, #tpu.memory_space<vmem>>, vector<1x8x64xbf16>
    %84 = vector.shape_cast %83 : vector<1x8x64xbf16> to vector<8x64xbf16>
    %85 = vector.shape_cast %82 : vector<8x64xbf16> to vector<1x8x64xbf16>
    tpu.vector_store %arg10[%c0_70, %c0_71, %c0_72], %85 {strides = array<i32>} : memref<1x8x64xbf16, #tpu.memory_space<vmem>>, vector<1x8x64xbf16>,
    return
  }
  func.func @transform_0(%arg0: i32) -> (i32, i32, i32) {
    %c0_i32 = arith.constant 0 : i32
    %c0_i32_0 = arith.constant 0 : i32
    %c0_i32_1 = arith.constant 0 : i32
    return %arg0, %c0_i32, %c0_i32_0 : i32, i32, i32
  }
  func.func @transform_1(%arg0: i32) -> (i32, i32) {
    %c0_i32 = arith.constant 0 : i32
    %c0_i32_0 = arith.constant 0 : i32
    %c0_i32_1 = arith.constant 0 : i32
    return %c0_i32, %c0_i32_0 : i32, i32
  }
  func.func @transform_2(%arg0: i32) -> (i32, i32) {
    %c0_i32 = arith.constant 0 : i32
    %c0_i32_0 = arith.constant 0 : i32
    %c0_i32_1 = arith.constant 0 : i32
    return %c0_i32, %c0_i32_0 : i32, i32
  }
  func.func @transform_3(%arg0: i32) -> (i32, i32) {
    %c0_i32 = arith.constant 0 : i32
    %c0_i32_0 = arith.constant 0 : i32
    %c0_i32_1 = arith.constant 0 : i32
    return %c0_i32, %c0_i32_0 : i32, i32
  }
  func.func @transform_4(%arg0: i32) -> (i32, i32) {
    %c0_i32 = arith.constant 0 : i32
    %c0_i32_0 = arith.constant 0 : i32
    %c0_i32_1 = arith.constant 0 : i32
    return %c0_i32, %c0_i32_0 : i32, i32
  }
  func.func @transform_5(%arg0: i32) -> (i32, i32, i32) {
    %c0_i32 = arith.constant 0 : i32
    %c0_i32_0 = arith.constant 0 : i32
    %c0_i32_1 = arith.constant 0 : i32
    %c0_i32_2 = arith.constant 0 : i32
    return %c0_i32, %c0_i32_0, %c0_i32_1 : i32, i32, i32
  }
  func.func @transform_6(%arg0: i32) -> (i32, i32) {
    %c0_i32 = arith.constant 0 : i32
    %c0_i32_0 = arith.constant 0 : i32
    %c0_i32_1 = arith.constant 0 : i32
    return %c0_i32, %c0_i32_0 : i32, i32
  }
  func.func @transform_7(%arg0: i32) -> (i32, i32, i32) {
    %c0_i32 = arith.constant 0 : i32
    %c0_i32_0 = arith.constant 0 : i32
    %c0_i32_1 = arith.constant 0 : i32
    %c0_i32_2 = arith.constant 0 : i32
    return %c0_i32, %c0_i32_0, %c0_i32_1 : i32, i32, i32
  }
  func.func @transform_8(%arg0: i32) -> (i32, i32) {
    %c0_i32 = arith.constant 0 : i32
    %c0_i32_0 = arith.constant 0 : i32
    %c0_i32_1 = arith.constant 0 : i32
    return %c0_i32, %c0_i32_0 : i32, i32
  }
  func.func @transform_9(%arg0: i32) -> (i32, i32, i32) {
    %c0_i32 = arith.constant 0 : i32
    %c0_i32_0 = arith.constant 0 : i32
    %c0_i32_1 = arith.constant 0 : i32
    return %arg0, %c0_i32, %c0_i32_0 : i32, i32, i32
  }
}

module attributes {stable_mosaic.version = 11 : i64} {
  func.func @kernel(%arg0: i32, %arg1: memref<1x8x64xbf16, #tpu.memory_space<vmem>>, %arg2: memref<1x64xf32, #tpu.memory_space<vmem>>, %arg3: memref<1x64xf32, #tpu.memory_space<vmem>>, %arg4: memref<64x64xbf16, #tpu.memory_space<vmem>>, %arg5: memref<1x64xf32, #tpu.memory_space<vmem>>, %arg6: memref<3x64x64xbf16, #tpu.memory_space<vmem>>, %arg7: memref<1x64xf32, #tpu.memory_space<vmem>>, %arg8: memref<3x64x64xbf16, #tpu.memory_space<vmem>>, %arg9: memref<1x64xf32, #tpu.memory_space<vmem>>, %arg10: memref<1x4x64xbf16, #tpu.memory_space<vmem>>, %arg11: memref<10x64xf32, #tpu.memory_space<vmem>>, %arg12: memref<6x64xf32, #tpu.memory_space<vmem>>) attributes {dimension_semantics = [#tpu.dimension_semantics<parallel>], iteration_bounds = array<i64: 2>, scalar_prefetch = 0 : i64, scratch_operands = 2 : i64, tpu.core_type = #tpu.core_type<tc>, window_params = [{transform_indices = @transform_0, window_bounds = array<i64: 1, 8, 64>}, {pipeline_mode = #tpu.pipeline_mode<synchronous>, transform_indices = @transform_1, window_bounds = array<i64: 1, 64>}, {pipeline_mode = #tpu.pipeline_mode<synchronous>, transform_indices = @transform_2, window_bounds = array<i64: 1, 64>}, {pipeline_mode = #tpu.pipeline_mode<synchronous>, transform_indices = @transform_3, window_bounds = array<i64: 64, 64>}, {pipeline_mode = #tpu.pipeline_mode<synchronous>, transform_indices = @transform_4, window_bounds = array<i64: 1, 64>}, {pipeline_mode = #tpu.pipeline_mode<synchronous>, transform_indices = @transform_5, window_bounds = array<i64: 3, 64, 64>}, {pipeline_mode = #tpu.pipeline_mode<synchronous>, transform_indices = @transform_6, window_bounds = array<i64: 1, 64>}, {pipeline_mode = #tpu.pipeline_mode<synchronous>, transform_indices = @transform_7, window_bounds = array<i64: 3, 64, 64>}, {pipeline_mode = #tpu.pipeline_mode<synchronous>, transform_indices = @transform_8, window_bounds = array<i64: 1, 64>}, {transform_indices = @transform_9, window_bounds = array<i64: 1, 4, 64>}]} {
    %cst = arith.constant 0.000000e+00 : f32
    %0 = vector.broadcast %cst : f32 to vector<10x64xf32>
    %c0 = arith.constant 0 : index
    %c0_0 = arith.constant 0 : index
    %1 = vector.load %arg11[%c0, %c0_0] : memref<10x64xf32, #tpu.memory_space<vmem>>, vector<10x64xf32>
    tpu.vector_store %arg11[%c0, %c0_0], %0 {strides = array<i32>} : memref<10x64xf32, #tpu.memory_space<vmem>>, vector<10x64xf32>,
    %cst_1 = arith.constant 0.000000e+00 : f32
    %2 = vector.broadcast %cst_1 : f32 to vector<6x64xf32>
    %c0_2 = arith.constant 0 : index
    %c0_3 = arith.constant 0 : index
    %3 = vector.load %arg12[%c0_2, %c0_3] : memref<6x64xf32, #tpu.memory_space<vmem>>, vector<6x64xf32>
    tpu.vector_store %arg12[%c0_2, %c0_3], %2 {strides = array<i32>} : memref<6x64xf32, #tpu.memory_space<vmem>>, vector<6x64xf32>,
    %c0_4 = arith.constant 0 : index
    %c0_5 = arith.constant 0 : index
    %c0_6 = arith.constant 0 : index
    %4 = vector.load %arg1[%c0_4, %c0_5, %c0_6] : memref<1x8x64xbf16, #tpu.memory_space<vmem>>, vector<1x8x64xbf16>
    %5 = vector.shape_cast %4 : vector<1x8x64xbf16> to vector<8x64xbf16>
    %6 = arith.extf %5 : vector<8x64xbf16> to vector<8x64xf32>
    %c1 = arith.constant 1 : index
    %c0_7 = arith.constant 0 : index
    %7 = vector.load %arg11[%c1, %c0_7] : memref<10x64xf32, #tpu.memory_space<vmem>>, vector<8x64xf32>
    tpu.vector_store %arg11[%c1, %c0_7], %6 {strides = array<i32>} : memref<10x64xf32, #tpu.memory_space<vmem>>, vector<8x64xf32>,
    %c1_8 = arith.constant 1 : index
    %c0_9 = arith.constant 0 : index
    %8 = tpu.strided_load %arg11[%c1_8, %c0_9] {strides = array<i32: 2, 1>} : memref<10x64xf32, #tpu.memory_space<vmem>>, vector<4x64xf32>
    %9 = arith.truncf %8 : vector<4x64xf32> to vector<4x64xbf16>
    %c0_10 = arith.constant 0 : index
    %c0_11 = arith.constant 0 : index
    %10 = vector.load %arg4[%c0_10, %c0_11] : memref<64x64xbf16, #tpu.memory_space<vmem>>, vector<64x64xbf16>
    %cst_12 = arith.constant dense<0.000000e+00> : vector<4x64xf32>
    %11 = tpu.matmul %9, %10, %cst_12 {dimension_numbers = #tpu.dot_dimension_numbers<[1], [0], [0], [1], [0, 0, 1, 1], [], []>} : vector<4x64xbf16>, vector<64x64xbf16>, vector<4x64xf32> -> vector<4x64xf32>
    %c0_13 = arith.constant 0 : index
    %c0_14 = arith.constant 0 : index
    %12 = vector.load %arg5[%c0_13, %c0_14] : memref<1x64xf32, #tpu.memory_space<vmem>>, vector<1x64xf32>
    %13 = vector.broadcast %12 : vector<1x64xf32> to vector<4x64xf32>
    %14 = arith.addf %11, %13 : vector<4x64xf32>
    %c0_15 = arith.constant 0 : index
    %c0_16 = arith.constant 0 : index
    %15 = vector.load %arg2[%c0_15, %c0_16] : memref<1x64xf32, #tpu.memory_space<vmem>>, vector<1x64xf32>
    %16 = vector.broadcast %15 : vector<1x64xf32> to vector<8x64xf32>
    %17 = arith.mulf %6, %16 : vector<8x64xf32>
    %c0_17 = arith.constant 0 : index
    %c0_18 = arith.constant 0 : index
    %18 = vector.load %arg3[%c0_17, %c0_18] : memref<1x64xf32, #tpu.memory_space<vmem>>, vector<1x64xf32>
    %19 = vector.broadcast %18 : vector<1x64xf32> to vector<8x64xf32>
    %20 = arith.addf %17, %19 : vector<8x64xf32>
    %cst_19 = arith.constant 0.000000e+00 : f32
    %21 = vector.broadcast %cst_19 : f32 to vector<8x64xf32>
    %22 = arith.cmpf oge, %20, %21 : vector<8x64xf32>
    %cst_20 = arith.constant 0.00999999977 : f32
    %23 = vector.broadcast %cst_20 : f32 to vector<8x64xf32>
    %24 = arith.mulf %23, %20 : vector<8x64xf32>
    %25 = arith.select %22, %20, %24 : vector<8x64xi1>, vector<8x64xf32>
    %c1_21 = arith.constant 1 : index
    %c0_22 = arith.constant 0 : index
    %26 = vector.load %arg11[%c1_21, %c0_22] : memref<10x64xf32, #tpu.memory_space<vmem>>, vector<8x64xf32>
    tpu.vector_store %arg11[%c1_21, %c0_22], %25 {strides = array<i32>} : memref<10x64xf32, #tpu.memory_space<vmem>>, vector<8x64xf32>,
    %cst_23 = arith.constant 0.000000e+00 : f32
    %27 = vector.broadcast %cst_23 : f32 to vector<4x64xf32>
    %c0_24 = arith.constant 0 : index
    %c0_25 = arith.constant 0 : index
    %28 = tpu.strided_load %arg11[%c0_24, %c0_25] {strides = array<i32: 2, 1>} : memref<10x64xf32, #tpu.memory_space<vmem>>, vector<4x64xf32>
    %29 = arith.truncf %28 : vector<4x64xf32> to vector<4x64xbf16>
    %c0_26 = arith.constant 0 : index
    %c0_27 = arith.constant 0 : index
    %c0_28 = arith.constant 0 : index
    %30 = vector.load %arg6[%c0_26, %c0_27, %c0_28] : memref<3x64x64xbf16, #tpu.memory_space<vmem>>, vector<1x64x64xbf16>
    %31 = vector.shape_cast %30 : vector<1x64x64xbf16> to vector<64x64xbf16>
    %cst_29 = arith.constant dense<0.000000e+00> : vector<4x64xf32>
    %32 = tpu.matmul %29, %31, %cst_29 {dimension_numbers = #tpu.dot_dimension_numbers<[1], [0], [0], [1], [0, 0, 1, 1], [], []>} : vector<4x64xbf16>, vector<64x64xbf16>, vector<4x64xf32> -> vector<4x64xf32>
    %33 = arith.addf %27, %32 : vector<4x64xf32>
    %c1_30 = arith.constant 1 : index
    %c0_31 = arith.constant 0 : index
    %34 = tpu.strided_load %arg11[%c1_30, %c0_31] {strides = array<i32: 2, 1>} : memref<10x64xf32, #tpu.memory_space<vmem>>, vector<4x64xf32>
    %35 = arith.truncf %34 : vector<4x64xf32> to vector<4x64xbf16>
    %c1_32 = arith.constant 1 : index
    %c0_33 = arith.constant 0 : index
    %c0_34 = arith.constant 0 : index
    %36 = vector.load %arg6[%c1_32, %c0_33, %c0_34] : memref<3x64x64xbf16, #tpu.memory_space<vmem>>, vector<1x64x64xbf16>
    %37 = vector.shape_cast %36 : vector<1x64x64xbf16> to vector<64x64xbf16>
    %cst_35 = arith.constant dense<0.000000e+00> : vector<4x64xf32>
    %38 = tpu.matmul %35, %37, %cst_35 {dimension_numbers = #tpu.dot_dimension_numbers<[1], [0], [0], [1], [0, 0, 1, 1], [], []>} : vector<4x64xbf16>, vector<64x64xbf16>, vector<4x64xf32> -> vector<4x64xf32>
    %39 = arith.addf %33, %38 : vector<4x64xf32>
    %c2 = arith.constant 2 : index
    %c0_36 = arith.constant 0 : index
    %40 = tpu.strided_load %arg11[%c2, %c0_36] {strides = array<i32: 2, 1>} : memref<10x64xf32, #tpu.memory_space<vmem>>, vector<4x64xf32>
    %41 = arith.truncf %40 : vector<4x64xf32> to vector<4x64xbf16>
    %c2_37 = arith.constant 2 : index
    %c0_38 = arith.constant 0 : index
    %c0_39 = arith.constant 0 : index
    %42 = vector.load %arg6[%c2_37, %c0_38, %c0_39] : memref<3x64x64xbf16, #tpu.memory_space<vmem>>, vector<1x64x64xbf16>
    %43 = vector.shape_cast %42 : vector<1x64x64xbf16> to vector<64x64xbf16>
    %cst_40 = arith.constant dense<0.000000e+00> : vector<4x64xf32>
    %44 = tpu.matmul %41, %43, %cst_40 {dimension_numbers = #tpu.dot_dimension_numbers<[1], [0], [0], [1], [0, 0, 1, 1], [], []>} : vector<4x64xbf16>, vector<64x64xbf16>, vector<4x64xf32> -> vector<4x64xf32>
    %45 = arith.addf %39, %44 : vector<4x64xf32>
    %c0_41 = arith.constant 0 : index
    %c0_42 = arith.constant 0 : index
    %46 = vector.load %arg7[%c0_41, %c0_42] : memref<1x64xf32, #tpu.memory_space<vmem>>, vector<1x64xf32>
    %47 = vector.broadcast %46 : vector<1x64xf32> to vector<4x64xf32>
    %48 = arith.addf %45, %47 : vector<4x64xf32>
    %cst_43 = arith.constant 0.000000e+00 : f32
    %49 = vector.broadcast %cst_43 : f32 to vector<4x64xf32>
    %50 = arith.cmpf oge, %48, %49 : vector<4x64xf32>
    %cst_44 = arith.constant 0.00999999977 : f32
    %51 = vector.broadcast %cst_44 : f32 to vector<4x64xf32>
    %52 = arith.mulf %51, %48 : vector<4x64xf32>
    %53 = arith.select %50, %48, %52 : vector<4x64xi1>, vector<4x64xf32>
    %c1_45 = arith.constant 1 : index
    %c0_46 = arith.constant 0 : index
    %54 = vector.load %arg12[%c1_45, %c0_46] : memref<6x64xf32, #tpu.memory_space<vmem>>, vector<4x64xf32>
    tpu.vector_store %arg12[%c1_45, %c0_46], %53 {strides = array<i32>} : memref<6x64xf32, #tpu.memory_space<vmem>>, vector<4x64xf32>,
    %cst_47 = arith.constant 0.000000e+00 : f32
    %55 = vector.broadcast %cst_47 : f32 to vector<4x64xf32>
    %c0_48 = arith.constant 0 : index
    %c0_49 = arith.constant 0 : index
    %56 = vector.load %arg12[%c0_48, %c0_49] : memref<6x64xf32, #tpu.memory_space<vmem>>, vector<4x64xf32>
    %57 = arith.truncf %56 : vector<4x64xf32> to vector<4x64xbf16>
    %c0_50 = arith.constant 0 : index
    %c0_51 = arith.constant 0 : index
    %c0_52 = arith.constant 0 : index
    %58 = vector.load %arg8[%c0_50, %c0_51, %c0_52] : memref<3x64x64xbf16, #tpu.memory_space<vmem>>, vector<1x64x64xbf16>
    %59 = vector.shape_cast %58 : vector<1x64x64xbf16> to vector<64x64xbf16>
    %cst_53 = arith.constant dense<0.000000e+00> : vector<4x64xf32>
    %60 = tpu.matmul %57, %59, %cst_53 {dimension_numbers = #tpu.dot_dimension_numbers<[1], [0], [0], [1], [0, 0, 1, 1], [], []>} : vector<4x64xbf16>, vector<64x64xbf16>, vector<4x64xf32> -> vector<4x64xf32>
    %61 = arith.addf %55, %60 : vector<4x64xf32>
    %c1_54 = arith.constant 1 : index
    %c0_55 = arith.constant 0 : index
    %62 = vector.load %arg12[%c1_54, %c0_55] : memref<6x64xf32, #tpu.memory_space<vmem>>, vector<4x64xf32>
    %63 = arith.truncf %62 : vector<4x64xf32> to vector<4x64xbf16>
    %c1_56 = arith.constant 1 : index
    %c0_57 = arith.constant 0 : index
    %c0_58 = arith.constant 0 : index
    %64 = vector.load %arg8[%c1_56, %c0_57, %c0_58] : memref<3x64x64xbf16, #tpu.memory_space<vmem>>, vector<1x64x64xbf16>
    %65 = vector.shape_cast %64 : vector<1x64x64xbf16> to vector<64x64xbf16>
    %cst_59 = arith.constant dense<0.000000e+00> : vector<4x64xf32>
    %66 = tpu.matmul %63, %65, %cst_59 {dimension_numbers = #tpu.dot_dimension_numbers<[1], [0], [0], [1], [0, 0, 1, 1], [], []>} : vector<4x64xbf16>, vector<64x64xbf16>, vector<4x64xf32> -> vector<4x64xf32>
    %67 = arith.addf %61, %66 : vector<4x64xf32>
    %c2_60 = arith.constant 2 : index
    %c0_61 = arith.constant 0 : index
    %68 = vector.load %arg12[%c2_60, %c0_61] : memref<6x64xf32, #tpu.memory_space<vmem>>, vector<4x64xf32>
    %69 = arith.truncf %68 : vector<4x64xf32> to vector<4x64xbf16>
    %c2_62 = arith.constant 2 : index
    %c0_63 = arith.constant 0 : index
    %c0_64 = arith.constant 0 : index
    %70 = vector.load %arg8[%c2_62, %c0_63, %c0_64] : memref<3x64x64xbf16, #tpu.memory_space<vmem>>, vector<1x64x64xbf16>
    %71 = vector.shape_cast %70 : vector<1x64x64xbf16> to vector<64x64xbf16>
    %cst_65 = arith.constant dense<0.000000e+00> : vector<4x64xf32>
    %72 = tpu.matmul %69, %71, %cst_65 {dimension_numbers = #tpu.dot_dimension_numbers<[1], [0], [0], [1], [0, 0, 1, 1], [], []>} : vector<4x64xbf16>, vector<64x64xbf16>, vector<4x64xf32> -> vector<4x64xf32>
    %73 = arith.addf %67, %72 : vector<4x64xf32>
    %c0_66 = arith.constant 0 : index
    %c0_67 = arith.constant 0 : index
    %74 = vector.load %arg9[%c0_66, %c0_67] : memref<1x64xf32, #tpu.memory_space<vmem>>, vector<1x64xf32>
    %75 = vector.broadcast %74 : vector<1x64xf32> to vector<4x64xf32>
    %76 = arith.addf %73, %75 : vector<4x64xf32>
    %77 = arith.addf %76, %14 : vector<4x64xf32>
    %cst_68 = arith.constant 0.000000e+00 : f32
    %78 = vector.broadcast %cst_68 : f32 to vector<4x64xf32>
    %79 = arith.cmpf oge, %77, %78 : vector<4x64xf32>
    %cst_69 = arith.constant 0.00999999977 : f32
    %80 = vector.broadcast %cst_69 : f32 to vector<4x64xf32>
    %81 = arith.mulf %80, %77 : vector<4x64xf32>
    %82 = arith.select %79, %77, %81 : vector<4x64xi1>, vector<4x64xf32>
    %83 = arith.truncf %82 : vector<4x64xf32> to vector<4x64xbf16>
    %c0_70 = arith.constant 0 : index
    %c0_71 = arith.constant 0 : index
    %c0_72 = arith.constant 0 : index
    %84 = vector.load %arg10[%c0_70, %c0_71, %c0_72] : memref<1x4x64xbf16, #tpu.memory_space<vmem>>, vector<1x4x64xbf16>
    %85 = vector.shape_cast %84 : vector<1x4x64xbf16> to vector<4x64xbf16>
    %86 = vector.shape_cast %83 : vector<4x64xbf16> to vector<1x4x64xbf16>
    tpu.vector_store %arg10[%c0_70, %c0_71, %c0_72], %86 {strides = array<i32>} : memref<1x4x64xbf16, #tpu.memory_space<vmem>>, vector<1x4x64xbf16>,
    return
  }
  func.func @transform_0(%arg0: i32) -> (i32, i32, i32) {
    %c0_i32 = arith.constant 0 : i32
    %c0_i32_0 = arith.constant 0 : i32
    %c0_i32_1 = arith.constant 0 : i32
    return %arg0, %c0_i32, %c0_i32_0 : i32, i32, i32
  }
  func.func @transform_1(%arg0: i32) -> (i32, i32) {
    %c0_i32 = arith.constant 0 : i32
    %c0_i32_0 = arith.constant 0 : i32
    %c0_i32_1 = arith.constant 0 : i32
    return %c0_i32, %c0_i32_0 : i32, i32
  }
  func.func @transform_2(%arg0: i32) -> (i32, i32) {
    %c0_i32 = arith.constant 0 : i32
    %c0_i32_0 = arith.constant 0 : i32
    %c0_i32_1 = arith.constant 0 : i32
    return %c0_i32, %c0_i32_0 : i32, i32
  }
  func.func @transform_3(%arg0: i32) -> (i32, i32) {
    %c0_i32 = arith.constant 0 : i32
    %c0_i32_0 = arith.constant 0 : i32
    %c0_i32_1 = arith.constant 0 : i32
    return %c0_i32, %c0_i32_0 : i32, i32
  }
  func.func @transform_4(%arg0: i32) -> (i32, i32) {
    %c0_i32 = arith.constant 0 : i32
    %c0_i32_0 = arith.constant 0 : i32
    %c0_i32_1 = arith.constant 0 : i32
    return %c0_i32, %c0_i32_0 : i32, i32
  }
  func.func @transform_5(%arg0: i32) -> (i32, i32, i32) {
    %c0_i32 = arith.constant 0 : i32
    %c0_i32_0 = arith.constant 0 : i32
    %c0_i32_1 = arith.constant 0 : i32
    %c0_i32_2 = arith.constant 0 : i32
    return %c0_i32, %c0_i32_0, %c0_i32_1 : i32, i32, i32
  }
  func.func @transform_6(%arg0: i32) -> (i32, i32) {
    %c0_i32 = arith.constant 0 : i32
    %c0_i32_0 = arith.constant 0 : i32
    %c0_i32_1 = arith.constant 0 : i32
    return %c0_i32, %c0_i32_0 : i32, i32
  }
  func.func @transform_7(%arg0: i32) -> (i32, i32, i32) {
    %c0_i32 = arith.constant 0 : i32
    %c0_i32_0 = arith.constant 0 : i32
    %c0_i32_1 = arith.constant 0 : i32
    %c0_i32_2 = arith.constant 0 : i32
    return %c0_i32, %c0_i32_0, %c0_i32_1 : i32, i32, i32
  }
  func.func @transform_8(%arg0: i32) -> (i32, i32) {
    %c0_i32 = arith.constant 0 : i32
    %c0_i32_0 = arith.constant 0 : i32
    %c0_i32_1 = arith.constant 0 : i32
    return %c0_i32, %c0_i32_0 : i32, i32
  }
  func.func @transform_9(%arg0: i32) -> (i32, i32, i32) {
    %c0_i32 = arith.constant 0 : i32
    %c0_i32_0 = arith.constant 0 : i32
    %c0_i32_1 = arith.constant 0 : i32
    return %arg0, %c0_i32, %c0_i32_0 : i32, i32, i32
  }
}

module attributes {stable_mosaic.version = 11 : i64} {
  func.func @kernel(%arg0: i32, %arg1: memref<1x8x64xbf16, #tpu.memory_space<vmem>>, %arg2: memref<1x64xf32, #tpu.memory_space<vmem>>, %arg3: memref<1x64xf32, #tpu.memory_space<vmem>>, %arg4: memref<64x64xbf16, #tpu.memory_space<vmem>>, %arg5: memref<1x64xf32, #tpu.memory_space<vmem>>, %arg6: memref<3x64x64xbf16, #tpu.memory_space<vmem>>, %arg7: memref<1x64xf32, #tpu.memory_space<vmem>>, %arg8: memref<3x64x64xbf16, #tpu.memory_space<vmem>>, %arg9: memref<1x64xf32, #tpu.memory_space<vmem>>, %arg10: memref<1x8x64xbf16, #tpu.memory_space<vmem>>, %arg11: memref<10x64xf32, #tpu.memory_space<vmem>>, %arg12: memref<10x64xf32, #tpu.memory_space<vmem>>) attributes {dimension_semantics = [#tpu.dimension_semantics<parallel>], iteration_bounds = array<i64: 2>, scalar_prefetch = 0 : i64, scratch_operands = 2 : i64, tpu.core_type = #tpu.core_type<tc>, window_params = [{transform_indices = @transform_0, window_bounds = array<i64: 1, 8, 64>}, {pipeline_mode = #tpu.pipeline_mode<synchronous>, transform_indices = @transform_1, window_bounds = array<i64: 1, 64>}, {pipeline_mode = #tpu.pipeline_mode<synchronous>, transform_indices = @transform_2, window_bounds = array<i64: 1, 64>}, {pipeline_mode = #tpu.pipeline_mode<synchronous>, transform_indices = @transform_3, window_bounds = array<i64: 64, 64>}, {pipeline_mode = #tpu.pipeline_mode<synchronous>, transform_indices = @transform_4, window_bounds = array<i64: 1, 64>}, {pipeline_mode = #tpu.pipeline_mode<synchronous>, transform_indices = @transform_5, window_bounds = array<i64: 3, 64, 64>}, {pipeline_mode = #tpu.pipeline_mode<synchronous>, transform_indices = @transform_6, window_bounds = array<i64: 1, 64>}, {pipeline_mode = #tpu.pipeline_mode<synchronous>, transform_indices = @transform_7, window_bounds = array<i64: 3, 64, 64>}, {pipeline_mode = #tpu.pipeline_mode<synchronous>, transform_indices = @transform_8, window_bounds = array<i64: 1, 64>}, {transform_indices = @transform_9, window_bounds = array<i64: 1, 8, 64>}]} {
    %cst = arith.constant 0.000000e+00 : f32
    %0 = vector.broadcast %cst : f32 to vector<10x64xf32>
    %c0 = arith.constant 0 : index
    %c0_0 = arith.constant 0 : index
    %1 = vector.load %arg11[%c0, %c0_0] : memref<10x64xf32, #tpu.memory_space<vmem>>, vector<10x64xf32>
    tpu.vector_store %arg11[%c0, %c0_0], %0 {strides = array<i32>} : memref<10x64xf32, #tpu.memory_space<vmem>>, vector<10x64xf32>,
    %cst_1 = arith.constant 0.000000e+00 : f32
    %2 = vector.broadcast %cst_1 : f32 to vector<10x64xf32>
    %c0_2 = arith.constant 0 : index
    %c0_3 = arith.constant 0 : index
    %3 = vector.load %arg12[%c0_2, %c0_3] : memref<10x64xf32, #tpu.memory_space<vmem>>, vector<10x64xf32>
    tpu.vector_store %arg12[%c0_2, %c0_3], %2 {strides = array<i32>} : memref<10x64xf32, #tpu.memory_space<vmem>>, vector<10x64xf32>,
    %c0_4 = arith.constant 0 : index
    %c0_5 = arith.constant 0 : index
    %c0_6 = arith.constant 0 : index
    %4 = vector.load %arg1[%c0_4, %c0_5, %c0_6] : memref<1x8x64xbf16, #tpu.memory_space<vmem>>, vector<1x8x64xbf16>
    %5 = vector.shape_cast %4 : vector<1x8x64xbf16> to vector<8x64xbf16>
    %6 = arith.extf %5 : vector<8x64xbf16> to vector<8x64xf32>
    %c1 = arith.constant 1 : index
    %c0_7 = arith.constant 0 : index
    %7 = vector.load %arg11[%c1, %c0_7] : memref<10x64xf32, #tpu.memory_space<vmem>>, vector<8x64xf32>
    tpu.vector_store %arg11[%c1, %c0_7], %6 {strides = array<i32>} : memref<10x64xf32, #tpu.memory_space<vmem>>, vector<8x64xf32>,
    %c1_8 = arith.constant 1 : index
    %c0_9 = arith.constant 0 : index
    %8 = vector.load %arg11[%c1_8, %c0_9] : memref<10x64xf32, #tpu.memory_space<vmem>>, vector<8x64xf32>
    %9 = arith.truncf %8 : vector<8x64xf32> to vector<8x64xbf16>
    %c0_10 = arith.constant 0 : index
    %c0_11 = arith.constant 0 : index
    %10 = vector.load %arg4[%c0_10, %c0_11] : memref<64x64xbf16, #tpu.memory_space<vmem>>, vector<64x64xbf16>
    %cst_12 = arith.constant dense<0.000000e+00> : vector<8x64xf32>
    %11 = tpu.matmul %9, %10, %cst_12 {dimension_numbers = #tpu.dot_dimension_numbers<[1], [0], [0], [1], [0, 0, 1, 1], [], []>} : vector<8x64xbf16>, vector<64x64xbf16>, vector<8x64xf32> -> vector<8x64xf32>
    %c0_13 = arith.constant 0 : index
    %c0_14 = arith.constant 0 : index
    %12 = vector.load %arg5[%c0_13, %c0_14] : memref<1x64xf32, #tpu.memory_space<vmem>>, vector<1x64xf32>
    %13 = vector.broadcast %12 : vector<1x64xf32> to vector<8x64xf32>
    %14 = arith.addf %11, %13 : vector<8x64xf32>
    %c0_15 = arith.constant 0 : index
    %c0_16 = arith.constant 0 : index
    %15 = vector.load %arg2[%c0_15, %c0_16] : memref<1x64xf32, #tpu.memory_space<vmem>>, vector<1x64xf32>
    %16 = vector.broadcast %15 : vector<1x64xf32> to vector<8x64xf32>
    %17 = arith.mulf %6, %16 : vector<8x64xf32>
    %c0_17 = arith.constant 0 : index
    %c0_18 = arith.constant 0 : index
    %18 = vector.load %arg3[%c0_17, %c0_18] : memref<1x64xf32, #tpu.memory_space<vmem>>, vector<1x64xf32>
    %19 = vector.broadcast %18 : vector<1x64xf32> to vector<8x64xf32>
    %20 = arith.addf %17, %19 : vector<8x64xf32>
    %cst_19 = arith.constant 0.000000e+00 : f32
    %21 = vector.broadcast %cst_19 : f32 to vector<8x64xf32>
    %22 = arith.cmpf oge, %20, %21 : vector<8x64xf32>
    %cst_20 = arith.constant 0.00999999977 : f32
    %23 = vector.broadcast %cst_20 : f32 to vector<8x64xf32>
    %24 = arith.mulf %23, %20 : vector<8x64xf32>
    %25 = arith.select %22, %20, %24 : vector<8x64xi1>, vector<8x64xf32>
    %c1_21 = arith.constant 1 : index
    %c0_22 = arith.constant 0 : index
    %26 = vector.load %arg11[%c1_21, %c0_22] : memref<10x64xf32, #tpu.memory_space<vmem>>, vector<8x64xf32>
    tpu.vector_store %arg11[%c1_21, %c0_22], %25 {strides = array<i32>} : memref<10x64xf32, #tpu.memory_space<vmem>>, vector<8x64xf32>,
    %cst_23 = arith.constant 0.000000e+00 : f32
    %27 = vector.broadcast %cst_23 : f32 to vector<8x64xf32>
    %c0_24 = arith.constant 0 : index
    %c0_25 = arith.constant 0 : index
    %28 = vector.load %arg11[%c0_24, %c0_25] : memref<10x64xf32, #tpu.memory_space<vmem>>, vector<8x64xf32>
    %29 = arith.truncf %28 : vector<8x64xf32> to vector<8x64xbf16>
    %c0_26 = arith.constant 0 : index
    %c0_27 = arith.constant 0 : index
    %c0_28 = arith.constant 0 : index
    %30 = vector.load %arg6[%c0_26, %c0_27, %c0_28] : memref<3x64x64xbf16, #tpu.memory_space<vmem>>, vector<1x64x64xbf16>
    %31 = vector.shape_cast %30 : vector<1x64x64xbf16> to vector<64x64xbf16>
    %cst_29 = arith.constant dense<0.000000e+00> : vector<8x64xf32>
    %32 = tpu.matmul %29, %31, %cst_29 {dimension_numbers = #tpu.dot_dimension_numbers<[1], [0], [0], [1], [0, 0, 1, 1], [], []>} : vector<8x64xbf16>, vector<64x64xbf16>, vector<8x64xf32> -> vector<8x64xf32>
    %33 = arith.addf %27, %32 : vector<8x64xf32>
    %c1_30 = arith.constant 1 : index
    %c0_31 = arith.constant 0 : index
    %34 = vector.load %arg11[%c1_30, %c0_31] : memref<10x64xf32, #tpu.memory_space<vmem>>, vector<8x64xf32>
    %35 = arith.truncf %34 : vector<8x64xf32> to vector<8x64xbf16>
    %c1_32 = arith.constant 1 : index
    %c0_33 = arith.constant 0 : index
    %c0_34 = arith.constant 0 : index
    %36 = vector.load %arg6[%c1_32, %c0_33, %c0_34] : memref<3x64x64xbf16, #tpu.memory_space<vmem>>, vector<1x64x64xbf16>
    %37 = vector.shape_cast %36 : vector<1x64x64xbf16> to vector<64x64xbf16>
    %cst_35 = arith.constant dense<0.000000e+00> : vector<8x64xf32>
    %38 = tpu.matmul %35, %37, %cst_35 {dimension_numbers = #tpu.dot_dimension_numbers<[1], [0], [0], [1], [0, 0, 1, 1], [], []>} : vector<8x64xbf16>, vector<64x64xbf16>, vector<8x64xf32> -> vector<8x64xf32>
    %39 = arith.addf %33, %38 : vector<8x64xf32>
    %c2 = arith.constant 2 : index
    %c0_36 = arith.constant 0 : index
    %40 = vector.load %arg11[%c2, %c0_36] : memref<10x64xf32, #tpu.memory_space<vmem>>, vector<8x64xf32>
    %41 = arith.truncf %40 : vector<8x64xf32> to vector<8x64xbf16>
    %c2_37 = arith.constant 2 : index
    %c0_38 = arith.constant 0 : index
    %c0_39 = arith.constant 0 : index
    %42 = vector.load %arg6[%c2_37, %c0_38, %c0_39] : memref<3x64x64xbf16, #tpu.memory_space<vmem>>, vector<1x64x64xbf16>
    %43 = vector.shape_cast %42 : vector<1x64x64xbf16> to vector<64x64xbf16>
    %cst_40 = arith.constant dense<0.000000e+00> : vector<8x64xf32>
    %44 = tpu.matmul %41, %43, %cst_40 {dimension_numbers = #tpu.dot_dimension_numbers<[1], [0], [0], [1], [0, 0, 1, 1], [], []>} : vector<8x64xbf16>, vector<64x64xbf16>, vector<8x64xf32> -> vector<8x64xf32>
    %45 = arith.addf %39, %44 : vector<8x64xf32>
    %c0_41 = arith.constant 0 : index
    %c0_42 = arith.constant 0 : index
    %46 = vector.load %arg7[%c0_41, %c0_42] : memref<1x64xf32, #tpu.memory_space<vmem>>, vector<1x64xf32>
    %47 = vector.broadcast %46 : vector<1x64xf32> to vector<8x64xf32>
    %48 = arith.addf %45, %47 : vector<8x64xf32>
    %cst_43 = arith.constant 0.000000e+00 : f32
    %49 = vector.broadcast %cst_43 : f32 to vector<8x64xf32>
    %50 = arith.cmpf oge, %48, %49 : vector<8x64xf32>
    %cst_44 = arith.constant 0.00999999977 : f32
    %51 = vector.broadcast %cst_44 : f32 to vector<8x64xf32>
    %52 = arith.mulf %51, %48 : vector<8x64xf32>
    %53 = arith.select %50, %48, %52 : vector<8x64xi1>, vector<8x64xf32>
    %c1_45 = arith.constant 1 : index
    %c0_46 = arith.constant 0 : index
    %54 = vector.load %arg12[%c1_45, %c0_46] : memref<10x64xf32, #tpu.memory_space<vmem>>, vector<8x64xf32>
    tpu.vector_store %arg12[%c1_45, %c0_46], %53 {strides = array<i32>} : memref<10x64xf32, #tpu.memory_space<vmem>>, vector<8x64xf32>,
    %cst_47 = arith.constant 0.000000e+00 : f32
    %55 = vector.broadcast %cst_47 : f32 to vector<8x64xf32>
    %c0_48 = arith.constant 0 : index
    %c0_49 = arith.constant 0 : index
    %56 = vector.load %arg12[%c0_48, %c0_49] : memref<10x64xf32, #tpu.memory_space<vmem>>, vector<8x64xf32>
    %57 = arith.truncf %56 : vector<8x64xf32> to vector<8x64xbf16>
    %c0_50 = arith.constant 0 : index
    %c0_51 = arith.constant 0 : index
    %c0_52 = arith.constant 0 : index
    %58 = vector.load %arg8[%c0_50, %c0_51, %c0_52] : memref<3x64x64xbf16, #tpu.memory_space<vmem>>, vector<1x64x64xbf16>
    %59 = vector.shape_cast %58 : vector<1x64x64xbf16> to vector<64x64xbf16>
    %cst_53 = arith.constant dense<0.000000e+00> : vector<8x64xf32>
    %60 = tpu.matmul %57, %59, %cst_53 {dimension_numbers = #tpu.dot_dimension_numbers<[1], [0], [0], [1], [0, 0, 1, 1], [], []>} : vector<8x64xbf16>, vector<64x64xbf16>, vector<8x64xf32> -> vector<8x64xf32>
    %61 = arith.addf %55, %60 : vector<8x64xf32>
    %c1_54 = arith.constant 1 : index
    %c0_55 = arith.constant 0 : index
    %62 = vector.load %arg12[%c1_54, %c0_55] : memref<10x64xf32, #tpu.memory_space<vmem>>, vector<8x64xf32>
    %63 = arith.truncf %62 : vector<8x64xf32> to vector<8x64xbf16>
    %c1_56 = arith.constant 1 : index
    %c0_57 = arith.constant 0 : index
    %c0_58 = arith.constant 0 : index
    %64 = vector.load %arg8[%c1_56, %c0_57, %c0_58] : memref<3x64x64xbf16, #tpu.memory_space<vmem>>, vector<1x64x64xbf16>
    %65 = vector.shape_cast %64 : vector<1x64x64xbf16> to vector<64x64xbf16>
    %cst_59 = arith.constant dense<0.000000e+00> : vector<8x64xf32>
    %66 = tpu.matmul %63, %65, %cst_59 {dimension_numbers = #tpu.dot_dimension_numbers<[1], [0], [0], [1], [0, 0, 1, 1], [], []>} : vector<8x64xbf16>, vector<64x64xbf16>, vector<8x64xf32> -> vector<8x64xf32>
    %67 = arith.addf %61, %66 : vector<8x64xf32>
    %c2_60 = arith.constant 2 : index
    %c0_61 = arith.constant 0 : index
    %68 = vector.load %arg12[%c2_60, %c0_61] : memref<10x64xf32, #tpu.memory_space<vmem>>, vector<8x64xf32>
    %69 = arith.truncf %68 : vector<8x64xf32> to vector<8x64xbf16>
    %c2_62 = arith.constant 2 : index
    %c0_63 = arith.constant 0 : index
    %c0_64 = arith.constant 0 : index
    %70 = vector.load %arg8[%c2_62, %c0_63, %c0_64] : memref<3x64x64xbf16, #tpu.memory_space<vmem>>, vector<1x64x64xbf16>
    %71 = vector.shape_cast %70 : vector<1x64x64xbf16> to vector<64x64xbf16>
    %cst_65 = arith.constant dense<0.000000e+00> : vector<8x64xf32>
    %72 = tpu.matmul %69, %71, %cst_65 {dimension_numbers = #tpu.dot_dimension_numbers<[1], [0], [0], [1], [0, 0, 1, 1], [], []>} : vector<8x64xbf16>, vector<64x64xbf16>, vector<8x64xf32> -> vector<8x64xf32>
    %73 = arith.addf %67, %72 : vector<8x64xf32>
    %c0_66 = arith.constant 0 : index
    %c0_67 = arith.constant 0 : index
    %74 = vector.load %arg9[%c0_66, %c0_67] : memref<1x64xf32, #tpu.memory_space<vmem>>, vector<1x64xf32>
    %75 = vector.broadcast %74 : vector<1x64xf32> to vector<8x64xf32>
    %76 = arith.addf %73, %75 : vector<8x64xf32>
    %77 = arith.addf %76, %14 : vector<8x64xf32>
    %cst_68 = arith.constant 0.000000e+00 : f32
    %78 = vector.broadcast %cst_68 : f32 to vector<8x64xf32>
    %79 = arith.cmpf oge, %77, %78 : vector<8x64xf32>
    %cst_69 = arith.constant 0.00999999977 : f32
    %80 = vector.broadcast %cst_69 : f32 to vector<8x64xf32>
    %81 = arith.mulf %80, %77 : vector<8x64xf32>
    %82 = arith.select %79, %77, %81 : vector<8x64xi1>, vector<8x64xf32>
    %83 = arith.truncf %82 : vector<8x64xf32> to vector<8x64xbf16>
    %c0_70 = arith.constant 0 : index
    %c0_71 = arith.constant 0 : index
    %c0_72 = arith.constant 0 : index
    %84 = vector.load %arg10[%c0_70, %c0_71, %c0_72] : memref<1x8x64xbf16, #tpu.memory_space<vmem>>, vector<1x8x64xbf16>
    %85 = vector.shape_cast %84 : vector<1x8x64xbf16> to vector<8x64xbf16>
    %86 = vector.shape_cast %83 : vector<8x64xbf16> to vector<1x8x64xbf16>
    tpu.vector_store %arg10[%c0_70, %c0_71, %c0_72], %86 {strides = array<i32>} : memref<1x8x64xbf16, #tpu.memory_space<vmem>>, vector<1x8x64xbf16>,
    return
  }
  func.func @transform_0(%arg0: i32) -> (i32, i32, i32) {
    %c0_i32 = arith.constant 0 : i32
    %c0_i32_0 = arith.constant 0 : i32
    %c0_i32_1 = arith.constant 0 : i32
    return %arg0, %c0_i32, %c0_i32_0 : i32, i32, i32
  }
  func.func @transform_1(%arg0: i32) -> (i32, i32) {
    %c0_i32 = arith.constant 0 : i32
    %c0_i32_0 = arith.constant 0 : i32
    %c0_i32_1 = arith.constant 0 : i32
    return %c0_i32, %c0_i32_0 : i32, i32
  }
  func.func @transform_2(%arg0: i32) -> (i32, i32) {
    %c0_i32 = arith.constant 0 : i32
    %c0_i32_0 = arith.constant 0 : i32
    %c0_i32_1 = arith.constant 0 : i32
    return %c0_i32, %c0_i32_0 : i32, i32
  }
  func.func @transform_3(%arg0: i32) -> (i32, i32) {
    %c0_i32 = arith.constant 0 : i32
    %c0_i32_0 = arith.constant 0 : i32
    %c0_i32_1 = arith.constant 0 : i32
    return %c0_i32, %c0_i32_0 : i32, i32
  }
  func.func @transform_4(%arg0: i32) -> (i32, i32) {
    %c0_i32 = arith.constant 0 : i32
    %c0_i32_0 = arith.constant 0 : i32
    %c0_i32_1 = arith.constant 0 : i32
    return %c0_i32, %c0_i32_0 : i32, i32
  }
  func.func @transform_5(%arg0: i32) -> (i32, i32, i32) {
    %c0_i32 = arith.constant 0 : i32
    %c0_i32_0 = arith.constant 0 : i32
    %c0_i32_1 = arith.constant 0 : i32
    %c0_i32_2 = arith.constant 0 : i32
    return %c0_i32, %c0_i32_0, %c0_i32_1 : i32, i32, i32
  }
  func.func @transform_6(%arg0: i32) -> (i32, i32) {
    %c0_i32 = arith.constant 0 : i32
    %c0_i32_0 = arith.constant 0 : i32
    %c0_i32_1 = arith.constant 0 : i32
    return %c0_i32, %c0_i32_0 : i32, i32
  }
  func.func @transform_7(%arg0: i32) -> (i32, i32, i32) {
    %c0_i32 = arith.constant 0 : i32
    %c0_i32_0 = arith.constant 0 : i32
    %c0_i32_1 = arith.constant 0 : i32
    %c0_i32_2 = arith.constant 0 : i32
    return %c0_i32, %c0_i32_0, %c0_i32_1 : i32, i32, i32
  }
  func.func @transform_8(%arg0: i32) -> (i32, i32) {
    %c0_i32 = arith.constant 0 : i32
    %c0_i32_0 = arith.constant 0 : i32
    %c0_i32_1 = arith.constant 0 : i32
    return %c0_i32, %c0_i32_0 : i32, i32
  }
  func.func @transform_9(%arg0: i32) -> (i32, i32, i32) {
    %c0_i32 = arith.constant 0 : i32
    %c0_i32_0 = arith.constant 0 : i32
    %c0_i32_1 = arith.constant 0 : i32
    return %arg0, %c0_i32, %c0_i32_0 : i32, i32, i32
  }
}

module attributes {stable_mosaic.version = 11 : i64} {
  func.func @kernel(%arg0: i32, %arg1: memref<1x8x64xbf16, #tpu.memory_space<vmem>>, %arg2: memref<1x64xf32, #tpu.memory_space<vmem>>, %arg3: memref<1x64xf32, #tpu.memory_space<vmem>>, %arg4: memref<64x64xbf16, #tpu.memory_space<vmem>>, %arg5: memref<1x64xf32, #tpu.memory_space<vmem>>, %arg6: memref<3x64x64xbf16, #tpu.memory_space<vmem>>, %arg7: memref<1x64xf32, #tpu.memory_space<vmem>>, %arg8: memref<3x64x64xbf16, #tpu.memory_space<vmem>>, %arg9: memref<1x64xf32, #tpu.memory_space<vmem>>, %arg10: memref<1x8x64xbf16, #tpu.memory_space<vmem>>, %arg11: memref<10x64xf32, #tpu.memory_space<vmem>>, %arg12: memref<10x64xf32, #tpu.memory_space<vmem>>) attributes {dimension_semantics = [#tpu.dimension_semantics<parallel>], iteration_bounds = array<i64: 2>, scalar_prefetch = 0 : i64, scratch_operands = 2 : i64, tpu.core_type = #tpu.core_type<tc>, window_params = [{transform_indices = @transform_0, window_bounds = array<i64: 1, 8, 64>}, {pipeline_mode = #tpu.pipeline_mode<synchronous>, transform_indices = @transform_1, window_bounds = array<i64: 1, 64>}, {pipeline_mode = #tpu.pipeline_mode<synchronous>, transform_indices = @transform_2, window_bounds = array<i64: 1, 64>}, {pipeline_mode = #tpu.pipeline_mode<synchronous>, transform_indices = @transform_3, window_bounds = array<i64: 64, 64>}, {pipeline_mode = #tpu.pipeline_mode<synchronous>, transform_indices = @transform_4, window_bounds = array<i64: 1, 64>}, {pipeline_mode = #tpu.pipeline_mode<synchronous>, transform_indices = @transform_5, window_bounds = array<i64: 3, 64, 64>}, {pipeline_mode = #tpu.pipeline_mode<synchronous>, transform_indices = @transform_6, window_bounds = array<i64: 1, 64>}, {pipeline_mode = #tpu.pipeline_mode<synchronous>, transform_indices = @transform_7, window_bounds = array<i64: 3, 64, 64>}, {pipeline_mode = #tpu.pipeline_mode<synchronous>, transform_indices = @transform_8, window_bounds = array<i64: 1, 64>}, {transform_indices = @transform_9, window_bounds = array<i64: 1, 8, 64>}]} {
    %cst = arith.constant 0.000000e+00 : f32
    %0 = vector.broadcast %cst : f32 to vector<10x64xf32>
    %c0 = arith.constant 0 : index
    %c0_0 = arith.constant 0 : index
    %1 = vector.load %arg11[%c0, %c0_0] : memref<10x64xf32, #tpu.memory_space<vmem>>, vector<10x64xf32>
    tpu.vector_store %arg11[%c0, %c0_0], %0 {strides = array<i32>} : memref<10x64xf32, #tpu.memory_space<vmem>>, vector<10x64xf32>,
    %cst_1 = arith.constant 0.000000e+00 : f32
    %2 = vector.broadcast %cst_1 : f32 to vector<10x64xf32>
    %c0_2 = arith.constant 0 : index
    %c0_3 = arith.constant 0 : index
    %3 = vector.load %arg12[%c0_2, %c0_3] : memref<10x64xf32, #tpu.memory_space<vmem>>, vector<10x64xf32>
    tpu.vector_store %arg12[%c0_2, %c0_3], %2 {strides = array<i32>} : memref<10x64xf32, #tpu.memory_space<vmem>>, vector<10x64xf32>,
    %c0_4 = arith.constant 0 : index
    %c0_5 = arith.constant 0 : index
    %c0_6 = arith.constant 0 : index
    %4 = vector.load %arg1[%c0_4, %c0_5, %c0_6] : memref<1x8x64xbf16, #tpu.memory_space<vmem>>, vector<1x8x64xbf16>
    %5 = vector.shape_cast %4 : vector<1x8x64xbf16> to vector<8x64xbf16>
    %6 = arith.extf %5 : vector<8x64xbf16> to vector<8x64xf32>
    %c1 = arith.constant 1 : index
    %c0_7 = arith.constant 0 : index
    %7 = vector.load %arg11[%c1, %c0_7] : memref<10x64xf32, #tpu.memory_space<vmem>>, vector<8x64xf32>
    tpu.vector_store %arg11[%c1, %c0_7], %6 {strides = array<i32>} : memref<10x64xf32, #tpu.memory_space<vmem>>, vector<8x64xf32>,
    %c1_8 = arith.constant 1 : index
    %c0_9 = arith.constant 0 : index
    %8 = vector.load %arg11[%c1_8, %c0_9] : memref<10x64xf32, #tpu.memory_space<vmem>>, vector<8x64xf32>
    %9 = arith.truncf %8 : vector<8x64xf32> to vector<8x64xbf16>
    %c0_10 = arith.constant 0 : index
    %c0_11 = arith.constant 0 : index
    %10 = vector.load %arg4[%c0_10, %c0_11] : memref<64x64xbf16, #tpu.memory_space<vmem>>, vector<64x64xbf16>
    %cst_12 = arith.constant dense<0.000000e+00> : vector<8x64xf32>
    %11 = tpu.matmul %9, %10, %cst_12 {dimension_numbers = #tpu.dot_dimension_numbers<[1], [0], [0], [1], [0, 0, 1, 1], [], []>} : vector<8x64xbf16>, vector<64x64xbf16>, vector<8x64xf32> -> vector<8x64xf32>
    %c0_13 = arith.constant 0 : index
    %c0_14 = arith.constant 0 : index
    %12 = vector.load %arg5[%c0_13, %c0_14] : memref<1x64xf32, #tpu.memory_space<vmem>>, vector<1x64xf32>
    %13 = vector.broadcast %12 : vector<1x64xf32> to vector<8x64xf32>
    %14 = arith.addf %11, %13 : vector<8x64xf32>
    %c0_15 = arith.constant 0 : index
    %c0_16 = arith.constant 0 : index
    %15 = vector.load %arg2[%c0_15, %c0_16] : memref<1x64xf32, #tpu.memory_space<vmem>>, vector<1x64xf32>
    %16 = vector.broadcast %15 : vector<1x64xf32> to vector<8x64xf32>
    %17 = arith.mulf %6, %16 : vector<8x64xf32>
    %c0_17 = arith.constant 0 : index
    %c0_18 = arith.constant 0 : index
    %18 = vector.load %arg3[%c0_17, %c0_18] : memref<1x64xf32, #tpu.memory_space<vmem>>, vector<1x64xf32>
    %19 = vector.broadcast %18 : vector<1x64xf32> to vector<8x64xf32>
    %20 = arith.addf %17, %19 : vector<8x64xf32>
    %cst_19 = arith.constant 0.000000e+00 : f32
    %21 = vector.broadcast %cst_19 : f32 to vector<8x64xf32>
    %22 = arith.cmpf oge, %20, %21 : vector<8x64xf32>
    %cst_20 = arith.constant 0.00999999977 : f32
    %23 = vector.broadcast %cst_20 : f32 to vector<8x64xf32>
    %24 = arith.mulf %23, %20 : vector<8x64xf32>
    %25 = arith.select %22, %20, %24 : vector<8x64xi1>, vector<8x64xf32>
    %c1_21 = arith.constant 1 : index
    %c0_22 = arith.constant 0 : index
    %26 = vector.load %arg11[%c1_21, %c0_22] : memref<10x64xf32, #tpu.memory_space<vmem>>, vector<8x64xf32>
    tpu.vector_store %arg11[%c1_21, %c0_22], %25 {strides = array<i32>} : memref<10x64xf32, #tpu.memory_space<vmem>>, vector<8x64xf32>,
    %cst_23 = arith.constant 0.000000e+00 : f32
    %27 = vector.broadcast %cst_23 : f32 to vector<8x64xf32>
    %c0_24 = arith.constant 0 : index
    %c0_25 = arith.constant 0 : index
    %28 = vector.load %arg11[%c0_24, %c0_25] : memref<10x64xf32, #tpu.memory_space<vmem>>, vector<8x64xf32>
    %29 = arith.truncf %28 : vector<8x64xf32> to vector<8x64xbf16>
    %c0_26 = arith.constant 0 : index
    %c0_27 = arith.constant 0 : index
    %c0_28 = arith.constant 0 : index
    %30 = vector.load %arg6[%c0_26, %c0_27, %c0_28] : memref<3x64x64xbf16, #tpu.memory_space<vmem>>, vector<1x64x64xbf16>
    %31 = vector.shape_cast %30 : vector<1x64x64xbf16> to vector<64x64xbf16>
    %cst_29 = arith.constant dense<0.000000e+00> : vector<8x64xf32>
    %32 = tpu.matmul %29, %31, %cst_29 {dimension_numbers = #tpu.dot_dimension_numbers<[1], [0], [0], [1], [0, 0, 1, 1], [], []>} : vector<8x64xbf16>, vector<64x64xbf16>, vector<8x64xf32> -> vector<8x64xf32>
    %33 = arith.addf %27, %32 : vector<8x64xf32>
    %c1_30 = arith.constant 1 : index
    %c0_31 = arith.constant 0 : index
    %34 = vector.load %arg11[%c1_30, %c0_31] : memref<10x64xf32, #tpu.memory_space<vmem>>, vector<8x64xf32>
    %35 = arith.truncf %34 : vector<8x64xf32> to vector<8x64xbf16>
    %c1_32 = arith.constant 1 : index
    %c0_33 = arith.constant 0 : index
    %c0_34 = arith.constant 0 : index
    %36 = vector.load %arg6[%c1_32, %c0_33, %c0_34] : memref<3x64x64xbf16, #tpu.memory_space<vmem>>, vector<1x64x64xbf16>
    %37 = vector.shape_cast %36 : vector<1x64x64xbf16> to vector<64x64xbf16>
    %cst_35 = arith.constant dense<0.000000e+00> : vector<8x64xf32>
    %38 = tpu.matmul %35, %37, %cst_35 {dimension_numbers = #tpu.dot_dimension_numbers<[1], [0], [0], [1], [0, 0, 1, 1], [], []>} : vector<8x64xbf16>, vector<64x64xbf16>, vector<8x64xf32> -> vector<8x64xf32>
    %39 = arith.addf %33, %38 : vector<8x64xf32>
    %c2 = arith.constant 2 : index
    %c0_36 = arith.constant 0 : index
    %40 = vector.load %arg11[%c2, %c0_36] : memref<10x64xf32, #tpu.memory_space<vmem>>, vector<8x64xf32>
    %41 = arith.truncf %40 : vector<8x64xf32> to vector<8x64xbf16>
    %c2_37 = arith.constant 2 : index
    %c0_38 = arith.constant 0 : index
    %c0_39 = arith.constant 0 : index
    %42 = vector.load %arg6[%c2_37, %c0_38, %c0_39] : memref<3x64x64xbf16, #tpu.memory_space<vmem>>, vector<1x64x64xbf16>
    %43 = vector.shape_cast %42 : vector<1x64x64xbf16> to vector<64x64xbf16>
    %cst_40 = arith.constant dense<0.000000e+00> : vector<8x64xf32>
    %44 = tpu.matmul %41, %43, %cst_40 {dimension_numbers = #tpu.dot_dimension_numbers<[1], [0], [0], [1], [0, 0, 1, 1], [], []>} : vector<8x64xbf16>, vector<64x64xbf16>, vector<8x64xf32> -> vector<8x64xf32>
    %45 = arith.addf %39, %44 : vector<8x64xf32>
    %c0_41 = arith.constant 0 : index
    %c0_42 = arith.constant 0 : index
    %46 = vector.load %arg7[%c0_41, %c0_42] : memref<1x64xf32, #tpu.memory_space<vmem>>, vector<1x64xf32>
    %47 = vector.broadcast %46 : vector<1x64xf32> to vector<8x64xf32>
    %48 = arith.addf %45, %47 : vector<8x64xf32>
    %cst_43 = arith.constant 0.000000e+00 : f32
    %49 = vector.broadcast %cst_43 : f32 to vector<8x64xf32>
    %50 = arith.cmpf oge, %48, %49 : vector<8x64xf32>
    %cst_44 = arith.constant 0.00999999977 : f32
    %51 = vector.broadcast %cst_44 : f32 to vector<8x64xf32>
    %52 = arith.mulf %51, %48 : vector<8x64xf32>
    %53 = arith.select %50, %48, %52 : vector<8x64xi1>, vector<8x64xf32>
    %c1_45 = arith.constant 1 : index
    %c0_46 = arith.constant 0 : index
    %54 = vector.load %arg12[%c1_45, %c0_46] : memref<10x64xf32, #tpu.memory_space<vmem>>, vector<8x64xf32>
    tpu.vector_store %arg12[%c1_45, %c0_46], %53 {strides = array<i32>} : memref<10x64xf32, #tpu.memory_space<vmem>>, vector<8x64xf32>,
    %cst_47 = arith.constant 0.000000e+00 : f32
    %55 = vector.broadcast %cst_47 : f32 to vector<8x64xf32>
    %c0_48 = arith.constant 0 : index
    %c0_49 = arith.constant 0 : index
    %56 = vector.load %arg12[%c0_48, %c0_49] : memref<10x64xf32, #tpu.memory_space<vmem>>, vector<8x64xf32>
    %57 = arith.truncf %56 : vector<8x64xf32> to vector<8x64xbf16>
    %c0_50 = arith.constant 0 : index
    %c0_51 = arith.constant 0 : index
    %c0_52 = arith.constant 0 : index
    %58 = vector.load %arg8[%c0_50, %c0_51, %c0_52] : memref<3x64x64xbf16, #tpu.memory_space<vmem>>, vector<1x64x64xbf16>
    %59 = vector.shape_cast %58 : vector<1x64x64xbf16> to vector<64x64xbf16>
    %cst_53 = arith.constant dense<0.000000e+00> : vector<8x64xf32>
    %60 = tpu.matmul %57, %59, %cst_53 {dimension_numbers = #tpu.dot_dimension_numbers<[1], [0], [0], [1], [0, 0, 1, 1], [], []>} : vector<8x64xbf16>, vector<64x64xbf16>, vector<8x64xf32> -> vector<8x64xf32>
    %61 = arith.addf %55, %60 : vector<8x64xf32>
    %c1_54 = arith.constant 1 : index
    %c0_55 = arith.constant 0 : index
    %62 = vector.load %arg12[%c1_54, %c0_55] : memref<10x64xf32, #tpu.memory_space<vmem>>, vector<8x64xf32>
    %63 = arith.truncf %62 : vector<8x64xf32> to vector<8x64xbf16>
    %c1_56 = arith.constant 1 : index
    %c0_57 = arith.constant 0 : index
    %c0_58 = arith.constant 0 : index
    %64 = vector.load %arg8[%c1_56, %c0_57, %c0_58] : memref<3x64x64xbf16, #tpu.memory_space<vmem>>, vector<1x64x64xbf16>
    %65 = vector.shape_cast %64 : vector<1x64x64xbf16> to vector<64x64xbf16>
    %cst_59 = arith.constant dense<0.000000e+00> : vector<8x64xf32>
    %66 = tpu.matmul %63, %65, %cst_59 {dimension_numbers = #tpu.dot_dimension_numbers<[1], [0], [0], [1], [0, 0, 1, 1], [], []>} : vector<8x64xbf16>, vector<64x64xbf16>, vector<8x64xf32> -> vector<8x64xf32>
    %67 = arith.addf %61, %66 : vector<8x64xf32>
    %c2_60 = arith.constant 2 : index
    %c0_61 = arith.constant 0 : index
    %68 = vector.load %arg12[%c2_60, %c0_61] : memref<10x64xf32, #tpu.memory_space<vmem>>, vector<8x64xf32>
    %69 = arith.truncf %68 : vector<8x64xf32> to vector<8x64xbf16>
    %c2_62 = arith.constant 2 : index
    %c0_63 = arith.constant 0 : index
    %c0_64 = arith.constant 0 : index
    %70 = vector.load %arg8[%c2_62, %c0_63, %c0_64] : memref<3x64x64xbf16, #tpu.memory_space<vmem>>, vector<1x64x64xbf16>
    %71 = vector.shape_cast %70 : vector<1x64x64xbf16> to vector<64x64xbf16>
    %cst_65 = arith.constant dense<0.000000e+00> : vector<8x64xf32>
    %72 = tpu.matmul %69, %71, %cst_65 {dimension_numbers = #tpu.dot_dimension_numbers<[1], [0], [0], [1], [0, 0, 1, 1], [], []>} : vector<8x64xbf16>, vector<64x64xbf16>, vector<8x64xf32> -> vector<8x64xf32>
    %73 = arith.addf %67, %72 : vector<8x64xf32>
    %c0_66 = arith.constant 0 : index
    %c0_67 = arith.constant 0 : index
    %74 = vector.load %arg9[%c0_66, %c0_67] : memref<1x64xf32, #tpu.memory_space<vmem>>, vector<1x64xf32>
    %75 = vector.broadcast %74 : vector<1x64xf32> to vector<8x64xf32>
    %76 = arith.addf %73, %75 : vector<8x64xf32>
    %77 = arith.addf %76, %14 : vector<8x64xf32>
    %cst_68 = arith.constant 0.000000e+00 : f32
    %78 = vector.broadcast %cst_68 : f32 to vector<8x64xf32>
    %79 = arith.cmpf oge, %77, %78 : vector<8x64xf32>
    %cst_69 = arith.constant 0.00999999977 : f32
    %80 = vector.broadcast %cst_69 : f32 to vector<8x64xf32>
    %81 = arith.mulf %80, %77 : vector<8x64xf32>
    %82 = arith.select %79, %77, %81 : vector<8x64xi1>, vector<8x64xf32>
    %83 = arith.truncf %82 : vector<8x64xf32> to vector<8x64xbf16>
    %c0_70 = arith.constant 0 : index
    %c0_71 = arith.constant 0 : index
    %c0_72 = arith.constant 0 : index
    %84 = vector.load %arg10[%c0_70, %c0_71, %c0_72] : memref<1x8x64xbf16, #tpu.memory_space<vmem>>, vector<1x8x64xbf16>
    %85 = vector.shape_cast %84 : vector<1x8x64xbf16> to vector<8x64xbf16>
    %86 = vector.shape_cast %83 : vector<8x64xbf16> to vector<1x8x64xbf16>
    tpu.vector_store %arg10[%c0_70, %c0_71, %c0_72], %86 {strides = array<i32>} : memref<1x8x64xbf16, #tpu.memory_space<vmem>>, vector<1x8x64xbf16>,
    return
  }
  func.func @transform_0(%arg0: i32) -> (i32, i32, i32) {
    %c0_i32 = arith.constant 0 : i32
    %c0_i32_0 = arith.constant 0 : i32
    %c0_i32_1 = arith.constant 0 : i32
    return %arg0, %c0_i32, %c0_i32_0 : i32, i32, i32
  }
  func.func @transform_1(%arg0: i32) -> (i32, i32) {
    %c0_i32 = arith.constant 0 : i32
    %c0_i32_0 = arith.constant 0 : i32
    %c0_i32_1 = arith.constant 0 : i32
    return %c0_i32, %c0_i32_0 : i32, i32
  }
  func.func @transform_2(%arg0: i32) -> (i32, i32) {
    %c0_i32 = arith.constant 0 : i32
    %c0_i32_0 = arith.constant 0 : i32
    %c0_i32_1 = arith.constant 0 : i32
    return %c0_i32, %c0_i32_0 : i32, i32
  }
  func.func @transform_3(%arg0: i32) -> (i32, i32) {
    %c0_i32 = arith.constant 0 : i32
    %c0_i32_0 = arith.constant 0 : i32
    %c0_i32_1 = arith.constant 0 : i32
    return %c0_i32, %c0_i32_0 : i32, i32
  }
  func.func @transform_4(%arg0: i32) -> (i32, i32) {
    %c0_i32 = arith.constant 0 : i32
    %c0_i32_0 = arith.constant 0 : i32
    %c0_i32_1 = arith.constant 0 : i32
    return %c0_i32, %c0_i32_0 : i32, i32
  }
  func.func @transform_5(%arg0: i32) -> (i32, i32, i32) {
    %c0_i32 = arith.constant 0 : i32
    %c0_i32_0 = arith.constant 0 : i32
    %c0_i32_1 = arith.constant 0 : i32
    %c0_i32_2 = arith.constant 0 : i32
    return %c0_i32, %c0_i32_0, %c0_i32_1 : i32, i32, i32
  }
  func.func @transform_6(%arg0: i32) -> (i32, i32) {
    %c0_i32 = arith.constant 0 : i32
    %c0_i32_0 = arith.constant 0 : i32
    %c0_i32_1 = arith.constant 0 : i32
    return %c0_i32, %c0_i32_0 : i32, i32
  }
  func.func @transform_7(%arg0: i32) -> (i32, i32, i32) {
    %c0_i32 = arith.constant 0 : i32
    %c0_i32_0 = arith.constant 0 : i32
    %c0_i32_1 = arith.constant 0 : i32
    %c0_i32_2 = arith.constant 0 : i32
    return %c0_i32, %c0_i32_0, %c0_i32_1 : i32, i32, i32
  }
  func.func @transform_8(%arg0: i32) -> (i32, i32) {
    %c0_i32 = arith.constant 0 : i32
    %c0_i32_0 = arith.constant 0 : i32
    %c0_i32_1 = arith.constant 0 : i32
    return %c0_i32, %c0_i32_0 : i32, i32
  }
  func.func @transform_9(%arg0: i32) -> (i32, i32, i32) {
    %c0_i32 = arith.constant 0 : i32
    %c0_i32_0 = arith.constant 0 : i32
    %c0_i32_1 = arith.constant 0 : i32
    return %arg0, %c0_i32, %c0_i32_0 : i32, i32, i32
  }
}

module attributes {stable_mosaic.version = 11 : i64} {
  func.func @kernel(%arg0: i32, %arg1: memref<2x16xf32, #tpu.memory_space<vmem>>, %arg2: memref<16x16xf32, #tpu.memory_space<vmem>>, %arg3: memref<1x16xf32, #tpu.memory_space<vmem>>, %arg4: memref<2x16xf32, #tpu.memory_space<vmem>>) attributes {dimension_semantics = [#tpu.dimension_semantics<parallel>], iteration_bounds = array<i64: 1>, scalar_prefetch = 0 : i64, scratch_operands = 0 : i64, tpu.core_type = #tpu.core_type<tc>, window_params = [{transform_indices = @transform_0, window_bounds = array<i64: 2, 16>}, {pipeline_mode = #tpu.pipeline_mode<synchronous>, transform_indices = @transform_1, window_bounds = array<i64: 16, 16>}, {pipeline_mode = #tpu.pipeline_mode<synchronous>, transform_indices = @transform_2, window_bounds = array<i64: 1, 16>}, {transform_indices = @transform_3, window_bounds = array<i64: 2, 16>}]} {
    %c0 = arith.constant 0 : index
    %c0_0 = arith.constant 0 : index
    %0 = vector.load %arg1[%c0, %c0_0] : memref<2x16xf32, #tpu.memory_space<vmem>>, vector<2x16xf32>
    %1 = arith.truncf %0 : vector<2x16xf32> to vector<2x16xbf16>
    %c0_1 = arith.constant 0 : index
    %c0_2 = arith.constant 0 : index
    %2 = vector.load %arg2[%c0_1, %c0_2] : memref<16x16xf32, #tpu.memory_space<vmem>>, vector<16x16xf32>
    %3 = arith.truncf %2 : vector<16x16xf32> to vector<16x16xbf16>
    %cst = arith.constant dense<0.000000e+00> : vector<2x16xf32>
    %4 = tpu.matmul %1, %3, %cst {dimension_numbers = #tpu.dot_dimension_numbers<[1], [0], [0], [1], [0, 0, 1, 1], [], []>} : vector<2x16xbf16>, vector<16x16xbf16>, vector<2x16xf32> -> vector<2x16xf32>
    %c0_3 = arith.constant 0 : index
    %c0_4 = arith.constant 0 : index
    %5 = vector.load %arg3[%c0_3, %c0_4] : memref<1x16xf32, #tpu.memory_space<vmem>>, vector<1x16xf32>
    %6 = vector.broadcast %5 : vector<1x16xf32> to vector<2x16xf32>
    %7 = arith.addf %4, %6 : vector<2x16xf32>
    %cst_5 = arith.constant 0.000000e+00 : f32
    %8 = vector.broadcast %cst_5 : f32 to vector<2x16xf32>
    %9 = arith.cmpf oge, %7, %8 : vector<2x16xf32>
    %cst_6 = arith.constant 0.00999999977 : f32
    %10 = vector.broadcast %cst_6 : f32 to vector<2x16xf32>
    %11 = arith.mulf %10, %7 : vector<2x16xf32>
    %12 = arith.select %9, %7, %11 : vector<2x16xi1>, vector<2x16xf32>
    %c0_7 = arith.constant 0 : index
    %c0_8 = arith.constant 0 : index
    %13 = vector.load %arg4[%c0_7, %c0_8] : memref<2x16xf32, #tpu.memory_space<vmem>>, vector<2x16xf32>
    tpu.vector_store %arg4[%c0_7, %c0_8], %12 {strides = array<i32>} : memref<2x16xf32, #tpu.memory_space<vmem>>, vector<2x16xf32>,
    return
  }
  func.func @transform_0(%arg0: i32) -> (i32, i32) {
    %c0_i32 = arith.constant 0 : i32
    %c0_i32_0 = arith.constant 0 : i32
    return %arg0, %c0_i32 : i32, i32
  }
  func.func @transform_1(%arg0: i32) -> (i32, i32) {
    %c0_i32 = arith.constant 0 : i32
    %c0_i32_0 = arith.constant 0 : i32
    %c0_i32_1 = arith.constant 0 : i32
    return %c0_i32, %c0_i32_0 : i32, i32
  }
  func.func @transform_2(%arg0: i32) -> (i32, i32) {
    %c0_i32 = arith.constant 0 : i32
    %c0_i32_0 = arith.constant 0 : i32
    %c0_i32_1 = arith.constant 0 : i32
    return %c0_i32, %c0_i32_0 : i32, i32
  }
  func.func @transform_3(%arg0: i32) -> (i32, i32) {
    %c0_i32 = arith.constant 0 : i32
    %c0_i32_0 = arith.constant 0 : i32
    return %arg0, %c0_i32 : i32, i32
  }
}

module attributes {stable_mosaic.version = 11 : i64} {
  func.func @kernel(%arg0: i32, %arg1: memref<1x4x64xbf16, #tpu.memory_space<vmem>>, %arg2: memref<1x64xf32, #tpu.memory_space<vmem>>, %arg3: memref<1x64xf32, #tpu.memory_space<vmem>>, %arg4: memref<64x64xbf16, #tpu.memory_space<vmem>>, %arg5: memref<1x64xf32, #tpu.memory_space<vmem>>, %arg6: memref<3x64x64xbf16, #tpu.memory_space<vmem>>, %arg7: memref<1x64xf32, #tpu.memory_space<vmem>>, %arg8: memref<3x64x64xbf16, #tpu.memory_space<vmem>>, %arg9: memref<1x64xf32, #tpu.memory_space<vmem>>, %arg10: memref<1x1x16xf32, #tpu.memory_space<vmem>>, %arg11: memref<6x64xf32, #tpu.memory_space<vmem>>, %arg12: memref<6x64xf32, #tpu.memory_space<vmem>>) attributes {dimension_semantics = [#tpu.dimension_semantics<parallel>], iteration_bounds = array<i64: 2>, scalar_prefetch = 0 : i64, scratch_operands = 2 : i64, tpu.core_type = #tpu.core_type<tc>, window_params = [{transform_indices = @transform_0, window_bounds = array<i64: 1, 4, 64>}, {pipeline_mode = #tpu.pipeline_mode<synchronous>, transform_indices = @transform_1, window_bounds = array<i64: 1, 64>}, {pipeline_mode = #tpu.pipeline_mode<synchronous>, transform_indices = @transform_2, window_bounds = array<i64: 1, 64>}, {pipeline_mode = #tpu.pipeline_mode<synchronous>, transform_indices = @transform_3, window_bounds = array<i64: 64, 64>}, {pipeline_mode = #tpu.pipeline_mode<synchronous>, transform_indices = @transform_4, window_bounds = array<i64: 1, 64>}, {pipeline_mode = #tpu.pipeline_mode<synchronous>, transform_indices = @transform_5, window_bounds = array<i64: 3, 64, 64>}, {pipeline_mode = #tpu.pipeline_mode<synchronous>, transform_indices = @transform_6, window_bounds = array<i64: 1, 64>}, {pipeline_mode = #tpu.pipeline_mode<synchronous>, transform_indices = @transform_7, window_bounds = array<i64: 3, 64, 64>}, {pipeline_mode = #tpu.pipeline_mode<synchronous>, transform_indices = @transform_8, window_bounds = array<i64: 1, 64>}, {transform_indices = @transform_9, window_bounds = array<i64: 1, 1, 16>}]} {
    %cst = arith.constant 0.000000e+00 : f32
    %0 = vector.broadcast %cst : f32 to vector<6x64xf32>
    %c0 = arith.constant 0 : index
    %c0_0 = arith.constant 0 : index
    %1 = vector.load %arg11[%c0, %c0_0] : memref<6x64xf32, #tpu.memory_space<vmem>>, vector<6x64xf32>
    tpu.vector_store %arg11[%c0, %c0_0], %0 {strides = array<i32>} : memref<6x64xf32, #tpu.memory_space<vmem>>, vector<6x64xf32>,
    %cst_1 = arith.constant 0.000000e+00 : f32
    %2 = vector.broadcast %cst_1 : f32 to vector<6x64xf32>
    %c0_2 = arith.constant 0 : index
    %c0_3 = arith.constant 0 : index
    %3 = vector.load %arg12[%c0_2, %c0_3] : memref<6x64xf32, #tpu.memory_space<vmem>>, vector<6x64xf32>
    tpu.vector_store %arg12[%c0_2, %c0_3], %2 {strides = array<i32>} : memref<6x64xf32, #tpu.memory_space<vmem>>, vector<6x64xf32>,
    %c0_4 = arith.constant 0 : index
    %c0_5 = arith.constant 0 : index
    %c0_6 = arith.constant 0 : index
    %4 = vector.load %arg1[%c0_4, %c0_5, %c0_6] : memref<1x4x64xbf16, #tpu.memory_space<vmem>>, vector<1x4x64xbf16>
    %5 = vector.shape_cast %4 : vector<1x4x64xbf16> to vector<4x64xbf16>
    %6 = arith.extf %5 : vector<4x64xbf16> to vector<4x64xf32>
    %c1 = arith.constant 1 : index
    %c0_7 = arith.constant 0 : index
    %7 = vector.load %arg11[%c1, %c0_7] : memref<6x64xf32, #tpu.memory_space<vmem>>, vector<4x64xf32>
    tpu.vector_store %arg11[%c1, %c0_7], %6 {strides = array<i32>} : memref<6x64xf32, #tpu.memory_space<vmem>>, vector<4x64xf32>,
    %c1_8 = arith.constant 1 : index
    %c0_9 = arith.constant 0 : index
    %8 = vector.load %arg11[%c1_8, %c0_9] : memref<6x64xf32, #tpu.memory_space<vmem>>, vector<4x64xf32>
    %9 = arith.truncf %8 : vector<4x64xf32> to vector<4x64xbf16>
    %c0_10 = arith.constant 0 : index
    %c0_11 = arith.constant 0 : index
    %10 = vector.load %arg4[%c0_10, %c0_11] : memref<64x64xbf16, #tpu.memory_space<vmem>>, vector<64x64xbf16>
    %cst_12 = arith.constant dense<0.000000e+00> : vector<4x64xf32>
    %11 = tpu.matmul %9, %10, %cst_12 {dimension_numbers = #tpu.dot_dimension_numbers<[1], [0], [0], [1], [0, 0, 1, 1], [], []>} : vector<4x64xbf16>, vector<64x64xbf16>, vector<4x64xf32> -> vector<4x64xf32>
    %c0_13 = arith.constant 0 : index
    %c0_14 = arith.constant 0 : index
    %12 = vector.load %arg5[%c0_13, %c0_14] : memref<1x64xf32, #tpu.memory_space<vmem>>, vector<1x64xf32>
    %13 = vector.broadcast %12 : vector<1x64xf32> to vector<4x64xf32>
    %14 = arith.addf %11, %13 : vector<4x64xf32>
    %c0_15 = arith.constant 0 : index
    %c0_16 = arith.constant 0 : index
    %15 = vector.load %arg2[%c0_15, %c0_16] : memref<1x64xf32, #tpu.memory_space<vmem>>, vector<1x64xf32>
    %16 = vector.broadcast %15 : vector<1x64xf32> to vector<4x64xf32>
    %17 = arith.mulf %6, %16 : vector<4x64xf32>
    %c0_17 = arith.constant 0 : index
    %c0_18 = arith.constant 0 : index
    %18 = vector.load %arg3[%c0_17, %c0_18] : memref<1x64xf32, #tpu.memory_space<vmem>>, vector<1x64xf32>
    %19 = vector.broadcast %18 : vector<1x64xf32> to vector<4x64xf32>
    %20 = arith.addf %17, %19 : vector<4x64xf32>
    %cst_19 = arith.constant 0.000000e+00 : f32
    %21 = vector.broadcast %cst_19 : f32 to vector<4x64xf32>
    %22 = arith.cmpf oge, %20, %21 : vector<4x64xf32>
    %cst_20 = arith.constant 0.00999999977 : f32
    %23 = vector.broadcast %cst_20 : f32 to vector<4x64xf32>
    %24 = arith.mulf %23, %20 : vector<4x64xf32>
    %25 = arith.select %22, %20, %24 : vector<4x64xi1>, vector<4x64xf32>
    %c1_21 = arith.constant 1 : index
    %c0_22 = arith.constant 0 : index
    %26 = vector.load %arg11[%c1_21, %c0_22] : memref<6x64xf32, #tpu.memory_space<vmem>>, vector<4x64xf32>
    tpu.vector_store %arg11[%c1_21, %c0_22], %25 {strides = array<i32>} : memref<6x64xf32, #tpu.memory_space<vmem>>, vector<4x64xf32>,
    %cst_23 = arith.constant 0.000000e+00 : f32
    %27 = vector.broadcast %cst_23 : f32 to vector<4x64xf32>
    %c0_24 = arith.constant 0 : index
    %c0_25 = arith.constant 0 : index
    %28 = vector.load %arg11[%c0_24, %c0_25] : memref<6x64xf32, #tpu.memory_space<vmem>>, vector<4x64xf32>
    %29 = arith.truncf %28 : vector<4x64xf32> to vector<4x64xbf16>
    %c0_26 = arith.constant 0 : index
    %c0_27 = arith.constant 0 : index
    %c0_28 = arith.constant 0 : index
    %30 = vector.load %arg6[%c0_26, %c0_27, %c0_28] : memref<3x64x64xbf16, #tpu.memory_space<vmem>>, vector<1x64x64xbf16>
    %31 = vector.shape_cast %30 : vector<1x64x64xbf16> to vector<64x64xbf16>
    %cst_29 = arith.constant dense<0.000000e+00> : vector<4x64xf32>
    %32 = tpu.matmul %29, %31, %cst_29 {dimension_numbers = #tpu.dot_dimension_numbers<[1], [0], [0], [1], [0, 0, 1, 1], [], []>} : vector<4x64xbf16>, vector<64x64xbf16>, vector<4x64xf32> -> vector<4x64xf32>
    %33 = arith.addf %27, %32 : vector<4x64xf32>
    %c1_30 = arith.constant 1 : index
    %c0_31 = arith.constant 0 : index
    %34 = vector.load %arg11[%c1_30, %c0_31] : memref<6x64xf32, #tpu.memory_space<vmem>>, vector<4x64xf32>
    %35 = arith.truncf %34 : vector<4x64xf32> to vector<4x64xbf16>
    %c1_32 = arith.constant 1 : index
    %c0_33 = arith.constant 0 : index
    %c0_34 = arith.constant 0 : index
    %36 = vector.load %arg6[%c1_32, %c0_33, %c0_34] : memref<3x64x64xbf16, #tpu.memory_space<vmem>>, vector<1x64x64xbf16>
    %37 = vector.shape_cast %36 : vector<1x64x64xbf16> to vector<64x64xbf16>
    %cst_35 = arith.constant dense<0.000000e+00> : vector<4x64xf32>
    %38 = tpu.matmul %35, %37, %cst_35 {dimension_numbers = #tpu.dot_dimension_numbers<[1], [0], [0], [1], [0, 0, 1, 1], [], []>} : vector<4x64xbf16>, vector<64x64xbf16>, vector<4x64xf32> -> vector<4x64xf32>
    %39 = arith.addf %33, %38 : vector<4x64xf32>
    %c2 = arith.constant 2 : index
    %c0_36 = arith.constant 0 : index
    %40 = vector.load %arg11[%c2, %c0_36] : memref<6x64xf32, #tpu.memory_space<vmem>>, vector<4x64xf32>
    %41 = arith.truncf %40 : vector<4x64xf32> to vector<4x64xbf16>
    %c2_37 = arith.constant 2 : index
    %c0_38 = arith.constant 0 : index
    %c0_39 = arith.constant 0 : index
    %42 = vector.load %arg6[%c2_37, %c0_38, %c0_39] : memref<3x64x64xbf16, #tpu.memory_space<vmem>>, vector<1x64x64xbf16>
    %43 = vector.shape_cast %42 : vector<1x64x64xbf16> to vector<64x64xbf16>
    %cst_40 = arith.constant dense<0.000000e+00> : vector<4x64xf32>
    %44 = tpu.matmul %41, %43, %cst_40 {dimension_numbers = #tpu.dot_dimension_numbers<[1], [0], [0], [1], [0, 0, 1, 1], [], []>} : vector<4x64xbf16>, vector<64x64xbf16>, vector<4x64xf32> -> vector<4x64xf32>
    %45 = arith.addf %39, %44 : vector<4x64xf32>
    %c0_41 = arith.constant 0 : index
    %c0_42 = arith.constant 0 : index
    %46 = vector.load %arg7[%c0_41, %c0_42] : memref<1x64xf32, #tpu.memory_space<vmem>>, vector<1x64xf32>
    %47 = vector.broadcast %46 : vector<1x64xf32> to vector<4x64xf32>
    %48 = arith.addf %45, %47 : vector<4x64xf32>
    %cst_43 = arith.constant 0.000000e+00 : f32
    %49 = vector.broadcast %cst_43 : f32 to vector<4x64xf32>
    %50 = arith.cmpf oge, %48, %49 : vector<4x64xf32>
    %cst_44 = arith.constant 0.00999999977 : f32
    %51 = vector.broadcast %cst_44 : f32 to vector<4x64xf32>
    %52 = arith.mulf %51, %48 : vector<4x64xf32>
    %53 = arith.select %50, %48, %52 : vector<4x64xi1>, vector<4x64xf32>
    %c1_45 = arith.constant 1 : index
    %c0_46 = arith.constant 0 : index
    %54 = vector.load %arg12[%c1_45, %c0_46] : memref<6x64xf32, #tpu.memory_space<vmem>>, vector<4x64xf32>
    tpu.vector_store %arg12[%c1_45, %c0_46], %53 {strides = array<i32>} : memref<6x64xf32, #tpu.memory_space<vmem>>, vector<4x64xf32>,
    %cst_47 = arith.constant 0.000000e+00 : f32
    %55 = vector.broadcast %cst_47 : f32 to vector<4x64xf32>
    %c0_48 = arith.constant 0 : index
    %c0_49 = arith.constant 0 : index
    %56 = vector.load %arg12[%c0_48, %c0_49] : memref<6x64xf32, #tpu.memory_space<vmem>>, vector<4x64xf32>
    %57 = arith.truncf %56 : vector<4x64xf32> to vector<4x64xbf16>
    %c0_50 = arith.constant 0 : index
    %c0_51 = arith.constant 0 : index
    %c0_52 = arith.constant 0 : index
    %58 = vector.load %arg8[%c0_50, %c0_51, %c0_52] : memref<3x64x64xbf16, #tpu.memory_space<vmem>>, vector<1x64x64xbf16>
    %59 = vector.shape_cast %58 : vector<1x64x64xbf16> to vector<64x64xbf16>
    %cst_53 = arith.constant dense<0.000000e+00> : vector<4x64xf32>
    %60 = tpu.matmul %57, %59, %cst_53 {dimension_numbers = #tpu.dot_dimension_numbers<[1], [0], [0], [1], [0, 0, 1, 1], [], []>} : vector<4x64xbf16>, vector<64x64xbf16>, vector<4x64xf32> -> vector<4x64xf32>
    %61 = arith.addf %55, %60 : vector<4x64xf32>
    %c1_54 = arith.constant 1 : index
    %c0_55 = arith.constant 0 : index
    %62 = vector.load %arg12[%c1_54, %c0_55] : memref<6x64xf32, #tpu.memory_space<vmem>>, vector<4x64xf32>
    %63 = arith.truncf %62 : vector<4x64xf32> to vector<4x64xbf16>
    %c1_56 = arith.constant 1 : index
    %c0_57 = arith.constant 0 : index
    %c0_58 = arith.constant 0 : index
    %64 = vector.load %arg8[%c1_56, %c0_57, %c0_58] : memref<3x64x64xbf16, #tpu.memory_space<vmem>>, vector<1x64x64xbf16>
    %65 = vector.shape_cast %64 : vector<1x64x64xbf16> to vector<64x64xbf16>
    %cst_59 = arith.constant dense<0.000000e+00> : vector<4x64xf32>
    %66 = tpu.matmul %63, %65, %cst_59 {dimension_numbers = #tpu.dot_dimension_numbers<[1], [0], [0], [1], [0, 0, 1, 1], [], []>} : vector<4x64xbf16>, vector<64x64xbf16>, vector<4x64xf32> -> vector<4x64xf32>
    %67 = arith.addf %61, %66 : vector<4x64xf32>
    %c2_60 = arith.constant 2 : index
    %c0_61 = arith.constant 0 : index
    %68 = vector.load %arg12[%c2_60, %c0_61] : memref<6x64xf32, #tpu.memory_space<vmem>>, vector<4x64xf32>
    %69 = arith.truncf %68 : vector<4x64xf32> to vector<4x64xbf16>
    %c2_62 = arith.constant 2 : index
    %c0_63 = arith.constant 0 : index
    %c0_64 = arith.constant 0 : index
    %70 = vector.load %arg8[%c2_62, %c0_63, %c0_64] : memref<3x64x64xbf16, #tpu.memory_space<vmem>>, vector<1x64x64xbf16>
    %71 = vector.shape_cast %70 : vector<1x64x64xbf16> to vector<64x64xbf16>
    %cst_65 = arith.constant dense<0.000000e+00> : vector<4x64xf32>
    %72 = tpu.matmul %69, %71, %cst_65 {dimension_numbers = #tpu.dot_dimension_numbers<[1], [0], [0], [1], [0, 0, 1, 1], [], []>} : vector<4x64xbf16>, vector<64x64xbf16>, vector<4x64xf32> -> vector<4x64xf32>
    %73 = arith.addf %67, %72 : vector<4x64xf32>
    %c0_66 = arith.constant 0 : index
    %c0_67 = arith.constant 0 : index
    %74 = vector.load %arg9[%c0_66, %c0_67] : memref<1x64xf32, #tpu.memory_space<vmem>>, vector<1x64xf32>
    %75 = vector.broadcast %74 : vector<1x64xf32> to vector<4x64xf32>
    %76 = arith.addf %73, %75 : vector<4x64xf32>
    %77 = arith.addf %76, %14 : vector<4x64xf32>
    %cst_68 = arith.constant dense<0.000000e+00> : vector<64xf32>
    %78 = vector.multi_reduction <add>, %77, %cst_68 [0] : vector<4x64xf32> to vector<64xf32>
    %79 = vector.shape_cast %78 : vector<64xf32> to vector<1x64xf32>
    %cst_69 = arith.constant dense<0xFF800000> : vector<64xf32>
    %80 = vector.multi_reduction <maximumf>, %77, %cst_69 [0] : vector<4x64xf32> to vector<64xf32>
    %81 = vector.shape_cast %80 : vector<64xf32> to vector<1x64xf32>
    %82 = vector.extract_strided_slice %79 {offsets = [0, 0], sizes = [1, 16], strides = [1, 1]} : vector<1x64xf32> to vector<1x16xf32>
    %83 = vector.extract_strided_slice %81 {offsets = [0, 0], sizes = [1, 16], strides = [1, 1]} : vector<1x64xf32> to vector<1x16xf32>
    %84 = vector.extract_strided_slice %79 {offsets = [0, 16], sizes = [1, 16], strides = [1, 1]} : vector<1x64xf32> to vector<1x16xf32>
    %85 = arith.addf %82, %84 : vector<1x16xf32>
    %86 = vector.extract_strided_slice %81 {offsets = [0, 16], sizes = [1, 16], strides = [1, 1]} : vector<1x64xf32> to vector<1x16xf32>
    %87 = arith.maximumf %83, %86 : vector<1x16xf32>
    %88 = vector.extract_strided_slice %79 {offsets = [0, 32], sizes = [1, 16], strides = [1, 1]} : vector<1x64xf32> to vector<1x16xf32>
    %89 = arith.addf %85, %88 : vector<1x16xf32>
    %90 = vector.extract_strided_slice %81 {offsets = [0, 32], sizes = [1, 16], strides = [1, 1]} : vector<1x64xf32> to vector<1x16xf32>
    %91 = arith.maximumf %87, %90 : vector<1x16xf32>
    %92 = vector.extract_strided_slice %79 {offsets = [0, 48], sizes = [1, 16], strides = [1, 1]} : vector<1x64xf32> to vector<1x16xf32>
    %93 = arith.addf %89, %92 : vector<1x16xf32>
    %94 = vector.extract_strided_slice %81 {offsets = [0, 48], sizes = [1, 16], strides = [1, 1]} : vector<1x64xf32> to vector<1x16xf32>
    %95 = arith.maximumf %91, %94 : vector<1x16xf32>
    %cst_70 = arith.constant 6.250000e-02 : f32
    %96 = vector.broadcast %cst_70 : f32 to vector<1x16xf32>
    %97 = arith.mulf %93, %96 : vector<1x16xf32>
    %98 = arith.addf %97, %95 : vector<1x16xf32>
    %c0_71 = arith.constant 0 : index
    %c0_72 = arith.constant 0 : index
    %c0_73 = arith.constant 0 : index
    %99 = vector.load %arg10[%c0_71, %c0_72, %c0_73] : memref<1x1x16xf32, #tpu.memory_space<vmem>>, vector<1x1x16xf32>
    %100 = vector.shape_cast %99 : vector<1x1x16xf32> to vector<1x16xf32>
    %101 = vector.shape_cast %98 : vector<1x16xf32> to vector<1x1x16xf32>
    tpu.vector_store %arg10[%c0_71, %c0_72, %c0_73], %101 {strides = array<i32>} : memref<1x1x16xf32, #tpu.memory_space<vmem>>, vector<1x1x16xf32>,
    return
  }
  func.func @transform_0(%arg0: i32) -> (i32, i32, i32) {
    %c0_i32 = arith.constant 0 : i32
    %c0_i32_0 = arith.constant 0 : i32
    %c0_i32_1 = arith.constant 0 : i32
    return %arg0, %c0_i32, %c0_i32_0 : i32, i32, i32
  }
  func.func @transform_1(%arg0: i32) -> (i32, i32) {
    %c0_i32 = arith.constant 0 : i32
    %c0_i32_0 = arith.constant 0 : i32
    %c0_i32_1 = arith.constant 0 : i32
    return %c0_i32, %c0_i32_0 : i32, i32
  }
  func.func @transform_2(%arg0: i32) -> (i32, i32) {
    %c0_i32 = arith.constant 0 : i32
    %c0_i32_0 = arith.constant 0 : i32
    %c0_i32_1 = arith.constant 0 : i32
    return %c0_i32, %c0_i32_0 : i32, i32
  }
  func.func @transform_3(%arg0: i32) -> (i32, i32) {
    %c0_i32 = arith.constant 0 : i32
    %c0_i32_0 = arith.constant 0 : i32
    %c0_i32_1 = arith.constant 0 : i32
    return %c0_i32, %c0_i32_0 : i32, i32
  }
  func.func @transform_4(%arg0: i32) -> (i32, i32) {
    %c0_i32 = arith.constant 0 : i32
    %c0_i32_0 = arith.constant 0 : i32
    %c0_i32_1 = arith.constant 0 : i32
    return %c0_i32, %c0_i32_0 : i32, i32
  }
  func.func @transform_5(%arg0: i32) -> (i32, i32, i32) {
    %c0_i32 = arith.constant 0 : i32
    %c0_i32_0 = arith.constant 0 : i32
    %c0_i32_1 = arith.constant 0 : i32
    %c0_i32_2 = arith.constant 0 : i32
    return %c0_i32, %c0_i32_0, %c0_i32_1 : i32, i32, i32
  }
  func.func @transform_6(%arg0: i32) -> (i32, i32) {
    %c0_i32 = arith.constant 0 : i32
    %c0_i32_0 = arith.constant 0 : i32
    %c0_i32_1 = arith.constant 0 : i32
    return %c0_i32, %c0_i32_0 : i32, i32
  }
  func.func @transform_7(%arg0: i32) -> (i32, i32, i32) {
    %c0_i32 = arith.constant 0 : i32
    %c0_i32_0 = arith.constant 0 : i32
    %c0_i32_1 = arith.constant 0 : i32
    %c0_i32_2 = arith.constant 0 : i32
    return %c0_i32, %c0_i32_0, %c0_i32_1 : i32, i32, i32
  }
  func.func @transform_8(%arg0: i32) -> (i32, i32) {
    %c0_i32 = arith.constant 0 : i32
    %c0_i32_0 = arith.constant 0 : i32
    %c0_i32_1 = arith.constant 0 : i32
    return %c0_i32, %c0_i32_0 : i32, i32
  }
  func.func @transform_9(%arg0: i32) -> (i32, i32, i32) {
    %c0_i32 = arith.constant 0 : i32
    %c0_i32_0 = arith.constant 0 : i32
    %c0_i32_1 = arith.constant 0 : i32
    return %arg0, %c0_i32, %c0_i32_0 : i32, i32, i32
  }
}

module attributes {stable_mosaic.version = 11 : i64} {
  func.func @kernel(%arg0: i32, %arg1: memref<1x4x64xbf16, #tpu.memory_space<vmem>>, %arg2: memref<1x64xf32, #tpu.memory_space<vmem>>, %arg3: memref<1x64xf32, #tpu.memory_space<vmem>>, %arg4: memref<64x64xbf16, #tpu.memory_space<vmem>>, %arg5: memref<1x64xf32, #tpu.memory_space<vmem>>, %arg6: memref<3x64x64xbf16, #tpu.memory_space<vmem>>, %arg7: memref<1x64xf32, #tpu.memory_space<vmem>>, %arg8: memref<3x64x64xbf16, #tpu.memory_space<vmem>>, %arg9: memref<1x64xf32, #tpu.memory_space<vmem>>, %arg10: memref<1x4x64xbf16, #tpu.memory_space<vmem>>, %arg11: memref<6x64xf32, #tpu.memory_space<vmem>>, %arg12: memref<6x64xf32, #tpu.memory_space<vmem>>) attributes {dimension_semantics = [#tpu.dimension_semantics<parallel>], iteration_bounds = array<i64: 2>, scalar_prefetch = 0 : i64, scratch_operands = 2 : i64, tpu.core_type = #tpu.core_type<tc>, window_params = [{transform_indices = @transform_0, window_bounds = array<i64: 1, 4, 64>}, {pipeline_mode = #tpu.pipeline_mode<synchronous>, transform_indices = @transform_1, window_bounds = array<i64: 1, 64>}, {pipeline_mode = #tpu.pipeline_mode<synchronous>, transform_indices = @transform_2, window_bounds = array<i64: 1, 64>}, {pipeline_mode = #tpu.pipeline_mode<synchronous>, transform_indices = @transform_3, window_bounds = array<i64: 64, 64>}, {pipeline_mode = #tpu.pipeline_mode<synchronous>, transform_indices = @transform_4, window_bounds = array<i64: 1, 64>}, {pipeline_mode = #tpu.pipeline_mode<synchronous>, transform_indices = @transform_5, window_bounds = array<i64: 3, 64, 64>}, {pipeline_mode = #tpu.pipeline_mode<synchronous>, transform_indices = @transform_6, window_bounds = array<i64: 1, 64>}, {pipeline_mode = #tpu.pipeline_mode<synchronous>, transform_indices = @transform_7, window_bounds = array<i64: 3, 64, 64>}, {pipeline_mode = #tpu.pipeline_mode<synchronous>, transform_indices = @transform_8, window_bounds = array<i64: 1, 64>}, {transform_indices = @transform_9, window_bounds = array<i64: 1, 4, 64>}]} {
    %cst = arith.constant 0.000000e+00 : f32
    %0 = vector.broadcast %cst : f32 to vector<6x64xf32>
    %c0 = arith.constant 0 : index
    %c0_0 = arith.constant 0 : index
    %1 = vector.load %arg11[%c0, %c0_0] : memref<6x64xf32, #tpu.memory_space<vmem>>, vector<6x64xf32>
    tpu.vector_store %arg11[%c0, %c0_0], %0 {strides = array<i32>} : memref<6x64xf32, #tpu.memory_space<vmem>>, vector<6x64xf32>,
    %cst_1 = arith.constant 0.000000e+00 : f32
    %2 = vector.broadcast %cst_1 : f32 to vector<6x64xf32>
    %c0_2 = arith.constant 0 : index
    %c0_3 = arith.constant 0 : index
    %3 = vector.load %arg12[%c0_2, %c0_3] : memref<6x64xf32, #tpu.memory_space<vmem>>, vector<6x64xf32>
    tpu.vector_store %arg12[%c0_2, %c0_3], %2 {strides = array<i32>} : memref<6x64xf32, #tpu.memory_space<vmem>>, vector<6x64xf32>,
    %c0_4 = arith.constant 0 : index
    %c0_5 = arith.constant 0 : index
    %c0_6 = arith.constant 0 : index
    %4 = vector.load %arg1[%c0_4, %c0_5, %c0_6] : memref<1x4x64xbf16, #tpu.memory_space<vmem>>, vector<1x4x64xbf16>
    %5 = vector.shape_cast %4 : vector<1x4x64xbf16> to vector<4x64xbf16>
    %6 = arith.extf %5 : vector<4x64xbf16> to vector<4x64xf32>
    %c1 = arith.constant 1 : index
    %c0_7 = arith.constant 0 : index
    %7 = vector.load %arg11[%c1, %c0_7] : memref<6x64xf32, #tpu.memory_space<vmem>>, vector<4x64xf32>
    tpu.vector_store %arg11[%c1, %c0_7], %6 {strides = array<i32>} : memref<6x64xf32, #tpu.memory_space<vmem>>, vector<4x64xf32>,
    %c1_8 = arith.constant 1 : index
    %c0_9 = arith.constant 0 : index
    %8 = vector.load %arg11[%c1_8, %c0_9] : memref<6x64xf32, #tpu.memory_space<vmem>>, vector<4x64xf32>
    %9 = arith.truncf %8 : vector<4x64xf32> to vector<4x64xbf16>
    %c0_10 = arith.constant 0 : index
    %c0_11 = arith.constant 0 : index
    %10 = vector.load %arg4[%c0_10, %c0_11] : memref<64x64xbf16, #tpu.memory_space<vmem>>, vector<64x64xbf16>
    %cst_12 = arith.constant dense<0.000000e+00> : vector<4x64xf32>
    %11 = tpu.matmul %9, %10, %cst_12 {dimension_numbers = #tpu.dot_dimension_numbers<[1], [0], [0], [1], [0, 0, 1, 1], [], []>} : vector<4x64xbf16>, vector<64x64xbf16>, vector<4x64xf32> -> vector<4x64xf32>
    %c0_13 = arith.constant 0 : index
    %c0_14 = arith.constant 0 : index
    %12 = vector.load %arg5[%c0_13, %c0_14] : memref<1x64xf32, #tpu.memory_space<vmem>>, vector<1x64xf32>
    %13 = vector.broadcast %12 : vector<1x64xf32> to vector<4x64xf32>
    %14 = arith.addf %11, %13 : vector<4x64xf32>
    %c0_15 = arith.constant 0 : index
    %c0_16 = arith.constant 0 : index
    %15 = vector.load %arg2[%c0_15, %c0_16] : memref<1x64xf32, #tpu.memory_space<vmem>>, vector<1x64xf32>
    %16 = vector.broadcast %15 : vector<1x64xf32> to vector<4x64xf32>
    %17 = arith.mulf %6, %16 : vector<4x64xf32>
    %c0_17 = arith.constant 0 : index
    %c0_18 = arith.constant 0 : index
    %18 = vector.load %arg3[%c0_17, %c0_18] : memref<1x64xf32, #tpu.memory_space<vmem>>, vector<1x64xf32>
    %19 = vector.broadcast %18 : vector<1x64xf32> to vector<4x64xf32>
    %20 = arith.addf %17, %19 : vector<4x64xf32>
    %cst_19 = arith.constant 0.000000e+00 : f32
    %21 = vector.broadcast %cst_19 : f32 to vector<4x64xf32>
    %22 = arith.cmpf oge, %20, %21 : vector<4x64xf32>
    %cst_20 = arith.constant 0.00999999977 : f32
    %23 = vector.broadcast %cst_20 : f32 to vector<4x64xf32>
    %24 = arith.mulf %23, %20 : vector<4x64xf32>
    %25 = arith.select %22, %20, %24 : vector<4x64xi1>, vector<4x64xf32>
    %c1_21 = arith.constant 1 : index
    %c0_22 = arith.constant 0 : index
    %26 = vector.load %arg11[%c1_21, %c0_22] : memref<6x64xf32, #tpu.memory_space<vmem>>, vector<4x64xf32>
    tpu.vector_store %arg11[%c1_21, %c0_22], %25 {strides = array<i32>} : memref<6x64xf32, #tpu.memory_space<vmem>>, vector<4x64xf32>,
    %cst_23 = arith.constant 0.000000e+00 : f32
    %27 = vector.broadcast %cst_23 : f32 to vector<4x64xf32>
    %c0_24 = arith.constant 0 : index
    %c0_25 = arith.constant 0 : index
    %28 = vector.load %arg11[%c0_24, %c0_25] : memref<6x64xf32, #tpu.memory_space<vmem>>, vector<4x64xf32>
    %29 = arith.truncf %28 : vector<4x64xf32> to vector<4x64xbf16>
    %c0_26 = arith.constant 0 : index
    %c0_27 = arith.constant 0 : index
    %c0_28 = arith.constant 0 : index
    %30 = vector.load %arg6[%c0_26, %c0_27, %c0_28] : memref<3x64x64xbf16, #tpu.memory_space<vmem>>, vector<1x64x64xbf16>
    %31 = vector.shape_cast %30 : vector<1x64x64xbf16> to vector<64x64xbf16>
    %cst_29 = arith.constant dense<0.000000e+00> : vector<4x64xf32>
    %32 = tpu.matmul %29, %31, %cst_29 {dimension_numbers = #tpu.dot_dimension_numbers<[1], [0], [0], [1], [0, 0, 1, 1], [], []>} : vector<4x64xbf16>, vector<64x64xbf16>, vector<4x64xf32> -> vector<4x64xf32>
    %33 = arith.addf %27, %32 : vector<4x64xf32>
    %c1_30 = arith.constant 1 : index
    %c0_31 = arith.constant 0 : index
    %34 = vector.load %arg11[%c1_30, %c0_31] : memref<6x64xf32, #tpu.memory_space<vmem>>, vector<4x64xf32>
    %35 = arith.truncf %34 : vector<4x64xf32> to vector<4x64xbf16>
    %c1_32 = arith.constant 1 : index
    %c0_33 = arith.constant 0 : index
    %c0_34 = arith.constant 0 : index
    %36 = vector.load %arg6[%c1_32, %c0_33, %c0_34] : memref<3x64x64xbf16, #tpu.memory_space<vmem>>, vector<1x64x64xbf16>
    %37 = vector.shape_cast %36 : vector<1x64x64xbf16> to vector<64x64xbf16>
    %cst_35 = arith.constant dense<0.000000e+00> : vector<4x64xf32>
    %38 = tpu.matmul %35, %37, %cst_35 {dimension_numbers = #tpu.dot_dimension_numbers<[1], [0], [0], [1], [0, 0, 1, 1], [], []>} : vector<4x64xbf16>, vector<64x64xbf16>, vector<4x64xf32> -> vector<4x64xf32>
    %39 = arith.addf %33, %38 : vector<4x64xf32>
    %c2 = arith.constant 2 : index
    %c0_36 = arith.constant 0 : index
    %40 = vector.load %arg11[%c2, %c0_36] : memref<6x64xf32, #tpu.memory_space<vmem>>, vector<4x64xf32>
    %41 = arith.truncf %40 : vector<4x64xf32> to vector<4x64xbf16>
    %c2_37 = arith.constant 2 : index
    %c0_38 = arith.constant 0 : index
    %c0_39 = arith.constant 0 : index
    %42 = vector.load %arg6[%c2_37, %c0_38, %c0_39] : memref<3x64x64xbf16, #tpu.memory_space<vmem>>, vector<1x64x64xbf16>
    %43 = vector.shape_cast %42 : vector<1x64x64xbf16> to vector<64x64xbf16>
    %cst_40 = arith.constant dense<0.000000e+00> : vector<4x64xf32>
    %44 = tpu.matmul %41, %43, %cst_40 {dimension_numbers = #tpu.dot_dimension_numbers<[1], [0], [0], [1], [0, 0, 1, 1], [], []>} : vector<4x64xbf16>, vector<64x64xbf16>, vector<4x64xf32> -> vector<4x64xf32>
    %45 = arith.addf %39, %44 : vector<4x64xf32>
    %c0_41 = arith.constant 0 : index
    %c0_42 = arith.constant 0 : index
    %46 = vector.load %arg7[%c0_41, %c0_42] : memref<1x64xf32, #tpu.memory_space<vmem>>, vector<1x64xf32>
    %47 = vector.broadcast %46 : vector<1x64xf32> to vector<4x64xf32>
    %48 = arith.addf %45, %47 : vector<4x64xf32>
    %cst_43 = arith.constant 0.000000e+00 : f32
    %49 = vector.broadcast %cst_43 : f32 to vector<4x64xf32>
    %50 = arith.cmpf oge, %48, %49 : vector<4x64xf32>
    %cst_44 = arith.constant 0.00999999977 : f32
    %51 = vector.broadcast %cst_44 : f32 to vector<4x64xf32>
    %52 = arith.mulf %51, %48 : vector<4x64xf32>
    %53 = arith.select %50, %48, %52 : vector<4x64xi1>, vector<4x64xf32>
    %c1_45 = arith.constant 1 : index
    %c0_46 = arith.constant 0 : index
    %54 = vector.load %arg12[%c1_45, %c0_46] : memref<6x64xf32, #tpu.memory_space<vmem>>, vector<4x64xf32>
    tpu.vector_store %arg12[%c1_45, %c0_46], %53 {strides = array<i32>} : memref<6x64xf32, #tpu.memory_space<vmem>>, vector<4x64xf32>,
    %cst_47 = arith.constant 0.000000e+00 : f32
    %55 = vector.broadcast %cst_47 : f32 to vector<4x64xf32>
    %c0_48 = arith.constant 0 : index
    %c0_49 = arith.constant 0 : index
    %56 = vector.load %arg12[%c0_48, %c0_49] : memref<6x64xf32, #tpu.memory_space<vmem>>, vector<4x64xf32>
    %57 = arith.truncf %56 : vector<4x64xf32> to vector<4x64xbf16>
    %c0_50 = arith.constant 0 : index
    %c0_51 = arith.constant 0 : index
    %c0_52 = arith.constant 0 : index
    %58 = vector.load %arg8[%c0_50, %c0_51, %c0_52] : memref<3x64x64xbf16, #tpu.memory_space<vmem>>, vector<1x64x64xbf16>
    %59 = vector.shape_cast %58 : vector<1x64x64xbf16> to vector<64x64xbf16>
    %cst_53 = arith.constant dense<0.000000e+00> : vector<4x64xf32>
    %60 = tpu.matmul %57, %59, %cst_53 {dimension_numbers = #tpu.dot_dimension_numbers<[1], [0], [0], [1], [0, 0, 1, 1], [], []>} : vector<4x64xbf16>, vector<64x64xbf16>, vector<4x64xf32> -> vector<4x64xf32>
    %61 = arith.addf %55, %60 : vector<4x64xf32>
    %c1_54 = arith.constant 1 : index
    %c0_55 = arith.constant 0 : index
    %62 = vector.load %arg12[%c1_54, %c0_55] : memref<6x64xf32, #tpu.memory_space<vmem>>, vector<4x64xf32>
    %63 = arith.truncf %62 : vector<4x64xf32> to vector<4x64xbf16>
    %c1_56 = arith.constant 1 : index
    %c0_57 = arith.constant 0 : index
    %c0_58 = arith.constant 0 : index
    %64 = vector.load %arg8[%c1_56, %c0_57, %c0_58] : memref<3x64x64xbf16, #tpu.memory_space<vmem>>, vector<1x64x64xbf16>
    %65 = vector.shape_cast %64 : vector<1x64x64xbf16> to vector<64x64xbf16>
    %cst_59 = arith.constant dense<0.000000e+00> : vector<4x64xf32>
    %66 = tpu.matmul %63, %65, %cst_59 {dimension_numbers = #tpu.dot_dimension_numbers<[1], [0], [0], [1], [0, 0, 1, 1], [], []>} : vector<4x64xbf16>, vector<64x64xbf16>, vector<4x64xf32> -> vector<4x64xf32>
    %67 = arith.addf %61, %66 : vector<4x64xf32>
    %c2_60 = arith.constant 2 : index
    %c0_61 = arith.constant 0 : index
    %68 = vector.load %arg12[%c2_60, %c0_61] : memref<6x64xf32, #tpu.memory_space<vmem>>, vector<4x64xf32>
    %69 = arith.truncf %68 : vector<4x64xf32> to vector<4x64xbf16>
    %c2_62 = arith.constant 2 : index
    %c0_63 = arith.constant 0 : index
    %c0_64 = arith.constant 0 : index
    %70 = vector.load %arg8[%c2_62, %c0_63, %c0_64] : memref<3x64x64xbf16, #tpu.memory_space<vmem>>, vector<1x64x64xbf16>
    %71 = vector.shape_cast %70 : vector<1x64x64xbf16> to vector<64x64xbf16>
    %cst_65 = arith.constant dense<0.000000e+00> : vector<4x64xf32>
    %72 = tpu.matmul %69, %71, %cst_65 {dimension_numbers = #tpu.dot_dimension_numbers<[1], [0], [0], [1], [0, 0, 1, 1], [], []>} : vector<4x64xbf16>, vector<64x64xbf16>, vector<4x64xf32> -> vector<4x64xf32>
    %73 = arith.addf %67, %72 : vector<4x64xf32>
    %c0_66 = arith.constant 0 : index
    %c0_67 = arith.constant 0 : index
    %74 = vector.load %arg9[%c0_66, %c0_67] : memref<1x64xf32, #tpu.memory_space<vmem>>, vector<1x64xf32>
    %75 = vector.broadcast %74 : vector<1x64xf32> to vector<4x64xf32>
    %76 = arith.addf %73, %75 : vector<4x64xf32>
    %77 = arith.addf %76, %14 : vector<4x64xf32>
    %cst_68 = arith.constant 0.000000e+00 : f32
    %78 = vector.broadcast %cst_68 : f32 to vector<4x64xf32>
    %79 = arith.cmpf oge, %77, %78 : vector<4x64xf32>
    %cst_69 = arith.constant 0.00999999977 : f32
    %80 = vector.broadcast %cst_69 : f32 to vector<4x64xf32>
    %81 = arith.mulf %80, %77 : vector<4x64xf32>
    %82 = arith.select %79, %77, %81 : vector<4x64xi1>, vector<4x64xf32>
    %83 = arith.truncf %82 : vector<4x64xf32> to vector<4x64xbf16>
    %c0_70 = arith.constant 0 : index
    %c0_71 = arith.constant 0 : index
    %c0_72 = arith.constant 0 : index
    %84 = vector.load %arg10[%c0_70, %c0_71, %c0_72] : memref<1x4x64xbf16, #tpu.memory_space<vmem>>, vector<1x4x64xbf16>
    %85 = vector.shape_cast %84 : vector<1x4x64xbf16> to vector<4x64xbf16>
    %86 = vector.shape_cast %83 : vector<4x64xbf16> to vector<1x4x64xbf16>
    tpu.vector_store %arg10[%c0_70, %c0_71, %c0_72], %86 {strides = array<i32>} : memref<1x4x64xbf16, #tpu.memory_space<vmem>>, vector<1x4x64xbf16>,
    return
  }
  func.func @transform_0(%arg0: i32) -> (i32, i32, i32) {
    %c0_i32 = arith.constant 0 : i32
    %c0_i32_0 = arith.constant 0 : i32
    %c0_i32_1 = arith.constant 0 : i32
    return %arg0, %c0_i32, %c0_i32_0 : i32, i32, i32
  }
  func.func @transform_1(%arg0: i32) -> (i32, i32) {
    %c0_i32 = arith.constant 0 : i32
    %c0_i32_0 = arith.constant 0 : i32
    %c0_i32_1 = arith.constant 0 : i32
    return %c0_i32, %c0_i32_0 : i32, i32
  }
  func.func @transform_2(%arg0: i32) -> (i32, i32) {
    %c0_i32 = arith.constant 0 : i32
    %c0_i32_0 = arith.constant 0 : i32
    %c0_i32_1 = arith.constant 0 : i32
    return %c0_i32, %c0_i32_0 : i32, i32
  }
  func.func @transform_3(%arg0: i32) -> (i32, i32) {
    %c0_i32 = arith.constant 0 : i32
    %c0_i32_0 = arith.constant 0 : i32
    %c0_i32_1 = arith.constant 0 : i32
    return %c0_i32, %c0_i32_0 : i32, i32
  }
  func.func @transform_4(%arg0: i32) -> (i32, i32) {
    %c0_i32 = arith.constant 0 : i32
    %c0_i32_0 = arith.constant 0 : i32
    %c0_i32_1 = arith.constant 0 : i32
    return %c0_i32, %c0_i32_0 : i32, i32
  }
  func.func @transform_5(%arg0: i32) -> (i32, i32, i32) {
    %c0_i32 = arith.constant 0 : i32
    %c0_i32_0 = arith.constant 0 : i32
    %c0_i32_1 = arith.constant 0 : i32
    %c0_i32_2 = arith.constant 0 : i32
    return %c0_i32, %c0_i32_0, %c0_i32_1 : i32, i32, i32
  }
  func.func @transform_6(%arg0: i32) -> (i32, i32) {
    %c0_i32 = arith.constant 0 : i32
    %c0_i32_0 = arith.constant 0 : i32
    %c0_i32_1 = arith.constant 0 : i32
    return %c0_i32, %c0_i32_0 : i32, i32
  }
  func.func @transform_7(%arg0: i32) -> (i32, i32, i32) {
    %c0_i32 = arith.constant 0 : i32
    %c0_i32_0 = arith.constant 0 : i32
    %c0_i32_1 = arith.constant 0 : i32
    %c0_i32_2 = arith.constant 0 : i32
    return %c0_i32, %c0_i32_0, %c0_i32_1 : i32, i32, i32
  }
  func.func @transform_8(%arg0: i32) -> (i32, i32) {
    %c0_i32 = arith.constant 0 : i32
    %c0_i32_0 = arith.constant 0 : i32
    %c0_i32_1 = arith.constant 0 : i32
    return %c0_i32, %c0_i32_0 : i32, i32
  }
  func.func @transform_9(%arg0: i32) -> (i32, i32, i32) {
    %c0_i32 = arith.constant 0 : i32
    %c0_i32_0 = arith.constant 0 : i32
    %c0_i32_1 = arith.constant 0 : i32
    return %arg0, %c0_i32, %c0_i32_0 : i32, i32, i32
  }
}

module attributes {stable_mosaic.version = 11 : i64} {
  func.func @kernel(%arg0: i32, %arg1: memref<2x16xf32, #tpu.memory_space<vmem>>, %arg2: memref<16x5xf32, #tpu.memory_space<vmem>>, %arg3: memref<1x5xf32, #tpu.memory_space<vmem>>, %arg4: memref<2x5xf32, #tpu.memory_space<vmem>>) attributes {dimension_semantics = [#tpu.dimension_semantics<parallel>], iteration_bounds = array<i64: 1>, scalar_prefetch = 0 : i64, scratch_operands = 0 : i64, tpu.core_type = #tpu.core_type<tc>, window_params = [{transform_indices = @transform_0, window_bounds = array<i64: 2, 16>}, {pipeline_mode = #tpu.pipeline_mode<synchronous>, transform_indices = @transform_1, window_bounds = array<i64: 16, 5>}, {pipeline_mode = #tpu.pipeline_mode<synchronous>, transform_indices = @transform_2, window_bounds = array<i64: 1, 5>}, {transform_indices = @transform_3, window_bounds = array<i64: 2, 5>}]} {
    %c0 = arith.constant 0 : index
    %c0_0 = arith.constant 0 : index
    %0 = vector.load %arg1[%c0, %c0_0] : memref<2x16xf32, #tpu.memory_space<vmem>>, vector<2x16xf32>
    %1 = arith.truncf %0 : vector<2x16xf32> to vector<2x16xbf16>
    %c0_1 = arith.constant 0 : index
    %c0_2 = arith.constant 0 : index
    %2 = vector.load %arg2[%c0_1, %c0_2] : memref<16x5xf32, #tpu.memory_space<vmem>>, vector<16x5xf32>
    %3 = arith.truncf %2 : vector<16x5xf32> to vector<16x5xbf16>
    %cst = arith.constant dense<0.000000e+00> : vector<2x5xf32>
    %4 = tpu.matmul %1, %3, %cst {dimension_numbers = #tpu.dot_dimension_numbers<[1], [0], [0], [1], [0, 0, 1, 1], [], []>} : vector<2x16xbf16>, vector<16x5xbf16>, vector<2x5xf32> -> vector<2x5xf32>
    %c0_3 = arith.constant 0 : index
    %c0_4 = arith.constant 0 : index
    %5 = vector.load %arg3[%c0_3, %c0_4] : memref<1x5xf32, #tpu.memory_space<vmem>>, vector<1x5xf32>
    %6 = vector.broadcast %5 : vector<1x5xf32> to vector<2x5xf32>
    %7 = arith.addf %4, %6 : vector<2x5xf32>
    %c0_5 = arith.constant 0 : index
    %c0_6 = arith.constant 0 : index
    %8 = vector.load %arg4[%c0_5, %c0_6] : memref<2x5xf32, #tpu.memory_space<vmem>>, vector<2x5xf32>
    tpu.vector_store %arg4[%c0_5, %c0_6], %7 {strides = array<i32>} : memref<2x5xf32, #tpu.memory_space<vmem>>, vector<2x5xf32>,
    return
  }
  func.func @transform_0(%arg0: i32) -> (i32, i32) {
    %c0_i32 = arith.constant 0 : i32
    %c0_i32_0 = arith.constant 0 : i32
    return %arg0, %c0_i32 : i32, i32
  }
  func.func @transform_1(%arg0: i32) -> (i32, i32) {
    %c0_i32 = arith.constant 0 : i32
    %c0_i32_0 = arith.constant 0 : i32
    %c0_i32_1 = arith.constant 0 : i32
    return %c0_i32, %c0_i32_0 : i32, i32
  }
  func.func @transform_2(%arg0: i32) -> (i32, i32) {
    %c0_i32 = arith.constant 0 : i32
    %c0_i32_0 = arith.constant 0 : i32
    %c0_i32_1 = arith.constant 0 : i32
    return %c0_i32, %c0_i32_0 : i32, i32
  }
  func.func @transform_3(%arg0: i32) -> (i32, i32) {
    %c0_i32 = arith.constant 0 : i32
    %c0_i32_0 = arith.constant 0 : i32
    return %arg0, %c0_i32 : i32, i32
  }
}

</mosaic_0001>

<bundles_post_ra>
// kernel: fwd.12
= control target key start
LH: loop header
LB: loop body
LE: loop exit
PB: predicated region body
PF: predicated region fallthrough
CT: control target
= control target key end

     0   :  { %s1299_s30 = smov 0   ;;  %s1480_s0 = inlined_call_operand.vmem [shape: bf16[2,8,64], index: 0, kind: input, shape index: {}]   ;;  %s1481_s1 = inlined_call_operand.vmem [shape: f32[1,64], index: 1, kind: input, shape index: {}]   ;;  %s1482_s2 = inlined_call_operand.vmem [shape: f32[1,64], index: 2, kind: input, shape index: {}]   ;;  %s1483_s3 = inlined_call_operand.vmem [shape: bf16[64,64], index: 3, kind: input, shape index: {}]   ;;  %s1484_s4 = inlined_call_operand.vmem [shape: f32[1,64], index: 4, kind: input, shape index: {}]   ;;  %s1485_s5 = inlined_call_operand.vmem [shape: bf16[3,64,64], index: 5, kind: input, shape index: {}]   ;;  %s1486_s6 = inlined_call_operand.vmem [shape: f32[1,64], index: 6, kind: input, shape index: {}]   ;;  %s1487_s7 = inlined_call_operand.vmem [shape: bf16[3,64,64], index: 7, kind: input, shape index: {}]   ;;  %s1488_s8 = inlined_call_operand.vmem [shape: f32[1,64], index: 8, kind: input, shape index: {}]   ;;  %s1489_s9 = inlined_call_operand.vmem [shape: bf16[2,8,64], index: 9, kind: output, shape index: {}]  }
   0x1 LB: > { %s990_s10 = sadd.s32 4294967295, %s1245_s30   ;;  %p994_p0 = scmp.ge.s32.totalorder %s1245_s30, 1  ;;  %s1245_s30 = sphi %s1299_s30, %s19_s30  }
   0x2   : > { %p286_p1 = scmp.lt.s32.totalorder %s1245_s30, 3 }
   0x4   : > { %p287_p2 = pnand %p994_p0, %p286_p1 }
   0x5   : > { %v1211_v0 = vld [vmem:[%s1483_s3] sm:$0xff] (!%p287_p2)   ;;  %v1247_v1 = vmov (!%p287_p2), 0.0   ;;  %v1212_v2 = vld [vmem:[%s1483_s3 + $0x8] sm:$0xff] (!%p287_p2)   ;;  %vm1248_vm0 = vmmov (!%p287_p2), 0   ;;  %p320_p3 = scmp.lt.s32.totalorder (!%p287_p2), %s990_s10, 1  ;;  %vm329_vm1 = vcmask (!%p287_p2), 523264  }
   0x6   : > { %290 = sbr.rel (%p287_p2) target bundleno = 544 (0x220), region = 56  ;;  %1106 = vmatprep.subr.bf16.mxu1 (!%p287_p2), %v1247_v1  ;;  %1130 = vmatprep.subr.bf16.mxu0 (!%p287_p2), %v1247_v1  ;;  %330 = vst.msk [vmem:[#allocation2] sm:$0xff] (!%p287_p2), %vm329_vm1, %v1247_v1  ;;  %vm331_vm2 = vcmask (!%p287_p2), 517120   ;;  %333 = vst.msk [vmem:[#allocation3] sm:$0xff] (!%p287_p2), %vm329_vm1, %v1247_v1  ;;  %v1213_v3 = vld [vmem:[%s1483_s3 + $0x10] sm:$0xff] (!%p287_p2)   ;;  %v1216_v4 = vld [vmem:[%s1485_s5] sm:$0xff] (!%p287_p2)  }
   0x7   : > { %1107 = vmatpush3.bf16.msra.mxu1 (!%p287_p2), %v1211_v0  ;;  %1114 = vmatprep.mubr.msk.bf16.mxu1 (!%p287_p2), %vm1248_vm0, %v1247_v1  ;;  %332 = vst.msk [vmem:[#allocation2 + $0x8] sm:$0x3] (!%p287_p2), %vm331_vm2, %v1247_v1  ;;  %334 = vst.msk [vmem:[#allocation3 + $0x8] sm:$0x3] (!%p287_p2), %vm331_vm2, %v1247_v1  ;;  %v1003_v5 = vld [vmem:[%s1481_s1] ss:$0 sm:$0xff] (!%p287_p2) }
   0x8   : > { %1108 = vmatprep.subr.bf16.mxu1 (!%p287_p2), %v1247_v1  ;;  %1138 = vmatprep.mubr.msk.bf16.mxu0 (!%p287_p2), %vm1248_vm0, %v1247_v1  ;;  %v1214_v6 = vld [vmem:[%s1483_s3 + $0x18] sm:$0xff] (!%p287_p2)   ;;  %v1218_v9 = vld [vmem:[%s1485_s5 + $0x8] sm:$0xff] (!%p287_p2)   ;;  %v1004_v10 = vld [vmem:[%s1482_s2] ss:$0 sm:$0xff] (!%p287_p2)  ;;  %vm935_vm6 = vcmask (!%p287_p2), 519168  }
   0x9   : > { %1131 = vmatpush3.bf16.msra.mxu0 (!%p287_p2), %v1216_v4  ;;  %v1220_v12 = vld [vmem:[%s1485_s5 + $0x10] sm:$0xff] (!%p287_p2)   ;;  %v1222_v15 = vld [vmem:[%s1485_s5 + $0x18] sm:$0xff] (!%p287_p2)   ;;  %v1215_v17 = vld [vmem:[%s1485_s5 + $0x20] sm:$0xff] (!%p287_p2)  }
   0xa   : > { %1132 = vmatprep.subr.bf16.mxu0 (!%p287_p2), %v1247_v1  ;;  %v1217_v20 = vld [vmem:[%s1485_s5 + $0x28] sm:$0xff] (!%p287_p2)   ;;  %v1219_v21 = vld [vmem:[%s1485_s5 + $0x30] sm:$0xff] (!%p287_p2)   ;;  %v1221_v24 = vld [vmem:[%s1485_s5 + $0x38] sm:$0xff] (!%p287_p2)  }
   0xb   : > { %1109 = vmatpush3.bf16.msra.mxu1 (!%p287_p2), %v1212_v2  ;;  %v1223_v27 = vld [vmem:[%s1485_s5 + $0x40] sm:$0xff] (!%p287_p2)   ;;  %v1224_v28 = vld [vmem:[%s1485_s5 + $0x48] sm:$0xff] (!%p287_p2)   ;;  %v1225_v29 = vld [vmem:[%s1485_s5 + $0x50] sm:$0xff] (!%p287_p2)  }
   0xc   : > { %1110 = vmatprep.subr.bf16.mxu1 (!%p287_p2), %v1247_v1  ;;  %v1226_v30 = vld [vmem:[%s1485_s5 + $0x58] sm:$0xff] (!%p287_p2)   ;;  %v1227_v33 = vld [vmem:[%s1487_s7 + $0x20] sm:$0xff] (!%p287_p2)   ;;  %v1228_v34 = vld [vmem:[%s1487_s7 + $0x28] sm:$0xff] (!%p287_p2)  }
   0xd   : > { %s1491_s10 = smov (!%p320_p3, %s990_s10), 1  ;;  %1133 = vmatpush3.bf16.msra.mxu0 %v1218_v9  ;;  %v1229_v35 = vld [vmem:[%s1487_s7 + $0x30] sm:$0xff]   ;;  %v1230_v36 = vld [vmem:[%s1487_s7 + $0x38] sm:$0xff]   ;;  %v1036_v51 = vld [vmem:[%s1486_s6] ss:$0 sm:$0xff] }
   0xe   : > { %s995_s17 = sshll.u32 %s1491_s10, 2  ;;  %1134 = vmatprep.subr.bf16.mxu0 %v1247_v1  ;;  %v1231_v60 = vld [vmem:[%s1487_s7] sm:$0xff]   ;;  %v1232_v62 = vld [vmem:[%s1487_s7 + $0x8] sm:$0xff]   ;;  %v1233_v63 = vld [vmem:[%s1487_s7 + $0x10] sm:$0xff]  }
   0xf   : > { %s323_s22 = scalar_lea.vmem %s1480_s0, %s995_s17  ;;  %1111 = vmatpush3.bf16.msra.mxu1 %v1213_v3  ;;  %v1234_v0 = vld [vmem:[%s1487_s7 + $0x18] sm:$0xff]   ;;  %v1235_v3 = vld [vmem:[%s1487_s7 + $0x40] sm:$0xff]   ;;  %s327_s29 = scalar_lea.vmem %s1489_s9, %s995_s17 }
  0x10   : > { %v335_v7 = vld [vmem:[%s323_s22] sm:$0xf]  ;;  %1112 = vmatprep.subr.bf16.mxu1 %v1247_v1 }
  0x11   : > { %v336_v8 = vunpack.c.l.bf16 %v335_v7  ;;  %1135 = vmatpush3.bf16.msra.mxu0 %v1220_v12  ;;  %v1238_v7 = vld [vmem:[%s1487_s7 + $0x58] sm:$0xff]  }
  0x12   : > { %1136 = vmatprep.subr.bf16.mxu0 %v1247_v1 }
  0x13   : > { %337 = vst.msk [vmem:[#allocation2 + $0x1] sm:$0xff] %vm329_vm1, %v336_v8  ;;  %v429_v11 = vmul.f32 %v1003_v5, %v336_v8  ;;  %1113 = vmatpush3.bf16.msra.mxu1 %v1214_v6  ;;  %v1236_v5 = vld [vmem:[%s1487_s7 + $0x48] sm:$0xff]   ;;  %v1237_v6 = vld [vmem:[%s1487_s7 + $0x50] sm:$0xff]  }
  0x14   : > { %1118 = vmatprep.subr.bf16.mxu1 %v1247_v1 }
  0x15   : > { %v437_v13 = vadd.f32 %v1004_v10, %v429_v11  ;;  %1137 = vmatpush3.bf16.msra.mxu0 %v1222_v15  ;;  %v997_v10 = vld [vmem:[%s1484_s4] ss:$0 sm:$0xff] }
  0x16   : > { %1154 = vmatprep.subr.bf16.mxu0 %v1247_v1 }
  0x17   : > { %vm438_vm3 = vcmp.ge.f32.partialorder %v437_v13, 0.0  ;;  %v439_v14 = vmul.f32 0.01, %v437_v13 }
  0x19   : > { %v440_v16 = vsel %vm438_vm3, %v437_v13, %v439_v14  ;;  %v1068_v13 = vld [vmem:[%s1488_s8] ss:$0 sm:$0xff] }
  0x1a   : > { %v338_v18 = vld [vmem:[#allocation2 + $0x1] sm:$0xff] }
  0x1b   : > { %v339_v19 = vpack.c.bf16 %v338_v18, %v338_v18  ;;  %441 = vst.msk [vmem:[#allocation2 + $0x1] sm:$0xff] %vm329_vm1, %v440_v16 }
  0x1d   : > { %1115 = vmatmul.mubr.msk.bf16.vlgmr.msra.gmra.mrb[0].mxu1 %vm329_vm1, %v339_v19 }
  0x1e   : > { %1119 = vmatpush3.bf16.msra.mxu1 %v1215_v17  ;;  %1126 = vmatprep.mubr.msk.bf16.mxu1 %vm1248_vm0, %v1247_v1 }
  0x1f   : > { %1120 = vmatprep.subr.bf16.mxu1 %v1247_v1 }
  0x22   : > { %1121 = vmatpush3.bf16.msra.mxu1 %v1217_v20  ;;  %v442_v22 = vld [vmem:[#allocation2] sm:$0xff] }
  0x23   : > { %1122 = vmatprep.subr.bf16.mxu1 %v1247_v1  ;;  %v443_v23 = vpack.c.bf16 %v442_v22, %v442_v22  ;;  %v452_v25 = vld [vmem:[#allocation2 + $0x1] sm:$0xff] }
  0x24   : > { %v453_v26 = vpack.c.bf16 %v452_v25, %v452_v25  ;;  %v597_v31 = vld [vmem:[#allocation2 + $0x2] sm:$0xff] }
  0x25   : > { %1139 = vmatmul.mubr.msk.bf16.vlgmr.msra.gmra.mrb[0].mxu0 %vm329_vm1, %v443_v23  ;;  %v598_v32 = vpack.c.bf16 %v597_v31, %v597_v31 }
  0x26   : > { %1123 = vmatpush3.bf16.msra.mxu1 %v1219_v21  ;;  %1162 = vmatprep.mubr.msk.bf16.mxu0 %vm1248_vm0, %v1247_v1 }
  0x27   : > { %1124 = vmatprep.subr.bf16.mxu1 %v1247_v1  ;;  %1155 = vmatpush3.bf16.msra.mxu0 %v1227_v33 }
  0x28   : > { %1156 = vmatprep.subr.bf16.mxu0 %v1247_v1 }
  0x2a   : > { %1125 = vmatpush3.bf16.msra.mxu1 %v1221_v24 }
  0x2b   : > { %1142 = vmatprep.subr.bf16.mxu1 %v1247_v1  ;;  %1157 = vmatpush3.bf16.msra.mxu0 %v1228_v34 }
  0x2c   : > { %1158 = vmatprep.subr.bf16.mxu0 %v1247_v1 }
  0x2d   : > { %1127 = vmatmul.mubr.msk.bf16.vlgmr.msra.gmra.mrb[4].mxu1 %vm329_vm1, %v453_v26 }
  0x2e   : > { %1143 = vmatpush3.bf16.msra.mxu1 %v1223_v27  ;;  %1150 = vmatprep.mubr.msk.bf16.mxu1 %vm1248_vm0, %v1247_v1 }
  0x2f   : > { %1144 = vmatprep.subr.bf16.mxu1 %v1247_v1  ;;  %1159 = vmatpush3.bf16.msra.mxu0 %v1229_v35 }
  0x30   : > { %1160 = vmatprep.subr.bf16.mxu0 %v1247_v1 }
  0x32   : > { %1145 = vmatpush3.bf16.msra.mxu1 %v1224_v28 }
  0x33   : > { %1146 = vmatprep.subr.bf16.mxu1 %v1247_v1  ;;  %1161 = vmatpush3.bf16.msra.mxu0 %v1230_v36 }
  0x34   : > { %1166 = vmatprep.subr.bf16.mxu0 %v1247_v1 }
  0x36   : > { %1147 = vmatpush3.bf16.msra.mxu1 %v1225_v29 }
  0x37   : > { %1148 = vmatprep.subr.bf16.mxu1 %v1247_v1 }
  0x3a   : > { %1149 = vmatpush3.bf16.msra.mxu1 %v1226_v30 }
  0x3d   : > { %1151 = vmatmul.mubr.msk.bf16.vlgmr.msra.gmra.mrb[8].mxu1 %vm329_vm1, %v598_v32 }
  0xf0   : > { %v416_v37 = vpop.f32.mrb[0].mxu1 }
  0xf1   : > { %v1116_v38 = vpop.f32.mrb[1].mxu1  ;;  %v417_v11 = vadd.f32 %v997_v10, %v416_v37 }
  0xf2   : > { %v419_v39 = vpop.f32.mrb[2].mxu1 }
  0xf3   : > { %v1117_v40 = vpop.f32.mrb[3].mxu1 }
  0xf8   : > { %v591_v41 = vpop.f32.mrb[0].mxu0 }
  0xf9   : > { %v1140_v42 = vpop.f32.mrb[1].mxu0 }
  0xfa   : > { %v594_v43 = vpop.f32.mrb[2].mxu0 }
  0xfb   : > { %v1141_v44 = vpop.f32.mrb[3].mxu0 }
 0x100   : > { %v524_v45 = vpop.f32.mrb[4].mxu1 }
 0x101   : > { %v1128_v46 = vpop.f32.mrb[5].mxu1  ;;  %v592_v47 = vadd.f32 %v591_v41, %v524_v45 }
 0x102   : > { %v527_v48 = vpop.f32.mrb[6].mxu1 }
 0x103   : > { %v1129_v49 = vpop.f32.mrb[7].mxu1 }
 0x110   : > { %v669_v50 = vpop.f32.mrb[8].mxu1 }
 0x111   : > { %v675_v52 = vadd.f32 %v669_v50, %v592_v47  ;;  %v1152_v53 = vpop.f32.mrb[9].mxu1 }
 0x112   : > { %v672_v54 = vpop.f32.mrb[10].mxu1 }
 0x113   : > { %v683_v55 = vadd.f32 %v1036_v51, %v675_v52  ;;  %v1153_v56 = vpop.f32.mrb[11].mxu1 }
 0x115   : > { %vm684_vm4 = vcmp.ge.f32.partialorder %v683_v55, 0.0  ;;  %v685_v57 = vmul.f32 0.01, %v683_v55 }
 0x117   : > { %v686_v58 = vsel %vm684_vm4, %v683_v55, %v685_v57 }
 0x118   : > { %687 = vst.msk [vmem:[#allocation3 + $0x1] sm:$0xff] %vm329_vm1, %v686_v58 }
 0x11f   : > { %v698_v59 = vld [vmem:[#allocation3 + $0x1] sm:$0xff] }
 0x120   : > { %v699_v61 = vpack.c.bf16 %v698_v59, %v698_v59  ;;  %v688_v2 = vld [vmem:[#allocation3] sm:$0xff] }
 0x121   : > { %v689_v4 = vpack.c.bf16 %v688_v2, %v688_v2  ;;  %v843_v8 = vld [vmem:[#allocation3 + $0x2] sm:$0xff] }
 0x122   : > { %1163 = vmatmul.mubr.msk.bf16.vlgmr.msra.gmra.mrb[4].mxu0 %vm329_vm1, %v699_v61  ;;  %v844_v9 = vpack.c.bf16 %v843_v8, %v843_v8 }
 0x123   : > { %1167 = vmatpush3.bf16.msra.mxu0 %v1231_v60  ;;  %1174 = vmatprep.mubr.msk.bf16.mxu0 %vm1248_vm0, %v1247_v1 }
 0x124   : > { %1168 = vmatprep.subr.bf16.mxu0 %v1247_v1 }
 0x127   : > { %1169 = vmatpush3.bf16.msra.mxu0 %v1232_v62 }
 0x128   : > { %1170 = vmatprep.subr.bf16.mxu0 %v1247_v1 }
 0x12b   : > { %1171 = vmatpush3.bf16.msra.mxu0 %v1233_v63 }
 0x12c   : > { %1172 = vmatprep.subr.bf16.mxu0 %v1247_v1 }
 0x12f   : > { %1173 = vmatpush3.bf16.msra.mxu0 %v1234_v0 }
 0x130   : > { %1178 = vmatprep.subr.bf16.mxu0 %v1247_v1 }
 0x132   : > { %1175 = vmatmul.mubr.msk.bf16.vlgmr.msra.gmra.mrb[4].mxu0 %vm329_vm1, %v689_v4 }
 0x133   : > { %1179 = vmatpush3.bf16.msra.mxu0 %v1235_v3  ;;  %1186 = vmatprep.mubr.msk.bf16.mxu0 %vm1248_vm0, %v1247_v1 }
 0x134   : > { %1180 = vmatprep.subr.bf16.mxu0 %v1247_v1 }
 0x137   : > { %1181 = vmatpush3.bf16.msra.mxu0 %v1236_v5 }
 0x138   : > { %1182 = vmatprep.subr.bf16.mxu0 %v1247_v1 }
 0x13b   : > { %1183 = vmatpush3.bf16.msra.mxu0 %v1237_v6 }
 0x13c   : > { %1184 = vmatprep.subr.bf16.mxu0 %v1247_v1 }
 0x13f   : > { %1185 = vmatpush3.bf16.msra.mxu0 %v1238_v7 }
 0x142   : > { %1187 = vmatmul.mubr.msk.bf16.vlgmr.msra.gmra.mrb[4].mxu0 %vm329_vm1, %v844_v9 }
 0x215   : > { %v915_v12 = vpop.f32.mrb[4].mxu0 }
 0x216   : > { %v1191_v14 = vadd.f32 %v915_v12, %v417_v11  ;;  %v1188_v15 = vpop.f32.mrb[5].mxu0 }
 0x217   : > { %v918_v16 = vpop.f32.mrb[6].mxu0 }
 0x218   : > { %v1192_v1 = vadd.f32 %v1191_v14, %v1068_v13  ;;  %v1189_v17 = vpop.f32.mrb[7].mxu0 }
 0x21a   : > { %vm931_vm5 = vcmp.ge.f32.partialorder %v1192_v1, 0.0  ;;  %v932_v18 = vmul.f32 0.01, %v1192_v1 }
 0x21c   : > { %v933_v19 = vsel %vm931_vm5, %v1192_v1, %v932_v18 }
 0x21d   : > { %v934_v20 = vpack.c.bf16 %v933_v19, %v933_v19 }
 0x21f   : > { %936 = vst.msk [vmem:[%s327_s29] sm:$0xf] %vm935_vm6, %v934_v20 }
 0x220 PF: > { %s19_s30 = sadd.s32 1, %s1245_s30  }
 0x221   : > { %p16_p4 = scmp.ge.s32.totalorder %s19_s30, 4  }
 0x223   :  { %18 = sbr.rel (!%p16_p4) target bundleno = 1 (0x1), region = 90 }

// kernel: fwd.14
= control target key start
LH: loop header
LB: loop body
LE: loop exit
PB: predicated region body
PF: predicated region fallthrough
CT: control target
= control target key end

     0   :  { %s1301_s30 = smov 0   ;;  %s1478_s0 = inlined_call_operand.vmem [shape: bf16[2,8,64], index: 0, kind: input, shape index: {}]   ;;  %s1479_s1 = inlined_call_operand.vmem [shape: f32[1,64], index: 1, kind: input, shape index: {}]   ;;  %s1480_s2 = inlined_call_operand.vmem [shape: f32[1,64], index: 2, kind: input, shape index: {}]   ;;  %s1481_s3 = inlined_call_operand.vmem [shape: bf16[64,64], index: 3, kind: input, shape index: {}]   ;;  %s1482_s4 = inlined_call_operand.vmem [shape: f32[1,64], index: 4, kind: input, shape index: {}]   ;;  %s1483_s5 = inlined_call_operand.vmem [shape: bf16[3,64,64], index: 5, kind: input, shape index: {}]   ;;  %s1484_s6 = inlined_call_operand.vmem [shape: f32[1,64], index: 6, kind: input, shape index: {}]   ;;  %s1485_s7 = inlined_call_operand.vmem [shape: bf16[3,64,64], index: 7, kind: input, shape index: {}]   ;;  %s1486_s8 = inlined_call_operand.vmem [shape: f32[1,64], index: 8, kind: input, shape index: {}]   ;;  %s1487_s9 = inlined_call_operand.vmem [shape: bf16[2,4,64], index: 9, kind: output, shape index: {}]  }
   0x1 LB: > { %s992_s10 = sadd.s32 4294967295, %s1247_s30   ;;  %p996_p0 = scmp.ge.s32.totalorder %s1247_s30, 1  ;;  %s1247_s30 = sphi %s1301_s30, %s19_s30  }
   0x2   : > { %p286_p1 = scmp.lt.s32.totalorder %s1247_s30, 3 }
   0x4   : > { %p287_p2 = pnand %p996_p0, %p286_p1 }
   0x5   : > { %v1213_v0 = vld [vmem:[%s1481_s3] sm:$0xff] (!%p287_p2)   ;;  %v1249_v1 = vmov (!%p287_p2), 0.0   ;;  %v1214_v2 = vld [vmem:[%s1481_s3 + $0x8] sm:$0xff] (!%p287_p2)   ;;  %vm1250_vm0 = vmmov (!%p287_p2), 0   ;;  %p320_p3 = scmp.lt.s32.totalorder (!%p287_p2), %s992_s10, 1  ;;  %vm329_vm1 = vcmask (!%p287_p2), 523264  }
   0x6   : > { %290 = sbr.rel (%p287_p2) target bundleno = 544 (0x220), region = 56  ;;  %1108 = vmatprep.subr.bf16.mxu1 (!%p287_p2), %v1249_v1  ;;  %1132 = vmatprep.subr.bf16.mxu0 (!%p287_p2), %v1249_v1  ;;  %330 = vst.msk [vmem:[#allocation2] sm:$0xff] (!%p287_p2), %vm329_vm1, %v1249_v1  ;;  %vm331_vm2 = vcmask (!%p287_p2), 517120   ;;  %v1215_v3 = vld [vmem:[%s1481_s3 + $0x10] sm:$0xff] (!%p287_p2)   ;;  %v1218_v4 = vld [vmem:[%s1483_s5] sm:$0xff] (!%p287_p2)   ;;  %v1216_v6 = vld [vmem:[%s1481_s3 + $0x18] sm:$0xff] (!%p287_p2)  }
   0x7   : > { %1109 = vmatpush3.bf16.msra.mxu1 (!%p287_p2), %v1213_v0  ;;  %1116 = vmatprep.mubr.msk.bf16.mxu1 (!%p287_p2), %vm1250_vm0, %v1249_v1  ;;  %332 = vst.msk [vmem:[#allocation2 + $0x8] sm:$0x3] (!%p287_p2), %vm331_vm2, %v1249_v1  ;;  %v1005_v5 = vld [vmem:[%s1479_s1] ss:$0 sm:$0xff] (!%p287_p2)  ;;  %v1220_v9 = vld [vmem:[%s1483_s5 + $0x8] sm:$0xff] (!%p287_p2)   ;;  %v1222_v12 = vld [vmem:[%s1483_s5 + $0x10] sm:$0xff] (!%p287_p2)  }
   0x8   : > { %1110 = vmatprep.subr.bf16.mxu1 (!%p287_p2), %v1249_v1  ;;  %1140 = vmatprep.mubr.msk.bf16.mxu0 (!%p287_p2), %vm1250_vm0, %v1249_v1  ;;  %v1006_v10 = vld [vmem:[%s1480_s2] ss:$0 sm:$0xff] (!%p287_p2)  ;;  %v1224_v15 = vld [vmem:[%s1483_s5 + $0x18] sm:$0xff] (!%p287_p2)   ;;  %v1219_v20 = vld [vmem:[%s1483_s5 + $0x28] sm:$0xff] (!%p287_p2)   ;;  %vm333_vm4 = vcmask (!%p287_p2), 521216   ;;  %vm689_vm6 = vcmask (!%p287_p2), 519168  }
   0x9   : > { %1133 = vmatpush3.bf16.msra.mxu0 (!%p287_p2), %v1218_v4  ;;  %v1217_v18 = vld [vmem:[%s1483_s5 + $0x20] sm:$0xff] (!%p287_p2)   ;;  %v1221_v21 = vld [vmem:[%s1483_s5 + $0x30] sm:$0xff] (!%p287_p2)   ;;  %v1223_v24 = vld [vmem:[%s1483_s5 + $0x38] sm:$0xff] (!%p287_p2)   ;;  %334 = vst.msk [vmem:[#allocation3] sm:$0x3f] (!%p287_p2), %vm333_vm4, %v1249_v1 }
   0xa   : > { %1134 = vmatprep.subr.bf16.mxu0 (!%p287_p2), %v1249_v1  ;;  %v1225_v27 = vld [vmem:[%s1483_s5 + $0x40] sm:$0xff] (!%p287_p2)   ;;  %v1226_v28 = vld [vmem:[%s1483_s5 + $0x48] sm:$0xff] (!%p287_p2)   ;;  %v1227_v29 = vld [vmem:[%s1483_s5 + $0x50] sm:$0xff] (!%p287_p2)  }
   0xb   : > { %1111 = vmatpush3.bf16.msra.mxu1 (!%p287_p2), %v1214_v2  ;;  %v1228_v30 = vld [vmem:[%s1483_s5 + $0x58] sm:$0xff] (!%p287_p2)   ;;  %v1229_v33 = vld [vmem:[%s1485_s7 + $0x20] sm:$0xff] (!%p287_p2)   ;;  %v1230_v34 = vld [vmem:[%s1485_s7 + $0x28] sm:$0xff] (!%p287_p2)  }
   0xc   : > { %1112 = vmatprep.subr.bf16.mxu1 (!%p287_p2), %v1249_v1  ;;  %v1231_v35 = vld [vmem:[%s1485_s7 + $0x30] sm:$0xff] (!%p287_p2)   ;;  %v1232_v36 = vld [vmem:[%s1485_s7 + $0x38] sm:$0xff] (!%p287_p2)   ;;  %v1038_v51 = vld [vmem:[%s1484_s6] ss:$0 sm:$0xff] (!%p287_p2) }
   0xd   : > { %s1489_s10 = smov (!%p320_p3, %s992_s10), 1  ;;  %1135 = vmatpush3.bf16.msra.mxu0 %v1220_v9  ;;  %v1233_v60 = vld [vmem:[%s1485_s7] sm:$0xff]   ;;  %v1234_v62 = vld [vmem:[%s1485_s7 + $0x8] sm:$0xff]   ;;  %v1235_v63 = vld [vmem:[%s1485_s7 + $0x10] sm:$0xff]  }
   0xe   : > { %s997_s17 = sshll.u32 %s1489_s10, 2  ;;  %1136 = vmatprep.subr.bf16.mxu0 %v1249_v1  ;;  %v1236_v0 = vld [vmem:[%s1485_s7 + $0x18] sm:$0xff]   ;;  %s998_s24 = sshll.u32 %s1489_s10, 1 }
   0xf   : > { %s323_s22 = scalar_lea.vmem %s1478_s0, %s997_s17  ;;  %1113 = vmatpush3.bf16.msra.mxu1 %v1215_v3  ;;  %v1237_v3 = vld [vmem:[%s1485_s7 + $0x40] sm:$0xff]   ;;  %s327_s27 = scalar_lea.vmem %s1487_s9, %s998_s24 }
  0x10   : > { %v335_v7 = vld [vmem:[%s323_s22] sm:$0xf]  ;;  %1114 = vmatprep.subr.bf16.mxu1 %v1249_v1 }
  0x11   : > { %v336_v8 = vunpack.c.l.bf16 %v335_v7  ;;  %1137 = vmatpush3.bf16.msra.mxu0 %v1222_v12  ;;  %v1240_v7 = vld [vmem:[%s1485_s7 + $0x58] sm:$0xff]  }
  0x12   : > { %1138 = vmatprep.subr.bf16.mxu0 %v1249_v1 }
  0x13   : > { %337 = vst.msk [vmem:[#allocation2 + $0x1] sm:$0xff] %vm329_vm1, %v336_v8  ;;  %v430_v11 = vmul.f32 %v1005_v5, %v336_v8  ;;  %1115 = vmatpush3.bf16.msra.mxu1 %v1216_v6  ;;  %v1238_v5 = vld [vmem:[%s1485_s7 + $0x48] sm:$0xff]   ;;  %v1239_v6 = vld [vmem:[%s1485_s7 + $0x50] sm:$0xff]  }
  0x14   : > { %1120 = vmatprep.subr.bf16.mxu1 %v1249_v1 }
  0x15   : > { %v438_v13 = vadd.f32 %v1006_v10, %v430_v11  ;;  %1139 = vmatpush3.bf16.msra.mxu0 %v1224_v15  ;;  %v999_v10 = vld [vmem:[%s1482_s4] ss:$0 sm:$0xff] }
  0x16   : > { %1156 = vmatprep.subr.bf16.mxu0 %v1249_v1 }
  0x17   : > { %vm439_vm3 = vcmp.ge.f32.partialorder %v438_v13, 0.0  ;;  %v440_v14 = vmul.f32 0.01, %v438_v13 }
  0x19   : > { %v441_v16 = vsel %vm439_vm3, %v438_v13, %v440_v14  ;;  %v1070_v13 = vld [vmem:[%s1486_s8] ss:$0 sm:$0xff] }
  0x1a   : > { %v339_v17 = vld [vmem:[#allocation2 + $0x1] ss:$2 sm:$0xf] }
  0x1b   : > { %v340_v19 = vpack.c.bf16 %v339_v17, %v339_v17  ;;  %442 = vst.msk [vmem:[#allocation2 + $0x1] sm:$0xff] %vm329_vm1, %v441_v16 }
  0x1d   : > { %1117 = vmatmul.mubr.msk.bf16.vlgmr.msra.gmra.mrb[0].mxu1 %vm329_vm1, %v340_v19 }
  0x1e   : > { %1121 = vmatpush3.bf16.msra.mxu1 %v1217_v18  ;;  %1128 = vmatprep.mubr.msk.bf16.mxu1 %vm1250_vm0, %v1249_v1 }
  0x1f   : > { %1122 = vmatprep.subr.bf16.mxu1 %v1249_v1 }
  0x22   : > { %1123 = vmatpush3.bf16.msra.mxu1 %v1219_v20  ;;  %v443_v22 = vld [vmem:[#allocation2] ss:$2 sm:$0xf]  ;;  %v453_v25 = vld [vmem:[#allocation2 + $0x1] ss:$2 sm:$0xf] }
  0x23   : > { %1124 = vmatprep.subr.bf16.mxu1 %v1249_v1  ;;  %v444_v23 = vpack.c.bf16 %v443_v22, %v443_v22  ;;  %v454_v26 = vpack.c.bf16 %v453_v25, %v453_v25  ;;  %v599_v31 = vld [vmem:[#allocation2 + $0x2] ss:$2 sm:$0xf] }
  0x24   : > { %v600_v32 = vpack.c.bf16 %v599_v31, %v599_v31 }
  0x25   : > { %1141 = vmatmul.mubr.msk.bf16.vlgmr.msra.gmra.mrb[0].mxu0 %vm329_vm1, %v444_v23 }
  0x26   : > { %1125 = vmatpush3.bf16.msra.mxu1 %v1221_v21  ;;  %1164 = vmatprep.mubr.msk.bf16.mxu0 %vm1250_vm0, %v1249_v1 }
  0x27   : > { %1126 = vmatprep.subr.bf16.mxu1 %v1249_v1  ;;  %1157 = vmatpush3.bf16.msra.mxu0 %v1229_v33 }
  0x28   : > { %1158 = vmatprep.subr.bf16.mxu0 %v1249_v1 }
  0x2a   : > { %1127 = vmatpush3.bf16.msra.mxu1 %v1223_v24 }
  0x2b   : > { %1144 = vmatprep.subr.bf16.mxu1 %v1249_v1  ;;  %1159 = vmatpush3.bf16.msra.mxu0 %v1230_v34 }
  0x2c   : > { %1160 = vmatprep.subr.bf16.mxu0 %v1249_v1 }
  0x2d   : > { %1129 = vmatmul.mubr.msk.bf16.vlgmr.msra.gmra.mrb[4].mxu1 %vm329_vm1, %v454_v26 }
  0x2e   : > { %1145 = vmatpush3.bf16.msra.mxu1 %v1225_v27  ;;  %1152 = vmatprep.mubr.msk.bf16.mxu1 %vm1250_vm0, %v1249_v1 }
  0x2f   : > { %1146 = vmatprep.subr.bf16.mxu1 %v1249_v1  ;;  %1161 = vmatpush3.bf16.msra.mxu0 %v1231_v35 }
  0x30   : > { %1162 = vmatprep.subr.bf16.mxu0 %v1249_v1 }
  0x32   : > { %1147 = vmatpush3.bf16.msra.mxu1 %v1226_v28 }
  0x33   : > { %1148 = vmatprep.subr.bf16.mxu1 %v1249_v1  ;;  %1163 = vmatpush3.bf16.msra.mxu0 %v1232_v36 }
  0x34   : > { %1168 = vmatprep.subr.bf16.mxu0 %v1249_v1 }
  0x36   : > { %1149 = vmatpush3.bf16.msra.mxu1 %v1227_v29 }
  0x37   : > { %1150 = vmatprep.subr.bf16.mxu1 %v1249_v1 }
  0x3a   : > { %1151 = vmatpush3.bf16.msra.mxu1 %v1228_v30 }
  0x3d   : > { %1153 = vmatmul.mubr.msk.bf16.vlgmr.msra.gmra.mrb[8].mxu1 %vm329_vm1, %v600_v32 }
  0xf0   : > { %v417_v37 = vpop.f32.mrb[0].mxu1 }
  0xf1   : > { %v1118_v38 = vpop.f32.mrb[1].mxu1  ;;  %v418_v11 = vadd.f32 %v999_v10, %v417_v37 }
  0xf2   : > { %v420_v39 = vpop.f32.mrb[2].mxu1 }
  0xf3   : > { %v1119_v40 = vpop.f32.mrb[3].mxu1 }
  0xf8   : > { %v592_v41 = vpop.f32.mrb[0].mxu0 }
  0xf9   : > { %v1142_v42 = vpop.f32.mrb[1].mxu0 }
  0xfa   : > { %v595_v43 = vpop.f32.mrb[2].mxu0 }
  0xfb   : > { %v1143_v44 = vpop.f32.mrb[3].mxu0 }
 0x100   : > { %v525_v45 = vpop.f32.mrb[4].mxu1 }
 0x101   : > { %v1130_v46 = vpop.f32.mrb[5].mxu1  ;;  %v593_v47 = vadd.f32 %v592_v41, %v525_v45 }
 0x102   : > { %v528_v48 = vpop.f32.mrb[6].mxu1 }
 0x103   : > { %v1131_v49 = vpop.f32.mrb[7].mxu1 }
 0x110   : > { %v671_v50 = vpop.f32.mrb[8].mxu1 }
 0x111   : > { %v677_v52 = vadd.f32 %v671_v50, %v593_v47  ;;  %v1154_v53 = vpop.f32.mrb[9].mxu1 }
 0x112   : > { %v674_v54 = vpop.f32.mrb[10].mxu1 }
 0x113   : > { %v685_v55 = vadd.f32 %v1038_v51, %v677_v52  ;;  %v1155_v56 = vpop.f32.mrb[11].mxu1 }
 0x115   : > { %vm686_vm5 = vcmp.ge.f32.partialorder %v685_v55, 0.0  ;;  %v687_v57 = vmul.f32 0.01, %v685_v55 }
 0x117   : > { %v688_v58 = vsel %vm686_vm5, %v685_v55, %v687_v57 }
 0x118   : > { %690 = vst.msk [vmem:[#allocation3 + $0x1] sm:$0xf] %vm689_vm6, %v688_v58 }
 0x11f   : > { %v701_v59 = vld [vmem:[#allocation3 + $0x1] sm:$0xf] }
 0x120   : > { %v702_v61 = vpack.c.bf16 %v701_v59, %v701_v59  ;;  %v691_v2 = vld [vmem:[#allocation3] sm:$0xf] }
 0x121   : > { %v692_v4 = vpack.c.bf16 %v691_v2, %v691_v2  ;;  %v846_v8 = vld [vmem:[#allocation3 + $0x2] sm:$0xf] }
 0x122   : > { %1165 = vmatmul.mubr.msk.bf16.vlgmr.msra.gmra.mrb[4].mxu0 %vm329_vm1, %v702_v61  ;;  %v847_v9 = vpack.c.bf16 %v846_v8, %v846_v8 }
 0x123   : > { %1169 = vmatpush3.bf16.msra.mxu0 %v1233_v60  ;;  %1176 = vmatprep.mubr.msk.bf16.mxu0 %vm1250_vm0, %v1249_v1 }
 0x124   : > { %1170 = vmatprep.subr.bf16.mxu0 %v1249_v1 }
 0x127   : > { %1171 = vmatpush3.bf16.msra.mxu0 %v1234_v62 }
 0x128   : > { %1172 = vmatprep.subr.bf16.mxu0 %v1249_v1 }
 0x12b   : > { %1173 = vmatpush3.bf16.msra.mxu0 %v1235_v63 }
 0x12c   : > { %1174 = vmatprep.subr.bf16.mxu0 %v1249_v1 }
 0x12f   : > { %1175 = vmatpush3.bf16.msra.mxu0 %v1236_v0 }
 0x130   : > { %1180 = vmatprep.subr.bf16.mxu0 %v1249_v1 }
 0x132   : > { %1177 = vmatmul.mubr.msk.bf16.vlgmr.msra.gmra.mrb[4].mxu0 %vm329_vm1, %v692_v4 }
 0x133   : > { %1181 = vmatpush3.bf16.msra.mxu0 %v1237_v3  ;;  %1188 = vmatprep.mubr.msk.bf16.mxu0 %vm1250_vm0, %v1249_v1 }
 0x134   : > { %1182 = vmatprep.subr.bf16.mxu0 %v1249_v1 }
 0x137   : > { %1183 = vmatpush3.bf16.msra.mxu0 %v1238_v5 }
 0x138   : > { %1184 = vmatprep.subr.bf16.mxu0 %v1249_v1 }
 0x13b   : > { %1185 = vmatpush3.bf16.msra.mxu0 %v1239_v6 }
 0x13c   : > { %1186 = vmatprep.subr.bf16.mxu0 %v1249_v1 }
 0x13f   : > { %1187 = vmatpush3.bf16.msra.mxu0 %v1240_v7 }
 0x142   : > { %1189 = vmatmul.mubr.msk.bf16.vlgmr.msra.gmra.mrb[4].mxu0 %vm329_vm1, %v847_v9 }
 0x215   : > { %v918_v12 = vpop.f32.mrb[4].mxu0 }
 0x216   : > { %v1193_v14 = vadd.f32 %v918_v12, %v418_v11  ;;  %v1190_v15 = vpop.f32.mrb[5].mxu0 }
 0x217   : > { %v921_v16 = vpop.f32.mrb[6].mxu0 }
 0x218   : > { %v1194_v17 = vadd.f32 %v1193_v14, %v1070_v13  ;;  %v1191_v1 = vpop.f32.mrb[7].mxu0 }
 0x21a   : > { %vm934_vm7 = vcmp.ge.f32.partialorder %v1194_v17, 0.0  ;;  %v935_v18 = vmul.f32 0.01, %v1194_v17 }
 0x21c   : > { %v936_v19 = vsel %vm934_vm7, %v1194_v17, %v935_v18 }
 0x21d   : > { %v937_v20 = vpack.c.bf16 %v936_v19, %v936_v19 }
 0x21f   : > { %938 = vst.msk [vmem:[%s327_s27] sm:$0x3] %vm331_vm2, %v937_v20 }
 0x220 PF: > { %s19_s30 = sadd.s32 1, %s1247_s30  }
 0x221   : > { %p16_p4 = scmp.ge.s32.totalorder %s19_s30, 4  }
 0x223   :  { %18 = sbr.rel (!%p16_p4) target bundleno = 1 (0x1), region = 92 }

// kernel: fwd.10
= control target key start
LH: loop header
LB: loop body
LE: loop exit
PB: predicated region body
PF: predicated region fallthrough
CT: control target
= control target key end

     0   :  { %14 = vsyncpa [#allocation5], 0  ;;  %s1975_s0 = inlined_call_operand.vmem [shape: f32[2,16,16], index: 0, kind: input, shape index: {}]   ;;  %s1976_s1 = inlined_call_operand.hbm [shape: f32[1,16], index: 1, kind: input, shape index: {}]   ;;  %s1977_s2 = inlined_call_operand.hbm [shape: f32[1,16], index: 2, kind: input, shape index: {}]   ;;  %s1978_s3 = inlined_call_operand.hbm [shape: bf16[16,64], index: 3, kind: input, shape index: {}]   ;;  %s1979_s4 = inlined_call_operand.hbm [shape: f32[1,64], index: 4, kind: input, shape index: {}]   ;;  %s1980_s5 = inlined_call_operand.hbm [shape: bf16[3,16,64], index: 5, kind: input, shape index: {}]   ;;  %s1981_s6 = inlined_call_operand.hbm [shape: f32[1,64], index: 6, kind: input, shape index: {}]   ;;  %s1982_s7 = inlined_call_operand.hbm [shape: bf16[3,64,64], index: 7, kind: input, shape index: {}]   ;;  %s1983_s8 = inlined_call_operand.hbm [shape: f32[1,64], index: 8, kind: input, shape index: {}]   ;;  %s1984_s9 = inlined_call_operand.vmem [shape: bf16[2,8,64], index: 9, kind: output, shape index: {}]  }
   0x1   :  { %15 = vsyncpa [#allocation7], 0 }
   0x2   :  { %16 = vsyncpa [#allocation10], 0 }
   0x3   :  { %17 = vsyncpa [#allocation13], 0 }
   0x4   :  { %18 = vsyncpa [#allocation16], 0  ;;  %s1667_s30 = smov 0  }
   0x5 LB: > { %s1605_s10 = smov [#allocation6]   ;;  %s1673_s12 = sadd.s32 4294967295, %s1603_s30   ;;  %s1603_s30 = sphi %s1667_s30, %s24_s30  }
   0x6   : > { %s273_s11 = sshll.u32 %s1605_s10, 4  ;;  %p1097_p0 = scmp.ge.s32.totalorder %s1603_s30, 1  ;;  %s1678_s11 = int_to_ptr.vmem [resolvable:$true] %s273_s11 }
   0x7   : > { %p249_p1 = scmp.lt.s32.totalorder %s1603_s30, 3  ;;  %p1985_p2 = scmp.eq.s32.totalorder %s1673_s12, 0 }
   0x8   : > { %s1606_s14 = smov [#allocation9]   ;;  %s1607_s16 = smov [#allocation12]  }
   0x9   : > { %p1680_p3 = pnand %p1097_p0, %p249_p1  ;;  %s297_s15 = sshll.u32 %s1606_s14, 4  ;;  %s1686_s15 = int_to_ptr.vmem [resolvable:$true] %s297_s15 }
   0xa   : > { %s321_s17 = sshll.u32 %s1607_s16, 4  ;;  %s1608_s19 = smov [#allocation4]   ;;  %s1694_s17 = int_to_ptr.vmem [resolvable:$true] %s321_s17 }
   0xb   : > { %s1987_s13 = scalar_select %p1680_p3, 1, 0 }
   0xc   : > { %p1276_p4 = pneg %p1680_p3  ;;  %s262_s20 = sshll.u32 %s1608_s19, 4  ;;  %s1696_s20 = int_to_ptr.vmem [resolvable:$true] %s262_s20 }
   0xd   : > { %s1353_s23 = scalar_lea.hbm %s1977_s2, 16 }
   0xe   : > { %p1690_p5 = pnand %p1985_p2, %p1276_p4  ;;  %p1354_p6 = scmp.ne.s32.totalorder %s1977_s2, %s1353_s23 }
   0xf   : > { %p1360_p10 = scmp.lt.u32.totalorder %s1353_s23, %s1977_s2 }
  0x10   : > { %p1706_p7 = pneg %p1690_p5 }
  0x12   : > { %p1356_p8 = pnand %p1706_p7, %p1354_p6 }
  0x14   : > { %p1357_p9 = pneg %p1356_p8 }
  0x16   : > { %p1362_p11 = pnand %p1360_p10, %p1357_p9 }
  0x18   : > { %1365 = shalt.err (!%p1362_p11)
}
  0x19   : > { %s1366_s29 = scalar_lea.vmem %s1678_s11, 16  ;;  %s1373_s10 = scalar_lea.vmem %s1678_s11, 32 }
  0x1a   : > { %p1367_p12 = scmp.ne.s32.totalorder %s1678_s11, %s1366_s29  ;;  %p1374_p1 = scmp.lt.s32.totalorder %s1678_s11, %s1678_s11 }
  0x1b   : > { %p1375_p4 = scmp.lt.s32.totalorder %s1373_s10, %s1366_s29 }
  0x1c   : > { %p1369_p13 = pnand %p1367_p12, %p1706_p7 }
  0x1d   : > { %p1376_p6 = por %p1375_p4, %p1374_p1 }
  0x1e   : > { %p1370_p0 = pneg %p1369_p13 }
  0x20   : > { %p1377_p8 = pnand %p1376_p6, %p1370_p0 }
  0x22   : > { %1380 = shalt.err (!%p1377_p8)
}
  0x23   : > { %1282 = dma.hbm_to_vmem [thread:$0]  (!%p1690_p5), %s1977_s2, 16, %s1678_s11, [#allocation7]  }
  0x24   : > { %s1381_s22 = scalar_lea.hbm %s1979_s4, 16 }
  0x25   : > { %p1382_p9 = scmp.ne.s32.totalorder %s1979_s4, %s1381_s22  ;;  %p1388_p12 = scmp.lt.u32.totalorder %s1381_s22, %s1979_s4 }
  0x27   : > { %p1384_p10 = pnand %p1382_p9, %p1706_p7 }
  0x29   : > { %p1385_p11 = pneg %p1384_p10 }
  0x2b   : > { %p1390_p13 = pnand %p1388_p12, %p1385_p11 }
  0x2d   : > { %1393 = shalt.err (!%p1390_p13)
}
  0x2e   : > { %s1394_s11 = scalar_lea.vmem %s1686_s15, 16  ;;  %s1401_s28 = scalar_lea.vmem %s1686_s15, 32 }
  0x2f   : > { %p1395_p0 = scmp.ne.s32.totalorder %s1686_s15, %s1394_s11  ;;  %p1402_p6 = scmp.lt.s32.totalorder %s1686_s15, %s1686_s15 }
  0x30   : > { %p1403_p8 = scmp.lt.s32.totalorder %s1401_s28, %s1394_s11 }
  0x31   : > { %p1397_p1 = pnand %p1395_p0, %p1706_p7 }
  0x32   : > { %p1404_p9 = por %p1403_p8, %p1402_p6 }
  0x33   : > { %p1398_p4 = pneg %p1397_p1 }
  0x35   : > { %p1405_p10 = pnand %p1404_p9, %p1398_p4 }
  0x37   : > { %1408 = shalt.err (!%p1405_p10)
}
  0x38   : > { %1288 = dma.hbm_to_vmem [thread:$0]  (!%p1690_p5), %s1979_s4, 16, %s1686_s15, [#allocation10]  }
  0x39   : > { %s1409_s19 = scalar_lea.hbm %s1981_s6, 16 }
  0x3a   : > { %p1410_p11 = scmp.ne.s32.totalorder %s1981_s6, %s1409_s19  ;;  %p1416_p0 = scmp.lt.u32.totalorder %s1409_s19, %s1981_s6 }
  0x3c   : > { %p1412_p12 = pnand %p1410_p11, %p1706_p7 }
  0x3e   : > { %p1413_p13 = pneg %p1412_p12 }
  0x40   : > { %p1418_p1 = pnand %p1416_p0, %p1413_p13 }
  0x42   : > { %1421 = shalt.err (!%p1418_p1)
}
  0x43   : > { %s1422_s15 = scalar_lea.vmem %s1694_s17, 16  ;;  %s1429_s25 = scalar_lea.vmem %s1694_s17, 32 }
  0x44   : > { %p1423_p4 = scmp.ne.s32.totalorder %s1694_s17, %s1422_s15  ;;  %p1430_p9 = scmp.lt.s32.totalorder %s1694_s17, %s1694_s17 }
  0x45   : > { %p1431_p10 = scmp.lt.s32.totalorder %s1429_s25, %s1422_s15 }
  0x46   : > { %p1425_p6 = pnand %p1423_p4, %p1706_p7 }
  0x47   : > { %p1432_p11 = por %p1431_p10, %p1430_p9 }
  0x48   : > { %p1426_p8 = pneg %p1425_p6 }
  0x4a   : > { %p1433_p12 = pnand %p1432_p11, %p1426_p8 }
  0x4c   : > { %1436 = shalt.err (!%p1433_p12)
}
  0x4d   : > { %1294 = dma.hbm_to_vmem [thread:$0]  (!%p1690_p5), %s1981_s6, 16, %s1694_s17, [#allocation13]  }
  0x4e   : > { %s1437_s10 = scalar_lea.hbm %s1976_s1, 16 }
  0x4f   : > { %p1438_p13 = scmp.ne.s32.totalorder %s1976_s1, %s1437_s10  ;;  %p1444_p4 = scmp.lt.u32.totalorder %s1437_s10, %s1976_s1 }
  0x51   : > { %p1440_p0 = pnand %p1438_p13, %p1706_p7 }
  0x53   : > { %p1441_p1 = pneg %p1440_p0 }
  0x55   : > { %p1446_p6 = pnand %p1444_p4, %p1441_p1 }
  0x57   : > { %1449 = shalt.err (!%p1446_p6)
}
  0x58   : > { %s1450_s17 = scalar_lea.vmem %s1696_s20, 16  ;;  %s1457_s22 = scalar_lea.vmem %s1696_s20, 32 }
  0x59   : > { %p1451_p8 = scmp.ne.s32.totalorder %s1696_s20, %s1450_s17  ;;  %p1458_p11 = scmp.lt.s32.totalorder %s1696_s20, %s1696_s20 }
  0x5a   : > { %p1459_p12 = scmp.lt.s32.totalorder %s1457_s22, %s1450_s17 }
  0x5b   : > { %p1453_p9 = pnand %p1451_p8, %p1706_p7 }
  0x5c   : > { %p1460_p13 = por %p1459_p12, %p1458_p11 }
  0x5d   : > { %p1454_p10 = pneg %p1453_p9 }
  0x5f   : > { %p1461_p0 = pnand %p1460_p13, %p1454_p10 }
  0x61   : > { %1464 = shalt.err (!%p1461_p0)
}
  0x62   : > { %1279 = dma.hbm_to_vmem [thread:$0]  (!%p1690_p5), %s1976_s1, 16, %s1696_s20, [#allocation5]  }
  0x63   : > { %s1609_s15 = smov [#allocation8]   ;;  %s1465_s28 = scalar_lea.hbm %s1978_s3, 128 }
  0x64   : > { %s283_s25 = sshll.u32 %s1609_s15, 4  ;;  %p1466_p1 = scmp.ne.s32.totalorder %s1978_s3, %s1465_s28  ;;  %s284_s25 = int_to_ptr.vmem [resolvable:$true] %s283_s25 }
  0x65   : > { %p1472_p8 = scmp.lt.u32.totalorder %s1465_s28, %s1978_s3 }
  0x66   : > { %p1468_p4 = pnand %p1466_p1, %p1706_p7 }
  0x68   : > { %p1469_p6 = pneg %p1468_p4 }
  0x6a   : > { %p1474_p9 = pnand %p1472_p8, %p1469_p6 }
  0x6c   : > { %1477 = shalt.err (!%p1474_p9)
}
  0x6d   : > { %s1478_s20 = scalar_lea.vmem %s284_s25, 128  ;;  %p1486_p13 = scmp.lt.s32.totalorder %s284_s25, %s284_s25 }
  0x6e   : > { %p1479_p10 = scmp.ne.s32.totalorder %s284_s25, %s1478_s20  ;;  %p1487_p0 = scmp.lt.s32.totalorder %s1478_s20, %s1478_s20 }
  0x70   : > { %p1481_p11 = pnand %p1479_p10, %p1706_p7  ;;  %p1488_p2 = por %p1487_p0, %p1486_p13 }
  0x72   : > { %p1482_p12 = pneg %p1481_p11 }
  0x74   : > { %p1489_p3 = pnand %p1488_p2, %p1482_p12 }
  0x76   : > { %1492 = shalt.err (!%p1489_p3)
}
  0x77   : > { %s1610_s19 = smov 64   ;;  %s1611_s21 = smov 4  }
  0x78   : > { %1285 = dma.hbm_to_vmem [thread:$0]  (!%p1690_p5), %s1978_s3, 128, %s284_s25, [#allocation7], %s1610_s19, %s1610_s19, %s1611_s21  }
  0x79   : > { %s1612_s23 = smov [#allocation11]   ;;  %s1613_s15 = smov [#allocation14]  }
  0x7a   : > { %s307_s24 = sshll.u32 %s1612_s23, 4  ;;  %s331_s27 = sshll.u32 %s1613_s15, 4  ;;  %s308_s24 = int_to_ptr.vmem [resolvable:$true] %s307_s24  ;;  %s1821_s27 = int_to_ptr.vmem [resolvable:$true] %s331_s27 }
  0x7b   : > { %s1493_s29 = scalar_lea.hbm %s1980_s5, 384 }
  0x7c   : > { %p1494_p2 = scmp.ne.s32.totalorder %s1980_s5, %s1493_s29  ;;  %p1500_p4 = scmp.lt.u32.totalorder %s1493_s29, %s1980_s5 }
  0x7e   : > { %p1496_p3 = pnand %p1494_p2, %p1706_p7 }
  0x80   : > { %p1497_p1 = pneg %p1496_p3 }
  0x82   : > { %p1502_p6 = pnand %p1500_p4, %p1497_p1 }
  0x84   : > { %1505 = shalt.err (!%p1502_p6)
}
  0x85   : > { %s1506_s20 = scalar_lea.vmem %s308_s24, 384  ;;  %p1514_p11 = scmp.lt.s32.totalorder %s308_s24, %s308_s24 }
  0x86   : > { %p1507_p8 = scmp.ne.s32.totalorder %s308_s24, %s1506_s20  ;;  %p1515_p12 = scmp.lt.s32.totalorder %s1506_s20, %s1506_s20 }
  0x88   : > { %p1509_p9 = pnand %p1507_p8, %p1706_p7  ;;  %p1516_p13 = por %p1515_p12, %p1514_p11 }
  0x8a   : > { %p1510_p10 = pneg %p1509_p9 }
  0x8c   : > { %p1517_p0 = pnand %p1516_p13, %p1510_p10 }
  0x8e   : > { %1520 = shalt.err (!%p1517_p0)
}
  0x8f   : > { %1291 = dma.hbm_to_vmem [thread:$0]  (!%p1690_p5), %s1980_s5, 384, %s308_s24, [#allocation10], %s1610_s19, %s1610_s19, %s1611_s21  }
  0x90   : > { %s1521_s11 = scalar_lea.hbm %s1982_s7, 1536 }
  0x91   : > { %p1522_p2 = scmp.ne.s32.totalorder %s1982_s7, %s1521_s11  ;;  %p1528_p4 = scmp.lt.u32.totalorder %s1521_s11, %s1982_s7 }
  0x93   : > { %p1524_p3 = pnand %p1522_p2, %p1706_p7 }
  0x95   : > { %p1525_p1 = pneg %p1524_p3 }
  0x97   : > { %p1530_p6 = pnand %p1528_p4, %p1525_p1 }
  0x99   : > { %1533 = shalt.err (!%p1530_p6)
}
  0x9a   : > { %s1534_s24 = scalar_lea.vmem %s1821_s27, 1536  ;;  %p1542_p11 = scmp.lt.s32.totalorder %s1821_s27, %s1821_s27 }
  0x9b   : > { %p1535_p8 = scmp.ne.s32.totalorder %s1821_s27, %s1534_s24  ;;  %p1543_p12 = scmp.lt.s32.totalorder %s1534_s24, %s1534_s24 }
  0x9d   : > { %p1537_p9 = pnand %p1535_p8, %p1706_p7  ;;  %p1544_p13 = por %p1543_p12, %p1542_p11 }
  0x9f   : > { %p1538_p10 = pneg %p1537_p9 }
  0xa1   : > { %p1545_p0 = pnand %p1544_p13, %p1538_p10 }
  0xa3   : > { %1548 = shalt.err (!%p1545_p0)
}
  0xa4   : > { %1297 = dma.hbm_to_vmem [thread:$0]  (!%p1690_p5), %s1982_s7, 1536, %s1821_s27, [#allocation13], %s1610_s19, %s1610_s19, %s1611_s21  }
  0xa5   : > { %s1614_s20 = smov [#allocation15]   ;;  %s1549_s15 = scalar_lea.hbm %s1983_s8, 16 }
  0xa6   : > { %s345_s17 = sshll.u32 %s1614_s20, 4  ;;  %p1550_p2 = scmp.ne.s32.totalorder %s1983_s8, %s1549_s15  ;;  %s346_s17 = int_to_ptr.vmem [resolvable:$true] %s345_s17 }
  0xa7   : > { %p1556_p4 = scmp.lt.u32.totalorder %s1549_s15, %s1983_s8 }
  0xa8   : > { %p1552_p3 = pnand %p1550_p2, %p1706_p7 }
  0xaa   : > { %p1553_p1 = pneg %p1552_p3 }
  0xac   : > { %p1558_p6 = pnand %p1556_p4, %p1553_p1 }
  0xae   : > { %1561 = shalt.err (!%p1558_p6)
}
  0xaf   : > { %s1562_s19 = scalar_lea.vmem %s346_s17, 16  ;;  %s1569_s21 = scalar_lea.vmem %s346_s17, 32 }
  0xb0   : > { %p1563_p8 = scmp.ne.s32.totalorder %s346_s17, %s1562_s19  ;;  %p1570_p11 = scmp.lt.s32.totalorder %s346_s17, %s346_s17 }
  0xb1   : > { %p1571_p12 = scmp.lt.s32.totalorder %s1569_s21, %s1562_s19 }
  0xb2   : > { %p1565_p9 = pnand %p1563_p8, %p1706_p7 }
  0xb3   : > { %p1572_p13 = por %p1571_p12, %p1570_p11 }
  0xb4   : > { %p1566_p10 = pneg %p1565_p9 }
  0xb6   : > { %p1573_p0 = pnand %p1572_p13, %p1566_p10 }
  0xb8   : > { %1576 = shalt.err (!%p1573_p0)
}
  0xb9   : > { %1300 = dma.hbm_to_vmem [thread:$0]  (!%p1690_p5), %s1983_s8, 16, %s346_s17, [#allocation16]  }
  0xba   : > { %p1990_p2 = scmp.ne.s32.totalorder %s1987_s13, 0 }
  0xbb   : > { %p1991_p3 = scmp.eq.s32.totalorder (!%p1990_p2), %s1673_s12, 0 }
  0xbc   : > { %366 = sbr.rel (%p1990_p2) target bundleno = 708 (0x2c4), region = 56 }
  0xc3   : > { %1582 = dma.done.wait (%p1991_p3), [#allocation5], 16   ;;  %p1992_p7 = pmov %p1991_p3 }
  0xc4   : > { %p1993_p1 = pmov %p1991_p3 }
  0xc5   : > { %1584 = vsyncadd (%p1992_p7), [#allocation5], 4294967280 }
  0xc6   : > { %1586 = dma.done.wait (%p1993_p1), [#allocation7], 144   ;;  %p1994_p4 = pmov %p1993_p1 }
  0xc7   : > { %p1995_p6 = pmov %p1993_p1 }
  0xc8   : > { %1588 = vsyncadd (%p1994_p4), [#allocation7], 4294967152 }
  0xc9   : > { %1590 = dma.done.wait (%p1995_p6), [#allocation10], 400   ;;  %p1996_p5 = pmov %p1993_p1 }
  0xca   : > { %p1997_p8 = pmov %p1993_p1 }
  0xcb   : > { %1592 = vsyncadd (%p1996_p5), [#allocation10], 4294966896 }
  0xcc   : > { %1594 = dma.done.wait (%p1997_p8), [#allocation13], 1552   ;;  %p1998_p9 = pmov %p1993_p1 }
  0xcd   : > { %p1999_p10 = pmov %p1993_p1 }
  0xce   : > { %1596 = vsyncadd (%p1998_p9), [#allocation13], 4294965744 }
  0xcf   : > { %1598 = dma.done.wait (%p1999_p10), [#allocation16], 16   ;;  %p2000_p11 = pmov %p1993_p1 }
  0xd0   : > { %p429_p12 = scmp.lt.s32.totalorder %s1673_s12, 1  ;;  %vm439_vm0 = vcmask 130048   ;;  %v1615_v0 = vmov 0.0   ;;  %vm1616_vm1 = vmmov 0   ;;  %vm442_vm2 = vcmask 123904   ;;  %v1337_v1 = vld [vmem:[#allocation8] sm:$0xff]  }
  0xd1   : > { %1600 = vsyncadd (%p2000_p11), [#allocation16], 4294967280  ;;  %1173 = vmatprep.subr.bf16.mxu1 %v1615_v0  ;;  %1175 = vmatprep.mubr.msk.bf16.mxu1 %vm1616_vm1, %v1615_v0  ;;  %440 = vst.msk [vmem:[#allocation2] sm:$0xff] %vm439_vm0, %v1615_v0  ;;  %v1122_v4 = vld [vmem:[#allocation4] ss:$0 sm:$0xff]  ;;  %v1339_v10 = vld [vmem:[#allocation11] sm:$0xff]  }
  0xd2   : > { %441 = vst.msk [vmem:[#allocation2 + $0x8] sm:$0xff] %vm439_vm0, %v1615_v0  ;;  %s2002_s12 = smov (!%p429_p12, %s1673_s12), 1  ;;  %1185 = vmatprep.subr.bf16.mxu0 %v1615_v0  ;;  %1187 = vmatprep.mubr.msk.bf16.mxu0 %vm1616_vm1, %v1615_v0  ;;  %v1123_v7 = vld [vmem:[#allocation6] ss:$0 sm:$0xff]  ;;  %v1338_v13 = vld [vmem:[#allocation11 + $0x8] sm:$0xff]   ;;  %v1341_v25 = vld [vmem:[#allocation14] sm:$0xff]  }
  0xd3   : > { %443 = vst.msk [vmem:[#allocation2 + $0x10] sm:$0x3] %vm442_vm2, %v1615_v0  ;;  %s1149_s13 = sshll.u32 %s2002_s12, 4  ;;  %1174 = vmatpush3.bf16.msra.mxu1 %v1337_v1  ;;  %1186 = vmatpush3.bf16.msra.mxu0 %v1339_v10  ;;  %v1340_v20 = vld [vmem:[#allocation11 + $0x10] sm:$0xff]   ;;  %v1342_v26 = vld [vmem:[#allocation14 + $0x20] sm:$0xff]   ;;  %v1343_v27 = vld [vmem:[#allocation14 + $0x8] sm:$0xff]  }
  0xd4   : > { %s433_s24 = scalar_lea.vmem %s1975_s0, %s1149_s13  ;;  %1179 = vmatprep.subr.bf16.mxu1 %v1615_v0  ;;  %1209 = vmatprep.subr.bf16.mxu0 %v1615_v0  ;;  %v1344_v28 = vld [vmem:[#allocation14 + $0x28] sm:$0xff]   ;;  %vm444_vm5 = vcmask 523264   ;;  %vm446_vm6 = vcmask 517120   ;;  %v1345_v29 = vld [vmem:[#allocation14 + $0x10] sm:$0xff]   ;;  %v1347_v31 = vld [vmem:[#allocation14 + $0x18] sm:$0xff]   ;;  %s1118_s16 = sshll.u32 %s2002_s12, 2 }
  0xd5   : > { %v448_v2 = vld [vmem:[%s433_s24] sm:$0xff]  ;;  %v449_v3 = vld [vmem:[%s433_s24 + $0x8] sm:$0xff]  ;;  %445 = vst.msk [vmem:[#allocation3] sm:$0xff] %vm444_vm5, %v1615_v0  ;;  %v1349_v53 = vld [vmem:[#allocation14 + $0x40] sm:$0xff]   ;;  %s437_s17 = scalar_lea.vmem %s1984_s9, %s1118_s16  ;;  %vm961_vm9 = vcmask 519168  }
  0xd6   : > { %450 = vst.msk [vmem:[#allocation2 + $0x1] sm:$0xff] %vm439_vm0, %v448_v2  ;;  %451 = vst.msk [vmem:[#allocation2 + $0x9] sm:$0xff] %vm439_vm0, %v449_v3  ;;  %v520_v5 = vmul.f32 %v1122_v4, %v448_v2  ;;  %v521_v6 = vmul.f32 %v1122_v4, %v449_v3  ;;  %v1346_v30 = vld [vmem:[#allocation14 + $0x30] sm:$0xff]   ;;  %v1348_v32 = vld [vmem:[#allocation14 + $0x38] sm:$0xff]  }
  0xd7   : > { %447 = vst.msk [vmem:[#allocation3 + $0x8] sm:$0x3] %vm446_vm6, %v1615_v0  ;;  %v1130_v43 = vld [vmem:[#allocation12] ss:$0 sm:$0xff]  ;;  %v1350_v56 = vld [vmem:[#allocation14 + $0x48] sm:$0xff]   ;;  %v1351_v57 = vld [vmem:[#allocation14 + $0x50] sm:$0xff]  }
  0xd8   : > { %v529_v8 = vadd.f32 %v1123_v7, %v520_v5  ;;  %v530_v9 = vadd.f32 %v1123_v7, %v521_v6  ;;  %v1352_v58 = vld [vmem:[#allocation14 + $0x58] sm:$0xff]   ;;  %v1119_v2 = vld [vmem:[#allocation9] ss:$0 sm:$0xff]  ;;  %v1146_v5 = vld [vmem:[#allocation15] ss:$0 sm:$0xff] }
  0xda   : > { %vm531_vm3 = vcmp.ge.f32.partialorder %v529_v8, 0.0  ;;  %vm532_vm4 = vcmp.ge.f32.partialorder %v530_v9, 0.0  ;;  %v533_v11 = vmul.f32 0.01, %v529_v8  ;;  %v534_v12 = vmul.f32 0.01, %v530_v9 }
  0xdc   : > { %v535_v14 = vsel %vm531_vm3, %v529_v8, %v533_v11  ;;  %v536_v15 = vsel %vm532_vm4, %v530_v9, %v534_v12 }
  0xdd   : > { %v453_v16 = vld [vmem:[#allocation2 + $0x1] ss:$2 sm:$0xff] }
  0xde   : > { %v454_v17 = vpack.c.bf16 %v453_v16, %v453_v16  ;;  %537 = vst.msk [vmem:[#allocation2 + $0x1] sm:$0xff] %vm439_vm0, %v535_v14  ;;  %538 = vst.msk [vmem:[#allocation2 + $0x9] sm:$0xff] %vm439_vm0, %v536_v15 }
  0xe0   : > { %1176 = vmatmul.mubr.msk.bf16.vlgmr.msra.gmra.mrb[0].mxu1 %vm439_vm0, %v454_v17 }
  0xe1   : > { %1180 = vmatpush3.bf16.msra.mxu1 %v1338_v13  ;;  %1181 = vmatprep.mubr.msk.bf16.mxu1 %vm1616_vm1, %v1615_v0 }
  0xe2   : > { %1191 = vmatprep.subr.bf16.mxu1 %v1615_v0 }
  0xe5   : > { %v543_v18 = vld [vmem:[#allocation2 + $0x1] ss:$2 sm:$0xff]  ;;  %v539_v19 = vld [vmem:[#allocation2] ss:$2 sm:$0xff] }
  0xe6   : > { %v544_v21 = vpack.c.bf16 %v543_v18, %v543_v18  ;;  %v540_v22 = vpack.c.bf16 %v539_v19, %v539_v19  ;;  %v647_v23 = vld [vmem:[#allocation2 + $0x2] ss:$2 sm:$0xff] }
  0xe7   : > { %v648_v24 = vpack.c.bf16 %v647_v23, %v647_v23 }
  0xe8   : > { %1182 = vmatmul.mubr.msk.bf16.vlgmr.msra.gmra.mrb[4].mxu1 %vm439_vm0, %v544_v21  ;;  %1188 = vmatmul.mubr.msk.bf16.vlgmr.msra.gmra.mrb[0].mxu0 %vm439_vm0, %v540_v22 }
  0xe9   : > { %1192 = vmatpush3.bf16.msra.mxu1 %v1340_v20  ;;  %1193 = vmatprep.mubr.msk.bf16.mxu1 %vm1616_vm1, %v1615_v0 }
  0xea   : > { %1197 = vmatprep.subr.bf16.mxu1 %v1615_v0  ;;  %1217 = vmatprep.mubr.msk.bf16.mxu0 %vm1616_vm1, %v1615_v0 }
  0xeb   : > { %1210 = vmatpush3.bf16.msra.mxu0 %v1341_v25 }
  0xec   : > { %1211 = vmatprep.subr.bf16.mxu0 %v1615_v0 }
  0xef   : > { %1212 = vmatpush3.bf16.msra.mxu0 %v1343_v27 }
  0xf0   : > { %1194 = vmatmul.mubr.msk.bf16.vlgmr.msra.gmra.mrb[8].mxu1 %vm439_vm0, %v648_v24  ;;  %1213 = vmatprep.subr.bf16.mxu0 %v1615_v0 }
  0xf1   : > { %1205 = vmatprep.mubr.msk.bf16.mxu1 %vm1616_vm1, %v1615_v0  ;;  %1198 = vmatpush3.bf16.msra.mxu1 %v1342_v26 }
  0xf2   : > { %1199 = vmatprep.subr.bf16.mxu1 %v1615_v0 }
  0xf3   : > { %1214 = vmatpush3.bf16.msra.mxu0 %v1345_v29 }
  0xf4   : > { %1215 = vmatprep.subr.bf16.mxu0 %v1615_v0 }
  0xf5   : > { %1200 = vmatpush3.bf16.msra.mxu1 %v1344_v28 }
  0xf6   : > { %1201 = vmatprep.subr.bf16.mxu1 %v1615_v0 }
  0xf7   : > { %1216 = vmatpush3.bf16.msra.mxu0 %v1347_v31 }
  0xf8   : > { %1221 = vmatprep.subr.bf16.mxu0 %v1615_v0 }
  0xf9   : > { %1202 = vmatpush3.bf16.msra.mxu1 %v1346_v30 }
  0xfa   : > { %1203 = vmatprep.subr.bf16.mxu1 %v1615_v0 }
  0xfd   : > { %1204 = vmatpush3.bf16.msra.mxu1 %v1348_v32 }
 0x1bb   : > { %v591_v33 = vpop.f32.mrb[4].mxu1  ;;  %v640_v34 = vpop.f32.mrb[0].mxu0 }
 0x1bc   : > { %v641_v35 = vadd.f32 %v640_v34, %v591_v33  ;;  %v1183_v36 = vpop.f32.mrb[5].mxu1  ;;  %v1189_v37 = vpop.f32.mrb[1].mxu0 }
 0x1bd   : > { %v594_v38 = vpop.f32.mrb[6].mxu1  ;;  %v643_v39 = vpop.f32.mrb[2].mxu0 }
 0x1be   : > { %v1184_v40 = vpop.f32.mrb[7].mxu1  ;;  %v1190_v41 = vpop.f32.mrb[3].mxu0 }
 0x1c3   : > { %v695_v42 = vpop.f32.mrb[8].mxu1 }
 0x1c4   : > { %v701_v44 = vadd.f32 %v695_v42, %v641_v35  ;;  %v1195_v45 = vpop.f32.mrb[9].mxu1 }
 0x1c5   : > { %v698_v46 = vpop.f32.mrb[10].mxu1 }
 0x1c6   : > { %v709_v47 = vadd.f32 %v1130_v43, %v701_v44  ;;  %v1196_v48 = vpop.f32.mrb[11].mxu1 }
 0x1c8   : > { %vm710_vm7 = vcmp.ge.f32.partialorder %v709_v47, 0.0  ;;  %v711_v49 = vmul.f32 0.01, %v709_v47 }
 0x1ca   : > { %v712_v50 = vsel %vm710_vm7, %v709_v47, %v711_v49 }
 0x1cb   : > { %713 = vst.msk [vmem:[#allocation3 + $0x1] sm:$0xff] %vm444_vm5, %v712_v50 }
 0x1d2   : > { %v724_v51 = vld [vmem:[#allocation3 + $0x1] sm:$0xff] }
 0x1d3   : > { %v714_v52 = vld [vmem:[#allocation3] sm:$0xff]  ;;  %v725_v54 = vpack.c.bf16 %v724_v51, %v724_v51 }
 0x1d4   : > { %v715_v55 = vpack.c.bf16 %v714_v52, %v714_v52  ;;  %v869_v59 = vld [vmem:[#allocation3 + $0x2] sm:$0xff] }
 0x1d5   : > { %1206 = vmatmul.mubr.msk.bf16.vlgmr.msra.gmra.mrb[0].mxu1 %vm444_vm5, %v725_v54  ;;  %v870_v60 = vpack.c.bf16 %v869_v59, %v869_v59 }
 0x1d6   : > { %1218 = vmatmul.mubr.msk.bf16.vlgmr.msra.gmra.mrb[4].mxu0 %vm444_vm5, %v715_v55 }
 0x1d7   : > { %1222 = vmatpush3.bf16.msra.mxu0 %v1349_v53  ;;  %1229 = vmatprep.mubr.msk.bf16.mxu0 %vm1616_vm1, %v1615_v0 }
 0x1d8   : > { %1223 = vmatprep.subr.bf16.mxu0 %v1615_v0 }
 0x1db   : > { %1224 = vmatpush3.bf16.msra.mxu0 %v1350_v56 }
 0x1dc   : > { %1225 = vmatprep.subr.bf16.mxu0 %v1615_v0 }
 0x1df   : > { %1226 = vmatpush3.bf16.msra.mxu0 %v1351_v57 }
 0x1e0   : > { %1227 = vmatprep.subr.bf16.mxu0 %v1615_v0 }
 0x1e3   : > { %1228 = vmatpush3.bf16.msra.mxu0 %v1352_v58 }
 0x1e6   : > { %1230 = vmatmul.mubr.msk.bf16.vlgmr.msra.gmra.mrb[4].mxu0 %vm444_vm5, %v870_v60 }
 0x2a8   : > { %v796_v61 = vpop.f32.mrb[0].mxu1 }
 0x2a9   : > { %v1207_v62 = vpop.f32.mrb[1].mxu1  ;;  %v1233_v3 = vadd.f32 %v1119_v2, %v796_v61 }
 0x2aa   : > { %v799_v63 = vpop.f32.mrb[2].mxu1 }
 0x2ab   : > { %v1208_v1 = vpop.f32.mrb[3].mxu1 }
 0x2b9   : > { %v941_v4 = vpop.f32.mrb[4].mxu0 }
 0x2ba   : > { %v1234_v6 = vadd.f32 %v1233_v3, %v941_v4  ;;  %v1231_v7 = vpop.f32.mrb[5].mxu0 }
 0x2bb   : > { %v944_v8 = vpop.f32.mrb[6].mxu0 }
 0x2bc   : > { %v1235_v9 = vadd.f32 %v1234_v6, %v1146_v5  ;;  %v1232_v10 = vpop.f32.mrb[7].mxu0 }
 0x2be   : > { %vm957_vm8 = vcmp.ge.f32.partialorder %v1235_v9, 0.0  ;;  %v958_v0 = vmul.f32 0.01, %v1235_v9 }
 0x2c0   : > { %v959_v11 = vsel %vm957_vm8, %v1235_v9, %v958_v0 }
 0x2c1   : > { %v960_v12 = vpack.c.bf16 %v959_v11, %v959_v11 }
 0x2c3   : > { %962 = vst.msk [vmem:[%s437_s17] sm:$0xf] %vm961_vm9, %v960_v12 }
 0x2c4 PF: > { %s24_s30 = sadd.s32 1, %s1603_s30  }
 0x2c5   : > { %p21_p13 = scmp.ge.s32.totalorder %s24_s30, 4  }
 0x2c7   :  { %23 = sbr.rel (!%p21_p13) target bundleno = 5 (0x5), region = 125 }
 0x2ce   :  { %982 = vsyncpa [#allocation5], 1 }
 0x2cf   :  { %984 = vsyncpa [#allocation5 + $0x1], 1 }
 0x2d0   :  { %985 = vsyncpa [#allocation7], 1 }
 0x2d1   :  { %986 = vsyncpa [#allocation10], 1 }
 0x2d2   :  { %987 = vsyncpa [#allocation13], 1 }
 0x2d3   :  { %988 = vsyncpa [#allocation16], 1 }

// kernel: fwd.11
= control target key start
LH: loop header
LB: loop body
LE: loop exit
PB: predicated region body
PF: predicated region fallthrough
CT: control target
= control target key end

     0   :  { %14 = vsyncpa [#allocation5], 0  ;;  %s1955_s0 = inlined_call_operand.vmem [shape: bf16[2,8,64], index: 0, kind: input, shape index: {}]   ;;  %s1956_s1 = inlined_call_operand.hbm [shape: f32[1,64], index: 1, kind: input, shape index: {}]   ;;  %s1957_s2 = inlined_call_operand.hbm [shape: f32[1,64], index: 2, kind: input, shape index: {}]   ;;  %s1958_s3 = inlined_call_operand.vmem [shape: bf16[64,64], index: 3, kind: input, shape index: {}]   ;;  %s1959_s4 = inlined_call_operand.hbm [shape: f32[1,64], index: 4, kind: input, shape index: {}]   ;;  %s1960_s5 = inlined_call_operand.vmem [shape: bf16[3,64,64], index: 5, kind: input, shape index: {}]   ;;  %s1961_s6 = inlined_call_operand.hbm [shape: f32[1,64], index: 6, kind: input, shape index: {}]   ;;  %s1962_s7 = inlined_call_operand.vmem [shape: bf16[3,64,64], index: 7, kind: input, shape index: {}]   ;;  %s1963_s8 = inlined_call_operand.hbm [shape: f32[1,64], index: 8, kind: input, shape index: {}]   ;;  %s1964_s9 = inlined_call_operand.vmem [shape: bf16[2,8,64], index: 9, kind: output, shape index: {}]  }
   0x1   :  { %15 = vsyncpa [#allocation7], 0 }
   0x2   :  { %16 = vsyncpa [#allocation10], 0  ;;  %s1630_s30 = smov 0  }
   0x3 LB: > { %s1573_s10 = smov [#allocation6]   ;;  %s1636_s12 = sadd.s32 4294967295, %s1571_s30   ;;  %s1571_s30 = sphi %s1630_s30, %s22_s30  }
   0x4   : > { %s271_s11 = sshll.u32 %s1573_s10, 4  ;;  %p1105_p0 = scmp.ge.s32.totalorder %s1571_s30, 1  ;;  %s1641_s11 = int_to_ptr.vmem [resolvable:$true] %s271_s11 }
   0x5   : > { %p247_p1 = scmp.lt.s32.totalorder %s1571_s30, 3  ;;  %p1965_p2 = scmp.eq.s32.totalorder %s1636_s12, 0 }
   0x6   : > { %s1574_s14 = smov [#allocation9]   ;;  %s1575_s16 = smov [#allocation4]  }
   0x7   : > { %p1643_p3 = pnand %p1105_p0, %p247_p1  ;;  %s299_s15 = sshll.u32 %s1574_s14, 4  ;;  %s1649_s15 = int_to_ptr.vmem [resolvable:$true] %s299_s15 }
   0x8   : > { %s260_s17 = sshll.u32 %s1575_s16, 4  ;;  %s1576_s19 = smov [#allocation8]   ;;  %s1657_s17 = int_to_ptr.vmem [resolvable:$true] %s260_s17 }
   0x9   : > { %s1967_s13 = scalar_select %p1643_p3, 1, 0 }
   0xa   : > { %p1344_p4 = pneg %p1643_p3  ;;  %s285_s20 = sshll.u32 %s1576_s19, 4  ;;  %s1659_s20 = int_to_ptr.vmem [resolvable:$true] %s285_s20 }
   0xb   : > { %s1413_s23 = scalar_lea.hbm %s1957_s2, 16 }
   0xc   : > { %p1653_p5 = pnand %p1965_p2, %p1344_p4  ;;  %p1414_p6 = scmp.ne.s32.totalorder %s1957_s2, %s1413_s23 }
   0xd   : > { %p1420_p10 = scmp.lt.u32.totalorder %s1413_s23, %s1957_s2 }
   0xe   : > { %p1669_p7 = pneg %p1653_p5 }
  0x10   : > { %p1416_p8 = pnand %p1669_p7, %p1414_p6 }
  0x12   : > { %p1417_p9 = pneg %p1416_p8 }
  0x14   : > { %p1422_p11 = pnand %p1420_p10, %p1417_p9 }
  0x16   : > { %1425 = shalt.err (!%p1422_p11)
}
  0x17   : > { %s1426_s29 = scalar_lea.vmem %s1641_s11, 16  ;;  %s1433_s10 = scalar_lea.vmem %s1641_s11, 32 }
  0x18   : > { %p1427_p12 = scmp.ne.s32.totalorder %s1641_s11, %s1426_s29  ;;  %p1434_p1 = scmp.lt.s32.totalorder %s1641_s11, %s1641_s11 }
  0x19   : > { %p1435_p4 = scmp.lt.s32.totalorder %s1433_s10, %s1426_s29 }
  0x1a   : > { %p1429_p13 = pnand %p1427_p12, %p1669_p7 }
  0x1b   : > { %p1436_p6 = por %p1435_p4, %p1434_p1 }
  0x1c   : > { %p1430_p0 = pneg %p1429_p13 }
  0x1e   : > { %p1437_p8 = pnand %p1436_p6, %p1430_p0 }
  0x20   : > { %1440 = shalt.err (!%p1437_p8)
}
  0x21   : > { %1350 = dma.hbm_to_vmem [thread:$0]  (!%p1653_p5), %s1957_s2, 16, %s1641_s11, [#allocation7]  }
  0x22   : > { %s1441_s22 = scalar_lea.hbm %s1961_s6, 16 }
  0x23   : > { %p1442_p9 = scmp.ne.s32.totalorder %s1961_s6, %s1441_s22  ;;  %p1448_p12 = scmp.lt.u32.totalorder %s1441_s22, %s1961_s6 }
  0x25   : > { %p1444_p10 = pnand %p1442_p9, %p1669_p7 }
  0x27   : > { %p1445_p11 = pneg %p1444_p10 }
  0x29   : > { %p1450_p13 = pnand %p1448_p12, %p1445_p11 }
  0x2b   : > { %1453 = shalt.err (!%p1450_p13)
}
  0x2c   : > { %s1454_s11 = scalar_lea.vmem %s1649_s15, 16  ;;  %s1461_s28 = scalar_lea.vmem %s1649_s15, 32 }
  0x2d   : > { %p1455_p0 = scmp.ne.s32.totalorder %s1649_s15, %s1454_s11  ;;  %p1462_p6 = scmp.lt.s32.totalorder %s1649_s15, %s1649_s15 }
  0x2e   : > { %p1463_p8 = scmp.lt.s32.totalorder %s1461_s28, %s1454_s11 }
  0x2f   : > { %p1457_p1 = pnand %p1455_p0, %p1669_p7 }
  0x30   : > { %p1464_p9 = por %p1463_p8, %p1462_p6 }
  0x31   : > { %p1458_p4 = pneg %p1457_p1 }
  0x33   : > { %p1465_p10 = pnand %p1464_p9, %p1458_p4 }
  0x35   : > { %1468 = shalt.err (!%p1465_p10)
}
  0x36   : > { %1356 = dma.hbm_to_vmem [thread:$0]  (!%p1653_p5), %s1961_s6, 16, %s1649_s15, [#allocation10]  }
  0x37   : > { %s1469_s19 = scalar_lea.hbm %s1956_s1, 16 }
  0x38   : > { %p1470_p11 = scmp.ne.s32.totalorder %s1956_s1, %s1469_s19  ;;  %p1476_p0 = scmp.lt.u32.totalorder %s1469_s19, %s1956_s1 }
  0x3a   : > { %p1472_p12 = pnand %p1470_p11, %p1669_p7 }
  0x3c   : > { %p1473_p13 = pneg %p1472_p12 }
  0x3e   : > { %p1478_p1 = pnand %p1476_p0, %p1473_p13 }
  0x40   : > { %1481 = shalt.err (!%p1478_p1)
}
  0x41   : > { %s1482_s15 = scalar_lea.vmem %s1657_s17, 16  ;;  %s1489_s25 = scalar_lea.vmem %s1657_s17, 32 }
  0x42   : > { %p1483_p4 = scmp.ne.s32.totalorder %s1657_s17, %s1482_s15  ;;  %p1490_p9 = scmp.lt.s32.totalorder %s1657_s17, %s1657_s17 }
  0x43   : > { %p1491_p10 = scmp.lt.s32.totalorder %s1489_s25, %s1482_s15 }
  0x44   : > { %p1485_p6 = pnand %p1483_p4, %p1669_p7 }
  0x45   : > { %p1492_p11 = por %p1491_p10, %p1490_p9 }
  0x46   : > { %p1486_p8 = pneg %p1485_p6 }
  0x48   : > { %p1493_p12 = pnand %p1492_p11, %p1486_p8 }
  0x4a   : > { %1496 = shalt.err (!%p1493_p12)
}
  0x4b   : > { %1347 = dma.hbm_to_vmem [thread:$0]  (!%p1653_p5), %s1956_s1, 16, %s1657_s17, [#allocation5]  }
  0x4c   : > { %s1497_s10 = scalar_lea.hbm %s1959_s4, 16 }
  0x4d   : > { %p1498_p13 = scmp.ne.s32.totalorder %s1959_s4, %s1497_s10  ;;  %p1504_p4 = scmp.lt.u32.totalorder %s1497_s10, %s1959_s4 }
  0x4f   : > { %p1500_p0 = pnand %p1498_p13, %p1669_p7 }
  0x51   : > { %p1501_p1 = pneg %p1500_p0 }
  0x53   : > { %p1506_p6 = pnand %p1504_p4, %p1501_p1 }
  0x55   : > { %1509 = shalt.err (!%p1506_p6)
}
  0x56   : > { %s1510_s17 = scalar_lea.vmem %s1659_s20, 16  ;;  %s1517_s22 = scalar_lea.vmem %s1659_s20, 32 }
  0x57   : > { %p1511_p8 = scmp.ne.s32.totalorder %s1659_s20, %s1510_s17  ;;  %p1518_p11 = scmp.lt.s32.totalorder %s1659_s20, %s1659_s20 }
  0x58   : > { %p1519_p12 = scmp.lt.s32.totalorder %s1517_s22, %s1510_s17 }
  0x59   : > { %p1513_p9 = pnand %p1511_p8, %p1669_p7 }
  0x5a   : > { %p1520_p13 = por %p1519_p12, %p1518_p11 }
  0x5b   : > { %p1514_p10 = pneg %p1513_p9 }
  0x5d   : > { %p1521_p0 = pnand %p1520_p13, %p1514_p10 }
  0x5f   : > { %1524 = shalt.err (!%p1521_p0)
}
  0x60   : > { %1353 = dma.hbm_to_vmem [thread:$0]  (!%p1653_p5), %s1959_s4, 16, %s1659_s20, [#allocation7]  }
  0x61   : > { %s1577_s15 = smov [#allocation11]   ;;  %s1525_s28 = scalar_lea.hbm %s1963_s8, 16 }
  0x62   : > { %s313_s25 = sshll.u32 %s1577_s15, 4  ;;  %p1526_p1 = scmp.ne.s32.totalorder %s1963_s8, %s1525_s28  ;;  %s314_s25 = int_to_ptr.vmem [resolvable:$true] %s313_s25 }
  0x63   : > { %p1532_p8 = scmp.lt.u32.totalorder %s1525_s28, %s1963_s8 }
  0x64   : > { %p1528_p4 = pnand %p1526_p1, %p1669_p7 }
  0x66   : > { %p1529_p6 = pneg %p1528_p4 }
  0x68   : > { %p1534_p9 = pnand %p1532_p8, %p1529_p6 }
  0x6a   : > { %1537 = shalt.err (!%p1534_p9)
}
  0x6b   : > { %s1538_s20 = scalar_lea.vmem %s314_s25, 16  ;;  %s1545_s19 = scalar_lea.vmem %s314_s25, 32 }
  0x6c   : > { %p1539_p10 = scmp.ne.s32.totalorder %s314_s25, %s1538_s20  ;;  %p1546_p13 = scmp.lt.s32.totalorder %s314_s25, %s314_s25 }
  0x6d   : > { %p1547_p0 = scmp.lt.s32.totalorder %s1545_s19, %s1538_s20 }
  0x6e   : > { %p1541_p11 = pnand %p1539_p10, %p1669_p7 }
  0x6f   : > { %p1548_p2 = por %p1547_p0, %p1546_p13 }
  0x70   : > { %p1542_p12 = pneg %p1541_p11 }
  0x72   : > { %p1549_p3 = pnand %p1548_p2, %p1542_p12 }
  0x74   : > { %1552 = shalt.err (!%p1549_p3)
}
  0x75   : > { %1359 = dma.hbm_to_vmem [thread:$0]  (!%p1653_p5), %s1963_s8, 16, %s314_s25, [#allocation10]  }
  0x76   : > { %p1970_p1 = scmp.ne.s32.totalorder %s1967_s13, 0 }
  0x77   : > { %p1971_p4 = scmp.eq.s32.totalorder (!%p1970_p1), %s1636_s12, 0 }
  0x78   : > { %333 = sbr.rel (%p1970_p1) target bundleno = 668 (0x29c), region = 56 }
  0x7f   : > { %1558 = dma.done.wait (%p1971_p4), [#allocation5], 16   ;;  %p1972_p7 = pmov %p1971_p4 }
  0x80   : > { %p1973_p6 = pmov %p1971_p4 }
  0x81   : > { %1560 = vsyncadd (%p1972_p7), [#allocation5], 4294967280 }
  0x82   : > { %1562 = dma.done.wait (%p1973_p6), [#allocation7], 32   ;;  %p1974_p2 = pmov %p1971_p4 }
  0x84   : > { %1564 = vsyncadd (%p1974_p2), [#allocation7], 4294967264  ;;  %p1975_p3 = pmov %p1974_p2 }
  0x85   : > { %p1976_p5 = pmov %p1974_p2 }
  0x86   : > { %1566 = dma.done.wait (%p1975_p3), [#allocation10], 32  }
  0x87   : > { %1568 = vsyncadd (%p1976_p5), [#allocation10], 4294967264  ;;  %p383_p8 = scmp.lt.s32.totalorder %s1636_s12, 1  ;;  %vm392_vm0 = vcmask 523264   ;;  %v1578_v0 = vmov 0.0   ;;  %vm1579_vm1 = vmmov 0  }
  0x88   : > { %1229 = vmatprep.subr.bf16.mxu1 %v1578_v0  ;;  %1237 = vmatprep.mubr.msk.bf16.mxu1 %vm1579_vm1, %v1578_v0  ;;  %393 = vst.msk [vmem:[#allocation2] sm:$0xff] %vm392_vm0, %v1578_v0  ;;  %vm394_vm2 = vcmask 517120   ;;  %396 = vst.msk [vmem:[#allocation3] sm:$0xff] %vm392_vm0, %v1578_v0  ;;  %v1385_v1 = vld [vmem:[%s1958_s3] sm:$0xff]   ;;  %v1386_v2 = vld [vmem:[%s1958_s3 + $0x8] sm:$0xff]   ;;  %vm998_vm6 = vcmask 519168  }
  0x89   : > { %s1978_s12 = smov (!%p383_p8, %s1636_s12), 1  ;;  %395 = vst.msk [vmem:[#allocation2 + $0x8] sm:$0x3] %vm394_vm2, %v1578_v0  ;;  %397 = vst.msk [vmem:[#allocation3 + $0x8] sm:$0x3] %vm394_vm2, %v1578_v0  ;;  %1253 = vmatprep.subr.bf16.mxu0 %v1578_v0  ;;  %1261 = vmatprep.mubr.msk.bf16.mxu0 %vm1579_vm1, %v1578_v0  ;;  %v1387_v3 = vld [vmem:[%s1958_s3 + $0x10] sm:$0xff]  }
  0x8a   : > { %s1118_s13 = sshll.u32 %s1978_s12, 2  ;;  %1230 = vmatpush3.bf16.msra.mxu1 %v1385_v1  ;;  %v1126_v5 = vld [vmem:[#allocation4] ss:$0 sm:$0xff]  ;;  %v1127_v7 = vld [vmem:[#allocation6] ss:$0 sm:$0xff]  ;;  %v1392_v10 = vld [vmem:[%s1960_s5 + $0x8] sm:$0xff]  }
  0x8b   : > { %s386_s24 = scalar_lea.vmem %s1955_s0, %s1118_s13  ;;  %1231 = vmatprep.subr.bf16.mxu1 %v1578_v0  ;;  %v1390_v8 = vld [vmem:[%s1960_s5] sm:$0xff]   ;;  %v1388_v12 = vld [vmem:[%s1958_s3 + $0x18] sm:$0xff]   ;;  %v1394_v14 = vld [vmem:[%s1960_s5 + $0x10] sm:$0xff]   ;;  %s390_s27 = scalar_lea.vmem %s1964_s9, %s1118_s13 }
  0x8c   : > { %v398_v4 = vld [vmem:[%s386_s24] sm:$0xf]  ;;  %1254 = vmatpush3.bf16.msra.mxu0 %v1390_v8  ;;  %v1396_v19 = vld [vmem:[%s1960_s5 + $0x18] sm:$0xff]   ;;  %v1391_v20 = vld [vmem:[%s1960_s5 + $0x28] sm:$0xff]  }
  0x8d   : > { %v399_v6 = vunpack.c.l.bf16 %v398_v4  ;;  %1255 = vmatprep.subr.bf16.mxu0 %v1578_v0  ;;  %v1389_v17 = vld [vmem:[%s1960_s5 + $0x20] sm:$0xff]   ;;  %v1393_v21 = vld [vmem:[%s1960_s5 + $0x30] sm:$0xff]   ;;  %v1395_v24 = vld [vmem:[%s1960_s5 + $0x38] sm:$0xff]  }
  0x8e   : > { %1232 = vmatpush3.bf16.msra.mxu1 %v1386_v2  ;;  %v1397_v27 = vld [vmem:[%s1960_s5 + $0x40] sm:$0xff]   ;;  %v1398_v28 = vld [vmem:[%s1960_s5 + $0x48] sm:$0xff]   ;;  %v1399_v29 = vld [vmem:[%s1960_s5 + $0x50] sm:$0xff]  }
  0x8f   : > { %1233 = vmatprep.subr.bf16.mxu1 %v1578_v0  ;;  %400 = vst.msk [vmem:[#allocation2 + $0x1] sm:$0xff] %vm392_vm0, %v399_v6  ;;  %v492_v9 = vmul.f32 %v1126_v5, %v399_v6  ;;  %v1400_v30 = vld [vmem:[%s1960_s5 + $0x58] sm:$0xff]   ;;  %v1401_v33 = vld [vmem:[%s1962_s7 + $0x20] sm:$0xff]   ;;  %v1402_v34 = vld [vmem:[%s1962_s7 + $0x28] sm:$0xff]  }
  0x90   : > { %1256 = vmatpush3.bf16.msra.mxu0 %v1392_v10  ;;  %v1403_v35 = vld [vmem:[%s1962_s7 + $0x30] sm:$0xff]   ;;  %v1404_v36 = vld [vmem:[%s1962_s7 + $0x38] sm:$0xff]   ;;  %v1159_v51 = vld [vmem:[#allocation9] ss:$0 sm:$0xff] }
  0x91   : > { %v500_v11 = vadd.f32 %v1127_v7, %v492_v9  ;;  %1257 = vmatprep.subr.bf16.mxu0 %v1578_v0  ;;  %v1405_v60 = vld [vmem:[%s1962_s7] sm:$0xff]   ;;  %v1406_v62 = vld [vmem:[%s1962_s7 + $0x8] sm:$0xff]   ;;  %v1407_v63 = vld [vmem:[%s1962_s7 + $0x10] sm:$0xff]  }
  0x92   : > { %1234 = vmatpush3.bf16.msra.mxu1 %v1387_v3  ;;  %v1408_v1 = vld [vmem:[%s1962_s7 + $0x18] sm:$0xff]   ;;  %v1409_v3 = vld [vmem:[%s1962_s7 + $0x40] sm:$0xff]   ;;  %v1410_v5 = vld [vmem:[%s1962_s7 + $0x48] sm:$0xff]  }
  0x93   : > { %1235 = vmatprep.subr.bf16.mxu1 %v1578_v0  ;;  %vm501_vm3 = vcmp.ge.f32.partialorder %v500_v11, 0.0  ;;  %v502_v13 = vmul.f32 0.01, %v500_v11  ;;  %v1411_v6 = vld [vmem:[%s1962_s7 + $0x50] sm:$0xff]   ;;  %v1412_v7 = vld [vmem:[%s1962_s7 + $0x58] sm:$0xff]  }
  0x94   : > { %1258 = vmatpush3.bf16.msra.mxu0 %v1394_v14  ;;  %v1120_v10 = vld [vmem:[#allocation8] ss:$0 sm:$0xff] }
  0x95   : > { %v503_v15 = vsel %vm501_vm3, %v500_v11, %v502_v13  ;;  %1259 = vmatprep.subr.bf16.mxu0 %v1578_v0  ;;  %v1191_v13 = vld [vmem:[#allocation11] ss:$0 sm:$0xff] }
  0x96   : > { %1236 = vmatpush3.bf16.msra.mxu1 %v1388_v12  ;;  %v401_v16 = vld [vmem:[#allocation2 + $0x1] sm:$0xff] }
  0x97   : > { %v402_v18 = vpack.c.bf16 %v401_v16, %v401_v16  ;;  %504 = vst.msk [vmem:[#allocation2 + $0x1] sm:$0xff] %vm392_vm0, %v503_v15  ;;  %1241 = vmatprep.subr.bf16.mxu1 %v1578_v0 }
  0x98   : > { %1260 = vmatpush3.bf16.msra.mxu0 %v1396_v19 }
  0x99   : > { %1238 = vmatmul.mubr.msk.bf16.vlgmr.msra.gmra.mrb[0].mxu1 %vm392_vm0, %v402_v18  ;;  %1277 = vmatprep.subr.bf16.mxu0 %v1578_v0 }
  0x9a   : > { %1242 = vmatpush3.bf16.msra.mxu1 %v1389_v17  ;;  %1249 = vmatprep.mubr.msk.bf16.mxu1 %vm1579_vm1, %v1578_v0 }
  0x9b   : > { %1243 = vmatprep.subr.bf16.mxu1 %v1578_v0 }
  0x9e   : > { %1244 = vmatpush3.bf16.msra.mxu1 %v1391_v20  ;;  %v505_v22 = vld [vmem:[#allocation2] sm:$0xff] }
  0x9f   : > { %1245 = vmatprep.subr.bf16.mxu1 %v1578_v0  ;;  %v506_v23 = vpack.c.bf16 %v505_v22, %v505_v22  ;;  %v515_v25 = vld [vmem:[#allocation2 + $0x1] sm:$0xff] }
  0xa0   : > { %v516_v26 = vpack.c.bf16 %v515_v25, %v515_v25  ;;  %v660_v31 = vld [vmem:[#allocation2 + $0x2] sm:$0xff] }
  0xa1   : > { %1262 = vmatmul.mubr.msk.bf16.vlgmr.msra.gmra.mrb[0].mxu0 %vm392_vm0, %v506_v23  ;;  %v661_v32 = vpack.c.bf16 %v660_v31, %v660_v31 }
  0xa2   : > { %1246 = vmatpush3.bf16.msra.mxu1 %v1393_v21  ;;  %1285 = vmatprep.mubr.msk.bf16.mxu0 %vm1579_vm1, %v1578_v0 }
  0xa3   : > { %1247 = vmatprep.subr.bf16.mxu1 %v1578_v0  ;;  %1278 = vmatpush3.bf16.msra.mxu0 %v1401_v33 }
  0xa4   : > { %1279 = vmatprep.subr.bf16.mxu0 %v1578_v0 }
  0xa6   : > { %1248 = vmatpush3.bf16.msra.mxu1 %v1395_v24 }
  0xa7   : > { %1265 = vmatprep.subr.bf16.mxu1 %v1578_v0  ;;  %1280 = vmatpush3.bf16.msra.mxu0 %v1402_v34 }
  0xa8   : > { %1281 = vmatprep.subr.bf16.mxu0 %v1578_v0 }
  0xa9   : > { %1250 = vmatmul.mubr.msk.bf16.vlgmr.msra.gmra.mrb[4].mxu1 %vm392_vm0, %v516_v26 }
  0xaa   : > { %1266 = vmatpush3.bf16.msra.mxu1 %v1397_v27  ;;  %1273 = vmatprep.mubr.msk.bf16.mxu1 %vm1579_vm1, %v1578_v0 }
  0xab   : > { %1267 = vmatprep.subr.bf16.mxu1 %v1578_v0  ;;  %1282 = vmatpush3.bf16.msra.mxu0 %v1403_v35 }
  0xac   : > { %1283 = vmatprep.subr.bf16.mxu0 %v1578_v0 }
  0xae   : > { %1268 = vmatpush3.bf16.msra.mxu1 %v1398_v28 }
  0xaf   : > { %1269 = vmatprep.subr.bf16.mxu1 %v1578_v0  ;;  %1284 = vmatpush3.bf16.msra.mxu0 %v1404_v36 }
  0xb0   : > { %1289 = vmatprep.subr.bf16.mxu0 %v1578_v0 }
  0xb2   : > { %1270 = vmatpush3.bf16.msra.mxu1 %v1399_v29 }
  0xb3   : > { %1271 = vmatprep.subr.bf16.mxu1 %v1578_v0 }
  0xb6   : > { %1272 = vmatpush3.bf16.msra.mxu1 %v1400_v30 }
  0xb9   : > { %1274 = vmatmul.mubr.msk.bf16.vlgmr.msra.gmra.mrb[8].mxu1 %vm392_vm0, %v661_v32 }
 0x16c   : > { %v479_v37 = vpop.f32.mrb[0].mxu1 }
 0x16d   : > { %v1239_v38 = vpop.f32.mrb[1].mxu1  ;;  %v480_v11 = vadd.f32 %v1120_v10, %v479_v37 }
 0x16e   : > { %v482_v39 = vpop.f32.mrb[2].mxu1 }
 0x16f   : > { %v1240_v40 = vpop.f32.mrb[3].mxu1 }
 0x174   : > { %v654_v41 = vpop.f32.mrb[0].mxu0 }
 0x175   : > { %v1263_v42 = vpop.f32.mrb[1].mxu0 }
 0x176   : > { %v657_v43 = vpop.f32.mrb[2].mxu0 }
 0x177   : > { %v1264_v44 = vpop.f32.mrb[3].mxu0 }
 0x17c   : > { %v587_v45 = vpop.f32.mrb[4].mxu1 }
 0x17d   : > { %v1251_v46 = vpop.f32.mrb[5].mxu1  ;;  %v655_v47 = vadd.f32 %v654_v41, %v587_v45 }
 0x17e   : > { %v590_v48 = vpop.f32.mrb[6].mxu1 }
 0x17f   : > { %v1252_v49 = vpop.f32.mrb[7].mxu1 }
 0x18c   : > { %v732_v50 = vpop.f32.mrb[8].mxu1 }
 0x18d   : > { %v738_v52 = vadd.f32 %v732_v50, %v655_v47  ;;  %v1275_v53 = vpop.f32.mrb[9].mxu1 }
 0x18e   : > { %v735_v54 = vpop.f32.mrb[10].mxu1 }
 0x18f   : > { %v746_v55 = vadd.f32 %v1159_v51, %v738_v52  ;;  %v1276_v56 = vpop.f32.mrb[11].mxu1 }
 0x191   : > { %vm747_vm4 = vcmp.ge.f32.partialorder %v746_v55, 0.0  ;;  %v748_v57 = vmul.f32 0.01, %v746_v55 }
 0x193   : > { %v749_v58 = vsel %vm747_vm4, %v746_v55, %v748_v57 }
 0x194   : > { %750 = vst.msk [vmem:[#allocation3 + $0x1] sm:$0xff] %vm392_vm0, %v749_v58 }
 0x19b   : > { %v761_v59 = vld [vmem:[#allocation3 + $0x1] sm:$0xff] }
 0x19c   : > { %v762_v61 = vpack.c.bf16 %v761_v59, %v761_v59  ;;  %v751_v2 = vld [vmem:[#allocation3] sm:$0xff] }
 0x19d   : > { %v752_v4 = vpack.c.bf16 %v751_v2, %v751_v2  ;;  %v906_v8 = vld [vmem:[#allocation3 + $0x2] sm:$0xff] }
 0x19e   : > { %1286 = vmatmul.mubr.msk.bf16.vlgmr.msra.gmra.mrb[4].mxu0 %vm392_vm0, %v762_v61  ;;  %v907_v9 = vpack.c.bf16 %v906_v8, %v906_v8 }
 0x19f   : > { %1290 = vmatpush3.bf16.msra.mxu0 %v1405_v60  ;;  %1297 = vmatprep.mubr.msk.bf16.mxu0 %vm1579_vm1, %v1578_v0 }
 0x1a0   : > { %1291 = vmatprep.subr.bf16.mxu0 %v1578_v0 }
 0x1a3   : > { %1292 = vmatpush3.bf16.msra.mxu0 %v1406_v62 }
 0x1a4   : > { %1293 = vmatprep.subr.bf16.mxu0 %v1578_v0 }
 0x1a7   : > { %1294 = vmatpush3.bf16.msra.mxu0 %v1407_v63 }
 0x1a8   : > { %1295 = vmatprep.subr.bf16.mxu0 %v1578_v0 }
 0x1ab   : > { %1296 = vmatpush3.bf16.msra.mxu0 %v1408_v1 }
 0x1ac   : > { %1301 = vmatprep.subr.bf16.mxu0 %v1578_v0 }
 0x1ae   : > { %1298 = vmatmul.mubr.msk.bf16.vlgmr.msra.gmra.mrb[4].mxu0 %vm392_vm0, %v752_v4 }
 0x1af   : > { %1302 = vmatpush3.bf16.msra.mxu0 %v1409_v3  ;;  %1309 = vmatprep.mubr.msk.bf16.mxu0 %vm1579_vm1, %v1578_v0 }
 0x1b0   : > { %1303 = vmatprep.subr.bf16.mxu0 %v1578_v0 }
 0x1b3   : > { %1304 = vmatpush3.bf16.msra.mxu0 %v1410_v5 }
 0x1b4   : > { %1305 = vmatprep.subr.bf16.mxu0 %v1578_v0 }
 0x1b7   : > { %1306 = vmatpush3.bf16.msra.mxu0 %v1411_v6 }
 0x1b8   : > { %1307 = vmatprep.subr.bf16.mxu0 %v1578_v0 }
 0x1bb   : > { %1308 = vmatpush3.bf16.msra.mxu0 %v1412_v7 }
 0x1be   : > { %1310 = vmatmul.mubr.msk.bf16.vlgmr.msra.gmra.mrb[4].mxu0 %vm392_vm0, %v907_v9 }
 0x291   : > { %v978_v12 = vpop.f32.mrb[4].mxu0 }
 0x292   : > { %v1314_v14 = vadd.f32 %v978_v12, %v480_v11  ;;  %v1311_v15 = vpop.f32.mrb[5].mxu0 }
 0x293   : > { %v981_v16 = vpop.f32.mrb[6].mxu0 }
 0x294   : > { %v1315_v17 = vadd.f32 %v1314_v14, %v1191_v13  ;;  %v1312_v18 = vpop.f32.mrb[7].mxu0 }
 0x296   : > { %vm994_vm5 = vcmp.ge.f32.partialorder %v1315_v17, 0.0  ;;  %v995_v19 = vmul.f32 0.01, %v1315_v17 }
 0x298   : > { %v996_v0 = vsel %vm994_vm5, %v1315_v17, %v995_v19 }
 0x299   : > { %v997_v20 = vpack.c.bf16 %v996_v0, %v996_v0 }
 0x29b   : > { %999 = vst.msk [vmem:[%s390_s27] sm:$0xf] %vm998_vm6, %v997_v20 }
 0x29c PF: > { %s22_s30 = sadd.s32 1, %s1571_s30  }
 0x29d   : > { %p19_p9 = scmp.ge.s32.totalorder %s22_s30, 4  }
 0x29f   :  { %21 = sbr.rel (!%p19_p9) target bundleno = 3 (0x3), region = 111 }
 0x2a6   :  { %1019 = vsyncpa [#allocation5], 1 }
 0x2a7   :  { %1021 = vsyncpa [#allocation5 + $0x1], 1 }
 0x2a8   :  { %1022 = vsyncpa [#allocation7], 1 }
 0x2a9   :  { %1023 = vsyncpa [#allocation10], 1 }

// kernel: fwd.18
= control target key start
LH: loop header
LB: loop body
LE: loop exit
PB: predicated region body
PF: predicated region fallthrough
CT: control target
= control target key end

     0   :  { %v92_v0 = vmov 0.0   ;;  %vm93_vm0 = vmmov 0   ;;  %vm27_vm1 = vcmask 130048   ;;  %vm74_vm3 = vcmask 123904   ;;  %s129_s1 = inlined_call_operand.vmem [shape: f32[16,16], index: 1, kind: input, shape index: {}]   ;;  %s130_s0 = inlined_call_operand.vmem [shape: f32[2,16], index: 0, kind: input, shape index: {}]   ;;  %s131_s2 = inlined_call_operand.vmem [shape: f32[1,16], index: 2, kind: input, shape index: {}]   ;;  %s132_s3 = inlined_call_operand.vmem [shape: f32[2,16], index: 3, kind: output, shape index: {}]  }
   0x1   :  { %84 = vmatprep.subr.bf16.mxu0 %v92_v0  ;;  %v17_v1 = vld [vmem:[%s129_s1] sm:$0xff]  ;;  %v18_v2 = vld [vmem:[%s129_s1 + $0x8] sm:$0xff]  ;;  %86 = vmatprep.mubr.msk.bf16.mxu0 %vm93_vm0, %v92_v0 }
   0x2   :  { %v15_v3 = vld [vmem:[%s130_s0] sm:$0x3]  ;;  %v19_v4 = vpack.c.bf16 %v18_v2, %v17_v1 }
   0x3   :  { %v16_v5 = vpack.c.bf16 %v15_v3, %v15_v3  ;;  %v80_v6 = vld [vmem:[%s131_s2] ss:$0 sm:$0xff] }
   0x4   :  { %85 = vmatpush3.bf16.msra.mxu0 %v19_v4 }
   0x7   :  { %87 = vmatmul.mubr.msk.bf16.vlgmr.msra.gmra.mrb[0].mxu0 %vm27_vm1, %v16_v5 }
  0xda   :  { %v65_v7 = vpop.f32.mrb[0].mxu0 }
  0xdb   :  { %v66_v8 = vadd.f32 %v80_v6, %v65_v7  ;;  %v88_v9 = vpop.f32.mrb[1].mxu0 }
  0xdc   :  { %v68_v10 = vpop.f32.mrb[2].mxu0 }
  0xdd   :  { %vm71_vm2 = vcmp.ge.f32.partialorder %v66_v8, 0.0  ;;  %v72_v11 = vmul.f32 0.01, %v66_v8  ;;  %v89_v12 = vpop.f32.mrb[3].mxu0 }
  0xdf   :  { %v73_v13 = vsel %vm71_vm2, %v66_v8, %v72_v11 }
  0xe0   :  { %75 = vst.msk [vmem:[%s132_s3] sm:$0x3] %vm74_vm3, %v73_v13 }

// kernel: fwd.19
= control target key start
LH: loop header
LB: loop body
LE: loop exit
PB: predicated region body
PF: predicated region fallthrough
CT: control target
= control target key end

     0   :  { %v125_v3 = vmov 0.0   ;;  %vm126_vm0 = vmmov 0   ;;  %s172_s0 = inlined_call_operand.vmem [shape: f32[2,16], index: 0, kind: input, shape index: {}]   ;;  %s173_s1 = inlined_call_operand.vmem [shape: f32[16,5], index: 1, kind: input, shape index: {}]   ;;  %s174_s2 = inlined_call_operand.vmem [shape: f32[1,5], index: 2, kind: input, shape index: {}]   ;;  %s175_s3 = inlined_call_operand.hbm [shape: f32[2,5], index: 3, kind: output, shape index: {}]  }
   0x1   :  { %v18_v0 = vld [vmem:[%s173_s1] sm:$0xff]  ;;  %v19_v1 = vld [vmem:[%s173_s1 + $0x8] sm:$0xff]  ;;  %92 = vmatprep.subr.bf16.mxu0 %v125_v3  ;;  %94 = vmatprep.mubr.msk.bf16.mxu0 %vm126_vm0, %v125_v3 }
   0x2   :  { %v16_v2 = vld [vmem:[%s172_s0] sm:$0x3]  ;;  %v20_v4 = vpack.c.bf16 %v19_v1, %v18_v0 }
   0x3   :  { %8 = vsyncpa [#allocation3], 0  ;;  %v17_v5 = vpack.c.bf16 %v16_v2, %v16_v2  ;;  %vm28_vm1 = vcmask 130048   ;;  %v88_v6 = vld [vmem:[%s174_s2] ss:$0 sm:$0xff]  ;;  %s127_s20 = smov [#allocation2]  }
   0x4   :  { %93 = vmatpush3.bf16.msra.mxu0 %v20_v4  ;;  %s80_s1 = sshll.u32 %s127_s20, 4  ;;  %vm72_vm2 = vcmask 33792   ;;  %s81_s1 = int_to_ptr.vmem [resolvable:$true] %s80_s1 }
   0x5   :  { %s101_s0 = scalar_lea.vmem %s81_s1, 32  ;;  %p106_p1 = scmp.lt.s32.totalorder %s81_s1, %s81_s1 }
   0x6   :  { %p102_p0 = scmp.ne.s32.totalorder %s81_s1, %s101_s0  ;;  %p107_p2 = scmp.lt.s32.totalorder %s101_s0, %s101_s0 }
   0x7   :  { %95 = vmatmul.mubr.msk.bf16.vlgmr.msra.gmra.mrb[0].mxu0 %vm28_vm1, %v17_v5 }
   0x8   :  { %p108_p3 = por %p107_p2, %p106_p1 }
   0xa   :  { %p109_p4 = pnand %p108_p3, %p102_p0 }
  0xda   :  { %v66_v7 = vpop.f32.mrb[0].mxu0 }
  0xdb   :  { %v67_v8 = vadd.f32 %v88_v6, %v66_v7  ;;  %v96_v9 = vpop.f32.mrb[1].mxu0 }
  0xdc   :  { %v69_v10 = vpop.f32.mrb[2].mxu0 }
  0xdd   :  { %v97_v11 = vpop.f32.mrb[3].mxu0  ;;  %73 = vst.msk [vmem:[#allocation2] sm:$0x3] %vm72_vm2, %v67_v8 }
  0xde   :  { %112 = shalt.err (!%p109_p4)
}
  0xdf   :  { %s113_s2 = scalar_lea.hbm %s175_s3, 32 }
  0xe0   :  { %p114_p5 = scmp.ne.s32.totalorder %s175_s3, %s113_s2  ;;  %p117_p6 = scmp.lt.u32.totalorder %s113_s2, %s175_s3 }
  0xe2   :  { %p119_p7 = pnand %p117_p6, %p114_p5 }
  0xe4   :  { %122 = shalt.err (!%p119_p7)
}
  0xe5   :  { %83 = dma.vmem_to_hbm [thread:$0]  %s81_s1, 32, %s175_s3, [#allocation3]  }
  0xe6   :  { %123 = dma.done.wait [#allocation3], 32  }
  0xe7   :  { %124 = vsyncadd [#allocation3], 4294967264 }
  0xe8   :  { %87 = vsyncpa [#allocation3], 1 }

// kernel: fwd.15
= control target key start
LH: loop header
LB: loop body
LE: loop exit
PB: predicated region body
PF: predicated region fallthrough
CT: control target
= control target key end

     0   :  { %s1298_s30 = smov 0   ;;  %s1475_s0 = inlined_call_operand.vmem [shape: bf16[2,4,64], index: 0, kind: input, shape index: {}]   ;;  %s1476_s1 = inlined_call_operand.vmem [shape: f32[1,64], index: 1, kind: input, shape index: {}]   ;;  %s1477_s2 = inlined_call_operand.vmem [shape: f32[1,64], index: 2, kind: input, shape index: {}]   ;;  %s1478_s3 = inlined_call_operand.vmem [shape: bf16[64,64], index: 3, kind: input, shape index: {}]   ;;  %s1479_s4 = inlined_call_operand.vmem [shape: f32[1,64], index: 4, kind: input, shape index: {}]   ;;  %s1480_s5 = inlined_call_operand.vmem [shape: bf16[3,64,64], index: 5, kind: input, shape index: {}]   ;;  %s1481_s6 = inlined_call_operand.vmem [shape: f32[1,64], index: 6, kind: input, shape index: {}]   ;;  %s1482_s7 = inlined_call_operand.vmem [shape: bf16[3,64,64], index: 7, kind: input, shape index: {}]   ;;  %s1483_s8 = inlined_call_operand.vmem [shape: f32[1,64], index: 8, kind: input, shape index: {}]   ;;  %s1484_s9 = inlined_call_operand.vmem [shape: bf16[2,4,64], index: 9, kind: output, shape index: {}]  }
   0x1 LB: > { %s989_s10 = sadd.s32 4294967295, %s1244_s30   ;;  %p993_p0 = scmp.ge.s32.totalorder %s1244_s30, 1  ;;  %s1244_s30 = sphi %s1298_s30, %s19_s30  }
   0x2   : > { %p286_p1 = scmp.lt.s32.totalorder %s1244_s30, 3 }
   0x4   : > { %p287_p2 = pnand %p993_p0, %p286_p1 }
   0x5   : > { %v1210_v0 = vld [vmem:[%s1478_s3] sm:$0xff] (!%p287_p2)   ;;  %v1246_v1 = vmov (!%p287_p2), 0.0   ;;  %v1211_v2 = vld [vmem:[%s1478_s3 + $0x8] sm:$0xff] (!%p287_p2)   ;;  %vm1247_vm0 = vmmov (!%p287_p2), 0   ;;  %p320_p3 = scmp.lt.s32.totalorder (!%p287_p2), %s989_s10, 1  ;;  %vm329_vm1 = vcmask (!%p287_p2), 521216  }
   0x6   : > { %290 = sbr.rel (%p287_p2) target bundleno = 544 (0x220), region = 56  ;;  %1105 = vmatprep.subr.bf16.mxu1 (!%p287_p2), %v1246_v1  ;;  %1129 = vmatprep.subr.bf16.mxu0 (!%p287_p2), %v1246_v1  ;;  %330 = vst.msk [vmem:[#allocation2] sm:$0x3f] (!%p287_p2), %vm329_vm1, %v1246_v1  ;;  %331 = vst.msk [vmem:[#allocation3] sm:$0x3f] (!%p287_p2), %vm329_vm1, %v1246_v1  ;;  %v1212_v3 = vld [vmem:[%s1478_s3 + $0x10] sm:$0xff] (!%p287_p2)  }
   0x7   : > { %1106 = vmatpush3.bf16.msra.mxu1 (!%p287_p2), %v1210_v0  ;;  %1113 = vmatprep.mubr.msk.bf16.mxu1 (!%p287_p2), %vm1247_vm0, %v1246_v1  ;;  %vm334_vm2 = vcmask (!%p287_p2), 519168   ;;  %v1215_v4 = vld [vmem:[%s1480_s5] sm:$0xff] (!%p287_p2)   ;;  %v1213_v6 = vld [vmem:[%s1478_s3 + $0x18] sm:$0xff] (!%p287_p2)   ;;  %v1217_v9 = vld [vmem:[%s1480_s5 + $0x8] sm:$0xff] (!%p287_p2)   ;;  %vm377_vm4 = vcmask (!%p287_p2), 523264   ;;  %vm934_vm7 = vcmask (!%p287_p2), 517120  }
   0x8   : > { %1107 = vmatprep.subr.bf16.mxu1 (!%p287_p2), %v1246_v1  ;;  %1137 = vmatprep.mubr.msk.bf16.mxu0 (!%p287_p2), %vm1247_vm0, %v1246_v1  ;;  %v1002_v5 = vld [vmem:[%s1476_s1] ss:$0 sm:$0xff] (!%p287_p2)  ;;  %v1219_v12 = vld [vmem:[%s1480_s5 + $0x10] sm:$0xff] (!%p287_p2)   ;;  %v1221_v15 = vld [vmem:[%s1480_s5 + $0x18] sm:$0xff] (!%p287_p2)  }
   0x9   : > { %1130 = vmatpush3.bf16.msra.mxu0 (!%p287_p2), %v1215_v4  ;;  %v1003_v10 = vld [vmem:[%s1477_s2] ss:$0 sm:$0xff] (!%p287_p2)  ;;  %v1216_v20 = vld [vmem:[%s1480_s5 + $0x28] sm:$0xff] (!%p287_p2)   ;;  %v1218_v21 = vld [vmem:[%s1480_s5 + $0x30] sm:$0xff] (!%p287_p2)  }
   0xa   : > { %1131 = vmatprep.subr.bf16.mxu0 (!%p287_p2), %v1246_v1  ;;  %v1214_v17 = vld [vmem:[%s1480_s5 + $0x20] sm:$0xff] (!%p287_p2)   ;;  %v1220_v24 = vld [vmem:[%s1480_s5 + $0x38] sm:$0xff] (!%p287_p2)   ;;  %v1223_v28 = vld [vmem:[%s1480_s5 + $0x48] sm:$0xff] (!%p287_p2)  }
   0xb   : > { %1108 = vmatpush3.bf16.msra.mxu1 (!%p287_p2), %v1211_v2  ;;  %v1222_v27 = vld [vmem:[%s1480_s5 + $0x40] sm:$0xff] (!%p287_p2)   ;;  %v1224_v29 = vld [vmem:[%s1480_s5 + $0x50] sm:$0xff] (!%p287_p2)   ;;  %v1225_v30 = vld [vmem:[%s1480_s5 + $0x58] sm:$0xff] (!%p287_p2)  }
   0xc   : > { %1109 = vmatprep.subr.bf16.mxu1 (!%p287_p2), %v1246_v1  ;;  %v1226_v33 = vld [vmem:[%s1482_s7 + $0x20] sm:$0xff] (!%p287_p2)   ;;  %v1227_v34 = vld [vmem:[%s1482_s7 + $0x28] sm:$0xff] (!%p287_p2)   ;;  %v1228_v35 = vld [vmem:[%s1482_s7 + $0x30] sm:$0xff] (!%p287_p2)  }
   0xd   : > { %s1486_s10 = smov (!%p320_p3, %s989_s10), 1  ;;  %1132 = vmatpush3.bf16.msra.mxu0 %v1217_v9  ;;  %v1229_v36 = vld [vmem:[%s1482_s7 + $0x38] sm:$0xff]   ;;  %v1035_v51 = vld [vmem:[%s1481_s6] ss:$0 sm:$0xff]  ;;  %v1231_v62 = vld [vmem:[%s1482_s7 + $0x8] sm:$0xff]  }
   0xe   : > { %s994_s17 = sshll.u32 %s1486_s10, 1  ;;  %1133 = vmatprep.subr.bf16.mxu0 %v1246_v1  ;;  %v1230_v60 = vld [vmem:[%s1482_s7] sm:$0xff]   ;;  %v1232_v63 = vld [vmem:[%s1482_s7 + $0x10] sm:$0xff]   ;;  %v1233_v0 = vld [vmem:[%s1482_s7 + $0x18] sm:$0xff]  }
   0xf   : > { %s323_s22 = scalar_lea.vmem %s1475_s0, %s994_s17  ;;  %1110 = vmatpush3.bf16.msra.mxu1 %v1212_v3  ;;  %v1234_v3 = vld [vmem:[%s1482_s7 + $0x40] sm:$0xff]   ;;  %s327_s29 = scalar_lea.vmem %s1484_s9, %s994_s17 }
  0x10   : > { %v332_v7 = vld [vmem:[%s323_s22] sm:$0x3]  ;;  %1111 = vmatprep.subr.bf16.mxu1 %v1246_v1 }
  0x11   : > { %v333_v8 = vunpack.c.l.bf16 %v332_v7  ;;  %1134 = vmatpush3.bf16.msra.mxu0 %v1219_v12  ;;  %v1237_v7 = vld [vmem:[%s1482_s7 + $0x58] sm:$0xff]  }
  0x12   : > { %1135 = vmatprep.subr.bf16.mxu0 %v1246_v1 }
  0x13   : > { %335 = vst.msk [vmem:[#allocation2 + $0x1] sm:$0xf] %vm334_vm2, %v333_v8  ;;  %v428_v11 = vmul.f32 %v1002_v5, %v333_v8  ;;  %1112 = vmatpush3.bf16.msra.mxu1 %v1213_v6  ;;  %v1235_v5 = vld [vmem:[%s1482_s7 + $0x48] sm:$0xff]   ;;  %v1236_v6 = vld [vmem:[%s1482_s7 + $0x50] sm:$0xff]  }
  0x14   : > { %1117 = vmatprep.subr.bf16.mxu1 %v1246_v1 }
  0x15   : > { %v436_v13 = vadd.f32 %v1003_v10, %v428_v11  ;;  %1136 = vmatpush3.bf16.msra.mxu0 %v1221_v15  ;;  %v996_v10 = vld [vmem:[%s1479_s4] ss:$0 sm:$0xff] }
  0x16   : > { %1153 = vmatprep.subr.bf16.mxu0 %v1246_v1 }
  0x17   : > { %vm437_vm3 = vcmp.ge.f32.partialorder %v436_v13, 0.0  ;;  %v438_v14 = vmul.f32 0.01, %v436_v13 }
  0x19   : > { %v439_v16 = vsel %vm437_vm3, %v436_v13, %v438_v14  ;;  %v1067_v13 = vld [vmem:[%s1483_s8] ss:$0 sm:$0xff] }
  0x1a   : > { %v336_v18 = vld [vmem:[#allocation2 + $0x1] sm:$0xf] }
  0x1b   : > { %v337_v19 = vpack.c.bf16 %v336_v18, %v336_v18  ;;  %440 = vst.msk [vmem:[#allocation2 + $0x1] sm:$0xf] %vm334_vm2, %v439_v16 }
  0x1d   : > { %1114 = vmatmul.mubr.msk.bf16.vlgmr.msra.gmra.mrb[0].mxu1 %vm377_vm4, %v337_v19 }
  0x1e   : > { %1118 = vmatpush3.bf16.msra.mxu1 %v1214_v17  ;;  %1125 = vmatprep.mubr.msk.bf16.mxu1 %vm1247_vm0, %v1246_v1 }
  0x1f   : > { %1119 = vmatprep.subr.bf16.mxu1 %v1246_v1 }
  0x22   : > { %1120 = vmatpush3.bf16.msra.mxu1 %v1216_v20  ;;  %v441_v22 = vld [vmem:[#allocation2] sm:$0xf] }
  0x23   : > { %1121 = vmatprep.subr.bf16.mxu1 %v1246_v1  ;;  %v442_v23 = vpack.c.bf16 %v441_v22, %v441_v22  ;;  %v451_v25 = vld [vmem:[#allocation2 + $0x1] sm:$0xf] }
  0x24   : > { %v452_v26 = vpack.c.bf16 %v451_v25, %v451_v25  ;;  %v596_v31 = vld [vmem:[#allocation2 + $0x2] sm:$0xf] }
  0x25   : > { %1138 = vmatmul.mubr.msk.bf16.vlgmr.msra.gmra.mrb[0].mxu0 %vm377_vm4, %v442_v23  ;;  %v597_v32 = vpack.c.bf16 %v596_v31, %v596_v31 }
  0x26   : > { %1122 = vmatpush3.bf16.msra.mxu1 %v1218_v21  ;;  %1161 = vmatprep.mubr.msk.bf16.mxu0 %vm1247_vm0, %v1246_v1 }
  0x27   : > { %1123 = vmatprep.subr.bf16.mxu1 %v1246_v1  ;;  %1154 = vmatpush3.bf16.msra.mxu0 %v1226_v33 }
  0x28   : > { %1155 = vmatprep.subr.bf16.mxu0 %v1246_v1 }
  0x2a   : > { %1124 = vmatpush3.bf16.msra.mxu1 %v1220_v24 }
  0x2b   : > { %1141 = vmatprep.subr.bf16.mxu1 %v1246_v1  ;;  %1156 = vmatpush3.bf16.msra.mxu0 %v1227_v34 }
  0x2c   : > { %1157 = vmatprep.subr.bf16.mxu0 %v1246_v1 }
  0x2d   : > { %1126 = vmatmul.mubr.msk.bf16.vlgmr.msra.gmra.mrb[4].mxu1 %vm377_vm4, %v452_v26 }
  0x2e   : > { %1142 = vmatpush3.bf16.msra.mxu1 %v1222_v27  ;;  %1149 = vmatprep.mubr.msk.bf16.mxu1 %vm1247_vm0, %v1246_v1 }
  0x2f   : > { %1143 = vmatprep.subr.bf16.mxu1 %v1246_v1  ;;  %1158 = vmatpush3.bf16.msra.mxu0 %v1228_v35 }
  0x30   : > { %1159 = vmatprep.subr.bf16.mxu0 %v1246_v1 }
  0x32   : > { %1144 = vmatpush3.bf16.msra.mxu1 %v1223_v28 }
  0x33   : > { %1145 = vmatprep.subr.bf16.mxu1 %v1246_v1  ;;  %1160 = vmatpush3.bf16.msra.mxu0 %v1229_v36 }
  0x34   : > { %1165 = vmatprep.subr.bf16.mxu0 %v1246_v1 }
  0x36   : > { %1146 = vmatpush3.bf16.msra.mxu1 %v1224_v29 }
  0x37   : > { %1147 = vmatprep.subr.bf16.mxu1 %v1246_v1 }
  0x3a   : > { %1148 = vmatpush3.bf16.msra.mxu1 %v1225_v30 }
  0x3d   : > { %1150 = vmatmul.mubr.msk.bf16.vlgmr.msra.gmra.mrb[8].mxu1 %vm377_vm4, %v597_v32 }
  0xf0   : > { %v415_v37 = vpop.f32.mrb[0].mxu1 }
  0xf1   : > { %v1115_v38 = vpop.f32.mrb[1].mxu1  ;;  %v416_v11 = vadd.f32 %v996_v10, %v415_v37 }
  0xf2   : > { %v418_v39 = vpop.f32.mrb[2].mxu1 }
  0xf3   : > { %v1116_v40 = vpop.f32.mrb[3].mxu1 }
  0xf8   : > { %v590_v41 = vpop.f32.mrb[0].mxu0 }
  0xf9   : > { %v1139_v42 = vpop.f32.mrb[1].mxu0 }
  0xfa   : > { %v593_v43 = vpop.f32.mrb[2].mxu0 }
  0xfb   : > { %v1140_v44 = vpop.f32.mrb[3].mxu0 }
 0x100   : > { %v523_v45 = vpop.f32.mrb[4].mxu1 }
 0x101   : > { %v1127_v46 = vpop.f32.mrb[5].mxu1  ;;  %v591_v47 = vadd.f32 %v590_v41, %v523_v45 }
 0x102   : > { %v526_v48 = vpop.f32.mrb[6].mxu1 }
 0x103   : > { %v1128_v49 = vpop.f32.mrb[7].mxu1 }
 0x110   : > { %v668_v50 = vpop.f32.mrb[8].mxu1 }
 0x111   : > { %v674_v52 = vadd.f32 %v668_v50, %v591_v47  ;;  %v1151_v53 = vpop.f32.mrb[9].mxu1 }
 0x112   : > { %v671_v54 = vpop.f32.mrb[10].mxu1 }
 0x113   : > { %v682_v55 = vadd.f32 %v1035_v51, %v674_v52  ;;  %v1152_v56 = vpop.f32.mrb[11].mxu1 }
 0x115   : > { %vm683_vm5 = vcmp.ge.f32.partialorder %v682_v55, 0.0  ;;  %v684_v57 = vmul.f32 0.01, %v682_v55 }
 0x117   : > { %v685_v58 = vsel %vm683_vm5, %v682_v55, %v684_v57 }
 0x118   : > { %686 = vst.msk [vmem:[#allocation3 + $0x1] sm:$0xf] %vm334_vm2, %v685_v58 }
 0x11f   : > { %v697_v59 = vld [vmem:[#allocation3 + $0x1] sm:$0xf] }
 0x120   : > { %v698_v61 = vpack.c.bf16 %v697_v59, %v697_v59  ;;  %v687_v2 = vld [vmem:[#allocation3] sm:$0xf] }
 0x121   : > { %v688_v4 = vpack.c.bf16 %v687_v2, %v687_v2  ;;  %v842_v8 = vld [vmem:[#allocation3 + $0x2] sm:$0xf] }
 0x122   : > { %1162 = vmatmul.mubr.msk.bf16.vlgmr.msra.gmra.mrb[4].mxu0 %vm377_vm4, %v698_v61  ;;  %v843_v9 = vpack.c.bf16 %v842_v8, %v842_v8 }
 0x123   : > { %1166 = vmatpush3.bf16.msra.mxu0 %v1230_v60  ;;  %1173 = vmatprep.mubr.msk.bf16.mxu0 %vm1247_vm0, %v1246_v1 }
 0x124   : > { %1167 = vmatprep.subr.bf16.mxu0 %v1246_v1 }
 0x127   : > { %1168 = vmatpush3.bf16.msra.mxu0 %v1231_v62 }
 0x128   : > { %1169 = vmatprep.subr.bf16.mxu0 %v1246_v1 }
 0x12b   : > { %1170 = vmatpush3.bf16.msra.mxu0 %v1232_v63 }
 0x12c   : > { %1171 = vmatprep.subr.bf16.mxu0 %v1246_v1 }
 0x12f   : > { %1172 = vmatpush3.bf16.msra.mxu0 %v1233_v0 }
 0x130   : > { %1177 = vmatprep.subr.bf16.mxu0 %v1246_v1 }
 0x132   : > { %1174 = vmatmul.mubr.msk.bf16.vlgmr.msra.gmra.mrb[4].mxu0 %vm377_vm4, %v688_v4 }
 0x133   : > { %1178 = vmatpush3.bf16.msra.mxu0 %v1234_v3  ;;  %1185 = vmatprep.mubr.msk.bf16.mxu0 %vm1247_vm0, %v1246_v1 }
 0x134   : > { %1179 = vmatprep.subr.bf16.mxu0 %v1246_v1 }
 0x137   : > { %1180 = vmatpush3.bf16.msra.mxu0 %v1235_v5 }
 0x138   : > { %1181 = vmatprep.subr.bf16.mxu0 %v1246_v1 }
 0x13b   : > { %1182 = vmatpush3.bf16.msra.mxu0 %v1236_v6 }
 0x13c   : > { %1183 = vmatprep.subr.bf16.mxu0 %v1246_v1 }
 0x13f   : > { %1184 = vmatpush3.bf16.msra.mxu0 %v1237_v7 }
 0x142   : > { %1186 = vmatmul.mubr.msk.bf16.vlgmr.msra.gmra.mrb[4].mxu0 %vm377_vm4, %v843_v9 }
 0x215   : > { %v914_v12 = vpop.f32.mrb[4].mxu0 }
 0x216   : > { %v1190_v14 = vadd.f32 %v914_v12, %v416_v11  ;;  %v1187_v15 = vpop.f32.mrb[5].mxu0 }
 0x217   : > { %v917_v16 = vpop.f32.mrb[6].mxu0 }
 0x218   : > { %v1191_v1 = vadd.f32 %v1190_v14, %v1067_v13  ;;  %v1188_v17 = vpop.f32.mrb[7].mxu0 }
 0x21a   : > { %vm930_vm6 = vcmp.ge.f32.partialorder %v1191_v1, 0.0  ;;  %v931_v18 = vmul.f32 0.01, %v1191_v1 }
 0x21c   : > { %v932_v19 = vsel %vm930_vm6, %v1191_v1, %v931_v18 }
 0x21d   : > { %v933_v20 = vpack.c.bf16 %v932_v19, %v932_v19 }
 0x21f   : > { %935 = vst.msk [vmem:[%s327_s29] sm:$0x3] %vm934_vm7, %v933_v20 }
 0x220 PF: > { %s19_s30 = sadd.s32 1, %s1244_s30  }
 0x221   : > { %p16_p4 = scmp.ge.s32.totalorder %s19_s30, 4  }
 0x223   :  { %18 = sbr.rel (!%p16_p4) target bundleno = 1 (0x1), region = 90 }

// kernel: fwd.17
= control target key start
LH: loop header
LB: loop body
LE: loop exit
PB: predicated region body
PF: predicated region fallthrough
CT: control target
= control target key end

     0   :  { %s1333_s30 = smov 0   ;;  %s1509_s0 = inlined_call_operand.vmem [shape: bf16[2,4,64], index: 0, kind: input, shape index: {}]   ;;  %s1510_s1 = inlined_call_operand.vmem [shape: f32[1,64], index: 1, kind: input, shape index: {}]   ;;  %s1511_s2 = inlined_call_operand.vmem [shape: f32[1,64], index: 2, kind: input, shape index: {}]   ;;  %s1512_s3 = inlined_call_operand.vmem [shape: bf16[64,64], index: 3, kind: input, shape index: {}]   ;;  %s1513_s4 = inlined_call_operand.vmem [shape: f32[1,64], index: 4, kind: input, shape index: {}]   ;;  %s1514_s5 = inlined_call_operand.vmem [shape: bf16[3,64,64], index: 5, kind: input, shape index: {}]   ;;  %s1515_s6 = inlined_call_operand.vmem [shape: f32[1,64], index: 6, kind: input, shape index: {}]   ;;  %s1516_s7 = inlined_call_operand.vmem [shape: bf16[3,64,64], index: 7, kind: input, shape index: {}]   ;;  %s1517_s8 = inlined_call_operand.vmem [shape: f32[1,64], index: 8, kind: input, shape index: {}]   ;;  %s1518_s9 = inlined_call_operand.vmem [shape: f32[2,1,16], index: 9, kind: output, shape index: {}]  }
   0x1 LB: > { %s1019_s10 = sadd.s32 4294967295, %s1276_s30   ;;  %p1023_p0 = scmp.ge.s32.totalorder %s1276_s30, 1  ;;  %s1276_s30 = sphi %s1333_s30, %s19_s30  }
   0x2   : > { %p286_p1 = scmp.lt.s32.totalorder %s1276_s30, 3 }
   0x4   : > { %p287_p2 = pnand %p1023_p0, %p286_p1 }
   0x5   : > { %v1242_v0 = vld [vmem:[%s1512_s3] sm:$0xff] (!%p287_p2)   ;;  %v1278_v1 = vmov (!%p287_p2), 0.0   ;;  %v1243_v2 = vld [vmem:[%s1512_s3 + $0x8] sm:$0xff] (!%p287_p2)   ;;  %vm1279_vm0 = vmmov (!%p287_p2), 0   ;;  %p319_p3 = scmp.lt.s32.totalorder (!%p287_p2), %s1019_s10, 1  ;;  %vm327_vm1 = vcmask (!%p287_p2), 521216  }
   0x6   : > { %290 = sbr.rel (%p287_p2) target bundleno = 681 (0x2a9), region = 56  ;;  %1134 = vmatprep.subr.bf16.mxu1 (!%p287_p2), %v1278_v1  ;;  %1158 = vmatprep.subr.bf16.mxu0 (!%p287_p2), %v1278_v1  ;;  %328 = vst.msk [vmem:[#allocation2] sm:$0x3f] (!%p287_p2), %vm327_vm1, %v1278_v1  ;;  %329 = vst.msk [vmem:[#allocation3] sm:$0x3f] (!%p287_p2), %vm327_vm1, %v1278_v1  ;;  %v1244_v3 = vld [vmem:[%s1512_s3 + $0x10] sm:$0xff] (!%p287_p2)  }
   0x7   : > { %1135 = vmatpush3.bf16.msra.mxu1 (!%p287_p2), %v1242_v0  ;;  %1142 = vmatprep.mubr.msk.bf16.mxu1 (!%p287_p2), %vm1279_vm0, %v1278_v1  ;;  %vm332_vm2 = vcmask (!%p287_p2), 519168   ;;  %v1247_v4 = vld [vmem:[%s1514_s5] sm:$0xff] (!%p287_p2)   ;;  %v1245_v6 = vld [vmem:[%s1512_s3 + $0x18] sm:$0xff] (!%p287_p2)   ;;  %v1249_v9 = vld [vmem:[%s1514_s5 + $0x8] sm:$0xff] (!%p287_p2)   ;;  %vm375_vm4 = vcmask (!%p287_p2), 523264   ;;  %s1280_s24 = smov (!%p287_p2), 96  }
   0x8   : > { %1136 = vmatprep.subr.bf16.mxu1 (!%p287_p2), %v1278_v1  ;;  %1166 = vmatprep.mubr.msk.bf16.mxu0 (!%p287_p2), %vm1279_vm0, %v1278_v1  ;;  %v1031_v5 = vld [vmem:[%s1510_s1] ss:$0 sm:$0xff] (!%p287_p2)  ;;  %v1251_v12 = vld [vmem:[%s1514_s5 + $0x10] sm:$0xff] (!%p287_p2)   ;;  %v1253_v15 = vld [vmem:[%s1514_s5 + $0x18] sm:$0xff] (!%p287_p2)   ;;  %s1281_s25 = smov (!%p287_p2), 112   ;;  %s1282_s26 = smov (!%p287_p2), 80  }
   0x9   : > { %1159 = vmatpush3.bf16.msra.mxu0 (!%p287_p2), %v1247_v4  ;;  %v1032_v10 = vld [vmem:[%s1511_s2] ss:$0 sm:$0xff] (!%p287_p2)  ;;  %v1248_v20 = vld [vmem:[%s1514_s5 + $0x28] sm:$0xff] (!%p287_p2)   ;;  %v1250_v21 = vld [vmem:[%s1514_s5 + $0x30] sm:$0xff] (!%p287_p2)   ;;  %vm970_vm6 = vcmask (!%p287_p2), 122880  }
   0xa   : > { %1160 = vmatprep.subr.bf16.mxu0 (!%p287_p2), %v1278_v1  ;;  %v1246_v17 = vld [vmem:[%s1514_s5 + $0x20] sm:$0xff] (!%p287_p2)   ;;  %v1252_v24 = vld [vmem:[%s1514_s5 + $0x38] sm:$0xff] (!%p287_p2)   ;;  %v1255_v28 = vld [vmem:[%s1514_s5 + $0x48] sm:$0xff] (!%p287_p2)  }
   0xb   : > { %1137 = vmatpush3.bf16.msra.mxu1 (!%p287_p2), %v1243_v2  ;;  %v1254_v27 = vld [vmem:[%s1514_s5 + $0x40] sm:$0xff] (!%p287_p2)   ;;  %v1256_v29 = vld [vmem:[%s1514_s5 + $0x50] sm:$0xff] (!%p287_p2)   ;;  %v1257_v30 = vld [vmem:[%s1514_s5 + $0x58] sm:$0xff] (!%p287_p2)  }
   0xc   : > { %1138 = vmatprep.subr.bf16.mxu1 (!%p287_p2), %v1278_v1  ;;  %v1258_v33 = vld [vmem:[%s1516_s7 + $0x20] sm:$0xff] (!%p287_p2)   ;;  %v1259_v34 = vld [vmem:[%s1516_s7 + $0x28] sm:$0xff] (!%p287_p2)   ;;  %v1260_v35 = vld [vmem:[%s1516_s7 + $0x30] sm:$0xff] (!%p287_p2)  }
   0xd   : > { %s1520_s10 = smov (!%p319_p3, %s1019_s10), 1  ;;  %1161 = vmatpush3.bf16.msra.mxu0 %v1249_v9  ;;  %v1261_v36 = vld [vmem:[%s1516_s7 + $0x38] sm:$0xff]   ;;  %v1064_v51 = vld [vmem:[%s1515_s6] ss:$0 sm:$0xff]  ;;  %v1263_v62 = vld [vmem:[%s1516_s7 + $0x8] sm:$0xff]  }
   0xe   : > { %s1024_s17 = sshll.u32 %s1520_s10, 1  ;;  %1162 = vmatprep.subr.bf16.mxu0 %v1278_v1  ;;  %v1262_v60 = vld [vmem:[%s1516_s7] sm:$0xff]   ;;  %v1264_v63 = vld [vmem:[%s1516_s7 + $0x10] sm:$0xff]   ;;  %v1265_v0 = vld [vmem:[%s1516_s7 + $0x18] sm:$0xff]   ;;  %s325_s29 = scalar_lea.vmem %s1518_s9, %s1520_s10 }
   0xf   : > { %s322_s22 = scalar_lea.vmem %s1509_s0, %s1024_s17  ;;  %1139 = vmatpush3.bf16.msra.mxu1 %v1244_v3  ;;  %v1266_v3 = vld [vmem:[%s1516_s7 + $0x40] sm:$0xff]  }
  0x10   : > { %v330_v7 = vld [vmem:[%s322_s22] sm:$0x3]  ;;  %1140 = vmatprep.subr.bf16.mxu1 %v1278_v1 }
  0x11   : > { %v331_v8 = vunpack.c.l.bf16 %v330_v7  ;;  %1163 = vmatpush3.bf16.msra.mxu0 %v1251_v12  ;;  %v1269_v7 = vld [vmem:[%s1516_s7 + $0x58] sm:$0xff]  }
  0x12   : > { %1164 = vmatprep.subr.bf16.mxu0 %v1278_v1 }
  0x13   : > { %333 = vst.msk [vmem:[#allocation2 + $0x1] sm:$0xf] %vm332_vm2, %v331_v8  ;;  %v426_v11 = vmul.f32 %v1031_v5, %v331_v8  ;;  %1141 = vmatpush3.bf16.msra.mxu1 %v1245_v6  ;;  %v1267_v5 = vld [vmem:[%s1516_s7 + $0x48] sm:$0xff]   ;;  %v1268_v6 = vld [vmem:[%s1516_s7 + $0x50] sm:$0xff]  }
  0x14   : > { %1146 = vmatprep.subr.bf16.mxu1 %v1278_v1 }
  0x15   : > { %v434_v13 = vadd.f32 %v1032_v10, %v426_v11  ;;  %1165 = vmatpush3.bf16.msra.mxu0 %v1253_v15  ;;  %v1025_v10 = vld [vmem:[%s1513_s4] ss:$0 sm:$0xff] }
  0x16   : > { %1182 = vmatprep.subr.bf16.mxu0 %v1278_v1 }
  0x17   : > { %vm435_vm3 = vcmp.ge.f32.partialorder %v434_v13, 0.0  ;;  %v436_v14 = vmul.f32 0.01, %v434_v13 }
  0x19   : > { %v437_v16 = vsel %vm435_vm3, %v434_v13, %v436_v14  ;;  %v1096_v13 = vld [vmem:[%s1517_s8] ss:$0 sm:$0xff] }
  0x1a   : > { %v334_v18 = vld [vmem:[#allocation2 + $0x1] sm:$0xf] }
  0x1b   : > { %v335_v19 = vpack.c.bf16 %v334_v18, %v334_v18  ;;  %438 = vst.msk [vmem:[#allocation2 + $0x1] sm:$0xf] %vm332_vm2, %v437_v16 }
  0x1d   : > { %1143 = vmatmul.mubr.msk.bf16.vlgmr.msra.gmra.mrb[0].mxu1 %vm375_vm4, %v335_v19 }
  0x1e   : > { %1147 = vmatpush3.bf16.msra.mxu1 %v1246_v17  ;;  %1154 = vmatprep.mubr.msk.bf16.mxu1 %vm1279_vm0, %v1278_v1 }
  0x1f   : > { %1148 = vmatprep.subr.bf16.mxu1 %v1278_v1 }
  0x22   : > { %1149 = vmatpush3.bf16.msra.mxu1 %v1248_v20  ;;  %v439_v22 = vld [vmem:[#allocation2] sm:$0xf] }
  0x23   : > { %1150 = vmatprep.subr.bf16.mxu1 %v1278_v1  ;;  %v440_v23 = vpack.c.bf16 %v439_v22, %v439_v22  ;;  %v449_v25 = vld [vmem:[#allocation2 + $0x1] sm:$0xf] }
  0x24   : > { %v450_v26 = vpack.c.bf16 %v449_v25, %v449_v25  ;;  %v594_v31 = vld [vmem:[#allocation2 + $0x2] sm:$0xf] }
  0x25   : > { %1167 = vmatmul.mubr.msk.bf16.vlgmr.msra.gmra.mrb[0].mxu0 %vm375_vm4, %v440_v23  ;;  %v595_v32 = vpack.c.bf16 %v594_v31, %v594_v31 }
  0x26   : > { %1151 = vmatpush3.bf16.msra.mxu1 %v1250_v21  ;;  %1190 = vmatprep.mubr.msk.bf16.mxu0 %vm1279_vm0, %v1278_v1 }
  0x27   : > { %1152 = vmatprep.subr.bf16.mxu1 %v1278_v1  ;;  %1183 = vmatpush3.bf16.msra.mxu0 %v1258_v33 }
  0x28   : > { %1184 = vmatprep.subr.bf16.mxu0 %v1278_v1 }
  0x2a   : > { %1153 = vmatpush3.bf16.msra.mxu1 %v1252_v24 }
  0x2b   : > { %1170 = vmatprep.subr.bf16.mxu1 %v1278_v1  ;;  %1185 = vmatpush3.bf16.msra.mxu0 %v1259_v34 }
  0x2c   : > { %1186 = vmatprep.subr.bf16.mxu0 %v1278_v1 }
  0x2d   : > { %1155 = vmatmul.mubr.msk.bf16.vlgmr.msra.gmra.mrb[4].mxu1 %vm375_vm4, %v450_v26 }
  0x2e   : > { %1171 = vmatpush3.bf16.msra.mxu1 %v1254_v27  ;;  %1178 = vmatprep.mubr.msk.bf16.mxu1 %vm1279_vm0, %v1278_v1 }
  0x2f   : > { %1172 = vmatprep.subr.bf16.mxu1 %v1278_v1  ;;  %1187 = vmatpush3.bf16.msra.mxu0 %v1260_v35 }
  0x30   : > { %1188 = vmatprep.subr.bf16.mxu0 %v1278_v1 }
  0x32   : > { %1173 = vmatpush3.bf16.msra.mxu1 %v1255_v28 }
  0x33   : > { %1174 = vmatprep.subr.bf16.mxu1 %v1278_v1  ;;  %1189 = vmatpush3.bf16.msra.mxu0 %v1261_v36 }
  0x34   : > { %1194 = vmatprep.subr.bf16.mxu0 %v1278_v1 }
  0x36   : > { %1175 = vmatpush3.bf16.msra.mxu1 %v1256_v29 }
  0x37   : > { %1176 = vmatprep.subr.bf16.mxu1 %v1278_v1 }
  0x3a   : > { %1177 = vmatpush3.bf16.msra.mxu1 %v1257_v30 }
  0x3d   : > { %1179 = vmatmul.mubr.msk.bf16.vlgmr.msra.gmra.mrb[8].mxu1 %vm375_vm4, %v595_v32 }
  0xf0   : > { %v413_v37 = vpop.f32.mrb[0].mxu1 }
  0xf1   : > { %v1144_v38 = vpop.f32.mrb[1].mxu1  ;;  %v414_v11 = vadd.f32 %v1025_v10, %v413_v37 }
  0xf2   : > { %v416_v39 = vpop.f32.mrb[2].mxu1 }
  0xf3   : > { %v1145_v40 = vpop.f32.mrb[3].mxu1 }
  0xf8   : > { %v588_v41 = vpop.f32.mrb[0].mxu0 }
  0xf9   : > { %v1168_v42 = vpop.f32.mrb[1].mxu0 }
  0xfa   : > { %v591_v43 = vpop.f32.mrb[2].mxu0 }
  0xfb   : > { %v1169_v44 = vpop.f32.mrb[3].mxu0 }
 0x100   : > { %v521_v45 = vpop.f32.mrb[4].mxu1 }
 0x101   : > { %v1156_v46 = vpop.f32.mrb[5].mxu1  ;;  %v589_v47 = vadd.f32 %v588_v41, %v521_v45 }
 0x102   : > { %v524_v48 = vpop.f32.mrb[6].mxu1 }
 0x103   : > { %v1157_v49 = vpop.f32.mrb[7].mxu1 }
 0x110   : > { %v666_v50 = vpop.f32.mrb[8].mxu1 }
 0x111   : > { %v672_v52 = vadd.f32 %v666_v50, %v589_v47  ;;  %v1180_v53 = vpop.f32.mrb[9].mxu1 }
 0x112   : > { %v669_v54 = vpop.f32.mrb[10].mxu1 }
 0x113   : > { %v680_v55 = vadd.f32 %v1064_v51, %v672_v52  ;;  %v1181_v56 = vpop.f32.mrb[11].mxu1 }
 0x115   : > { %vm681_vm5 = vcmp.ge.f32.partialorder %v680_v55, 0.0  ;;  %v682_v57 = vmul.f32 0.01, %v680_v55 }
 0x117   : > { %v683_v58 = vsel %vm681_vm5, %v680_v55, %v682_v57 }
 0x118   : > { %684 = vst.msk [vmem:[#allocation3 + $0x1] sm:$0xf] %vm332_vm2, %v683_v58 }
 0x11f   : > { %v695_v59 = vld [vmem:[#allocation3 + $0x1] sm:$0xf] }
 0x120   : > { %v696_v61 = vpack.c.bf16 %v695_v59, %v695_v59  ;;  %v685_v2 = vld [vmem:[#allocation3] sm:$0xf] }
 0x121   : > { %v686_v4 = vpack.c.bf16 %v685_v2, %v685_v2  ;;  %v840_v8 = vld [vmem:[#allocation3 + $0x2] sm:$0xf] }
 0x122   : > { %1191 = vmatmul.mubr.msk.bf16.vlgmr.msra.gmra.mrb[4].mxu0 %vm375_vm4, %v696_v61  ;;  %v841_v9 = vpack.c.bf16 %v840_v8, %v840_v8 }
 0x123   : > { %1195 = vmatpush3.bf16.msra.mxu0 %v1262_v60  ;;  %1202 = vmatprep.mubr.msk.bf16.mxu0 %vm1279_vm0, %v1278_v1 }
 0x124   : > { %1196 = vmatprep.subr.bf16.mxu0 %v1278_v1 }
 0x127   : > { %1197 = vmatpush3.bf16.msra.mxu0 %v1263_v62 }
 0x128   : > { %1198 = vmatprep.subr.bf16.mxu0 %v1278_v1 }
 0x12b   : > { %1199 = vmatpush3.bf16.msra.mxu0 %v1264_v63 }
 0x12c   : > { %1200 = vmatprep.subr.bf16.mxu0 %v1278_v1 }
 0x12f   : > { %1201 = vmatpush3.bf16.msra.mxu0 %v1265_v0 }
 0x130   : > { %1206 = vmatprep.subr.bf16.mxu0 %v1278_v1 }
 0x132   : > { %1203 = vmatmul.mubr.msk.bf16.vlgmr.msra.gmra.mrb[4].mxu0 %vm375_vm4, %v686_v4 }
 0x133   : > { %1207 = vmatpush3.bf16.msra.mxu0 %v1266_v3  ;;  %1214 = vmatprep.mubr.msk.bf16.mxu0 %vm1279_vm0, %v1278_v1 }
 0x134   : > { %1208 = vmatprep.subr.bf16.mxu0 %v1278_v1 }
 0x137   : > { %1209 = vmatpush3.bf16.msra.mxu0 %v1267_v5 }
 0x138   : > { %1210 = vmatprep.subr.bf16.mxu0 %v1278_v1 }
 0x13b   : > { %1211 = vmatpush3.bf16.msra.mxu0 %v1268_v6 }
 0x13c   : > { %1212 = vmatprep.subr.bf16.mxu0 %v1278_v1 }
 0x13f   : > { %1213 = vmatpush3.bf16.msra.mxu0 %v1269_v7 }
 0x142   : > { %1215 = vmatmul.mubr.msk.bf16.vlgmr.msra.gmra.mrb[4].mxu0 %vm375_vm4, %v841_v9 }
 0x215   : > { %v912_v12 = vpop.f32.mrb[4].mxu0 }
 0x216   : > { %v1219_v14 = vadd.f32 %v912_v12, %v414_v11  ;;  %v1216_v15 = vpop.f32.mrb[5].mxu0 }
 0x217   : > { %v915_v16 = vpop.f32.mrb[6].mxu0 }
 0x218   : > { %v1220_v17 = vadd.f32 %v1219_v14, %v1096_v13  ;;  %v1217_v1 = vpop.f32.mrb[7].mxu0 }
 0x21a   : > { %v928_v18 = vsel %vm332_vm2, %v1220_v17, 0.0  ;;  %v935_v19 = vsel %vm332_vm2, %v1220_v17, -inf }
 0x21b   : > { %v929_v20 = vrot.slane %v928_v18, 4  ;;  %v936_v21 = vrot.slane %v935_v19, 4 }
 0x21d   : > { %v930_v22 = vadd.f32 %v929_v20, %v928_v18  ;;  %v937_v23 = vmax.f32 %v935_v19, %v936_v21 }
 0x21f   : > { %v931_v24 = vrot.slane %v930_v22, 2  ;;  %v938_v25 = vrot.slane %v937_v23, 2 }
 0x221   : > { %v932_v26 = vadd.f32 %v931_v24, %v930_v22  ;;  %v939_v27 = vmax.f32 %v937_v23, %v938_v25 }
 0x223   : > { %v933_v28 = vrot.slane %v932_v26, 1  ;;  %v940_v30 = vrot.slane %v939_v27, 1 }
 0x225   : > { %v934_v29 = vadd.f32 %v933_v28, %v932_v26  ;;  %v941_v31 = vmax.f32 %v939_v27, %v940_v30 }
 0x227   : > { %952 = vrot.lane.b32.xlu1 %v934_v29, %s1280_s24  ;;  %943 = vrot.lane.b32.xlu0 %v934_v29, %s1281_s25 }
 0x22b   : > { %956 = vrot.lane.b32.xlu1 %v941_v31, %s1280_s24  ;;  %948 = vrot.lane.b32.xlu0 %v941_v31, %s1281_s25 }
 0x22f   : > { %964 = vrot.lane.b32.xlu1 %v941_v31, %s1282_s26  ;;  %960 = vrot.lane.b32.xlu0 %v934_v29, %s1282_s26 }
 0x299   : > { %v953_v32 = vpop.permute.xlu1 %952  ;;  %v944_v33 = vpop.permute.xlu0 %943 }
 0x29a   : > { %v946_v34 = vadd.f32 %v944_v33, %v934_v29 }
 0x29c   : > { %v955_v39 = vadd.f32 %v953_v32, %v946_v34 }
 0x29d   : > { %v957_v35 = vpop.permute.xlu1 %956  ;;  %v949_v36 = vpop.permute.xlu0 %948 }
 0x29e   : > { %v951_v37 = vmax.f32 %v941_v31, %v949_v36 }
 0x2a0   : > { %v959_v38 = vmax.f32 %v951_v37, %v957_v35 }
 0x2a1   : > { %v965_v40 = vpop.permute.xlu1 %964  ;;  %v961_v41 = vpop.permute.xlu0 %960 }
 0x2a2   : > { %v963_v42 = vadd.f32 %v961_v41, %v955_v39  ;;  %v967_v43 = vmax.f32 %v959_v38, %v965_v40 }
 0x2a4   : > { %v968_v44 = vmul.f32 0.0625, %v963_v42 }
 0x2a6   : > { %v969_v45 = vadd.f32 %v968_v44, %v967_v43 }
 0x2a8   : > { %971 = vst.msk [vmem:[%s325_s29] sm:$0x1] %vm970_vm6, %v969_v45 }
 0x2a9 PF: > { %s19_s30 = sadd.s32 1, %s1276_s30  }
 0x2aa   : > { %p16_p4 = scmp.ge.s32.totalorder %s19_s30, 4  }
 0x2ac   :  { %18 = sbr.rel (!%p16_p4) target bundleno = 1 (0x1), region = 90 }

</bundles_post_ra>
